<compile_context>
chip_gen: v6e
topology: v6e:2x2x1
jax: 0.10.0
libtpu: 0.0.40
codegen_flags: <defaults>
</compile_context>

<pallas_src>
import math

import jax
import jax.numpy as jnp
from jax import lax
from jax.experimental import pallas as pl
from jax.experimental.pallas import tpu as pltpu

# ----------------------------- tiny Mistral config -----------------------------
VOCAB = 256
HIDDEN = 64
N_LAYERS = 2
N_HEADS = 4
N_KV_HEADS = 2
HEAD_DIM = HIDDEN // N_HEADS          # 16
INTERMEDIATE = 128
MAX_SEQ = 32                          # fixed padded context (~ model_len)
MAX_NEW_TOKENS = 4                    # ~ SamplingParams(max_tokens=100), shrunk
ROPE_THETA = 10000.0
EPS = 1e-5
NEG_INF = -1e9

NEWLINE_TOKEN = 10                    # stands in for '\n'
ANSWER_TOKEN = 11                     # stands in for 'Answer: '

Q_SZ = N_HEADS * HEAD_DIM             # 64
KV_SZ = N_KV_HEADS * HEAD_DIM         # 32
QKV_OUT = Q_SZ + 2 * KV_SZ            # 128 (lane-dense fused QKV)
GU_OUT = 2 * INTERMEDIATE             # 256 (lane-dense fused gate/up)
REP = N_HEADS // N_KV_HEADS


# ------------------------------ in-kernel helpers ------------------------------
def _rms(x, w):
    xf = x.astype(jnp.float32)
    var = jnp.mean(xf * xf, axis=-1, keepdims=True)
    return xf * lax.rsqrt(var + EPS) * w


def _rope(x, cos, sin, rot):
    # x [R, W] f32 ; cos/sin [R or 1, W] f32 ; rot [W, W] bf16 block-diag rotate-half
    xr = jnp.dot(x.astype(jnp.bfloat16), rot, preferred_element_type=jnp.float32)
    return x * cos + xr * sin


def _qkv_proj(x, ln_w, wqkv_li, cos_q, sin_q, cos_k, sin_k, rot_q, rot_k):
    a = _rms(x, ln_w)
    qkv = jnp.dot(a.astype(jnp.bfloat16), wqkv_li,
                  preferred_element_type=jnp.float32)                # [R, 128]
    q = _rope(qkv[:, :Q_SZ], cos_q, sin_q, rot_q)                    # [R, 64]
    k = _rope(qkv[:, Q_SZ:Q_SZ + KV_SZ], cos_k, sin_k, rot_k)        # [R, 32]
    v = qkv[:, Q_SZ + KV_SZ:]                                        # [R, 32]
    return q, k, v


def _attn_block(q, k, v, mask, wo_li):
    # q [R, 64] f32 (already includes 1/sqrt(d) folded into wqkv),
    # k, v [S, 32] f32, mask [R, S] f32, wo_li [64, 64] bf16.
    kb = k.astype(jnp.bfloat16)
    vb = v.astype(jnp.bfloat16)
    out = jnp.zeros((q.shape[0], HIDDEN), jnp.float32)
    for hh in range(N_HEADS):
        kvh = hh // REP                                              # GQA mapping
        qh = q[:, hh * HEAD_DIM:(hh + 1) * HEAD_DIM].astype(jnp.bfloat16)
        kh = kb[:, kvh * HEAD_DIM:(kvh + 1) * HEAD_DIM]
        vh = vb[:, kvh * HEAD_DIM:(kvh + 1) * HEAD_DIM]
        s = lax.dot_general(qh, kh, (((1,), (1,)), ((), ())),
                            preferred_element_type=jnp.float32) + mask
        m = jnp.max(s, axis=-1, keepdims=True)
        pr = jnp.exp(s - m)
        l = jnp.sum(pr, axis=-1, keepdims=True)
        o = jnp.dot(pr.astype(jnp.bfloat16), vh, preferred_element_type=jnp.float32)
        o = o * pl.reciprocal(l, approx=True)
        # accumulate through the MXU instead of a 16-lane concat
        out = out + jnp.dot(o.astype(jnp.bfloat16),
                            wo_li[hh * HEAD_DIM:(hh + 1) * HEAD_DIM, :],
                            preferred_element_type=jnp.float32)
    return out


def _mlp_block(x, ln_w, wgu_li, wd_li):
    a = _rms(x, ln_w)
    gu = jnp.dot(a.astype(jnp.bfloat16), wgu_li, preferred_element_type=jnp.float32)
    g = gu[:, :INTERMEDIATE]
    u = gu[:, INTERMEDIATE:]
    sig = pl.reciprocal(1.0 + jnp.exp(-g), approx=True)              # EUP
    return jnp.dot((g * sig * u).astype(jnp.bfloat16), wd_li,
                   preferred_element_type=jnp.float32)


def _greedy(logits):
    # logits [1, VOCAB] f32 -> first argmax index as a (1, 1) int32 value.
    m = jnp.max(logits, axis=-1, keepdims=True)
    vcol = lax.broadcasted_iota(jnp.int32, logits.shape, 1)
    cand = jnp.where(logits >= m, vcol, VOCAB)
    return jnp.min(cand, axis=-1, keepdims=True)


# ------------------------ fused prefill + decode kernel -------------------------
def _decode_kernel(lens_ref,                                         # SMEM [B] int32
                   x_ref, emb_ref,                                   # [1,S,H] f32, [V,H] bf16
                   cos_q_ref, sin_q_ref, cos_k_ref, sin_k_ref,       # RoPE tables
                   rot_q_ref, rot_k_ref,                             # rotate-half (bf16)
                   ln1_ref, wqkv_ref, wo_ref,                        # stacked per-layer weights
                   ln2_ref, wgu_ref, wd_ref,
                   fnorm_ref, lmh_ref,
                   tok_ref,                                          # [1,1,MAX_NEW] int32 out
                   *cache_refs):                                     # KV caches (VMEM scratch)
    b = pl.program_id(0)
    L0 = lens_ref[b]
    S = MAX_SEQ
    caches = [(cache_refs[2 * li], cache_refs[2 * li + 1]) for li in range(N_LAYERS)]

    rot_q = rot_q_ref[...]
    rot_k = rot_k_ref[...]
    fnorm = fnorm_ref[...]
    lmh = lmh_ref[...]

    # ------------- prefill: full forward over the prompt, fill the KV caches -------
    x = x_ref[0].astype(jnp.float32)                                 # [S, H]
    row_i = lax.broadcasted_iota(jnp.int32, (S, S), 0)
    col_i = lax.broadcasted_iota(jnp.int32, (S, S), 1)
    pmask = jnp.where((col_i <= row_i) & (col_i < L0), 0.0, NEG_INF).astype(jnp.float32)
    cos_q = cos_q_ref[...]
    sin_q = sin_q_ref[...]
    cos_k = cos_k_ref[...]
    sin_k = sin_k_ref[...]

    for li in range(N_LAYERS):
        kc, vc = caches[li]
        wo_li = wo_ref[li]
        q, k, v = _qkv_proj(x, ln1_ref[li], wqkv_ref[li],
                            cos_q, sin_q, cos_k, sin_k, rot_q, rot_k)
        kc[...] = k                                                  # fill KV cache
        vc[...] = v
        x = x + _attn_block(q, k, v, pmask, wo_li)
        x = x + _mlp_block(x, ln2_ref[li], wgu_ref[li], wd_ref[li])

    # final RMSNorm + LM head only for the last valid prompt row
    sel = (lax.broadcasted_iota(jnp.int32, (S, 1), 0) == (L0 - 1)).astype(jnp.float32)
    h_last = jnp.sum(x * sel, axis=0, keepdims=True)                 # [1, H]
    tok = _greedy(jnp.dot(_rms(h_last, fnorm).astype(jnp.bfloat16), lmh,
                          preferred_element_type=jnp.float32))       # (1,1) int32

    out_col = lax.broadcasted_iota(jnp.int32, (1, MAX_NEW_TOKENS), 1)
    out_acc = jnp.where(out_col == 0, tok,
                        jnp.zeros((1, MAX_NEW_TOKENS), jnp.int32))

    # ------------- in-kernel greedy decode loop (single-row, KV-cached) ------------
    emb = emb_ref[...]                                               # [VOCAB, H] bf16
    vcol = lax.broadcasted_iota(jnp.int32, (1, VOCAB), 1)
    kcol = lax.broadcasted_iota(jnp.int32, (1, S), 1)

    def decode_step(t, carry):
        tok, out_acc = carry
        p = L0 + t - 1                          # position of the token being fed in
        # embed-of-new-token via a one-hot MXU matmul (no scalar extraction needed)
        onehot = (vcol == tok).astype(jnp.bfloat16)                  # [1, VOCAB]
        h = jnp.dot(onehot, emb, preferred_element_type=jnp.float32)  # [1, H]
        cq = cos_q_ref[pl.ds(p, 1), :]
        sq = sin_q_ref[pl.ds(p, 1), :]
        ck = cos_k_ref[pl.ds(p, 1), :]
        sk = sin_k_ref[pl.ds(p, 1), :]
        kmask = jnp.where(kcol <= p, 0.0, NEG_INF).astype(jnp.float32)
        for li in range(N_LAYERS):
            kc, vc = caches[li]
            q, k, v = _qkv_proj(h, ln1_ref[li], wqkv_ref[li],
                                cq, sq, ck, sk, rot_q, rot_k)
            kc[pl.ds(p, 1), :] = k                                   # append to cache
            vc[pl.ds(p, 1), :] = v
            h = h + _attn_block(q, kc[...], vc[...], kmask, wo_ref[li])
            h = h + _mlp_block(h, ln2_ref[li], wgu_ref[li], wd_ref[li])
        tok_new = _greedy(jnp.dot(_rms(h, fnorm).astype(jnp.bfloat16), lmh,
                                  preferred_element_type=jnp.float32))
        out_acc = jnp.where(out_col == t, tok_new, out_acc)
        return tok_new, out_acc

    tok, out_acc = lax.fori_loop(1, MAX_NEW_TOKENS, decode_step, (tok, out_acc))
    tok_ref[0] = out_acc


def fused_decode(params, consts, x0, lengths):
    """x0: [B, S, H] f32 embedded prompts, lengths: [B] int32 -> tokens [B, 1, MAX_NEW]."""
    B = x0.shape[0]
    grid_spec = pltpu.PrefetchScalarGridSpec(
        num_scalar_prefetch=1,
        grid=(B,),
        in_specs=[
            pl.BlockSpec((1, MAX_SEQ, HIDDEN), lambda b, lens: (b, 0, 0)),       # x0
            pl.BlockSpec((VOCAB, HIDDEN), lambda b, lens: (0, 0)),               # embed
            pl.BlockSpec((MAX_SEQ, Q_SZ), lambda b, lens: (0, 0)),               # cos_q
            pl.BlockSpec((MAX_SEQ, Q_SZ), lambda b, lens: (0, 0)),               # sin_q
            pl.BlockSpec((MAX_SEQ, KV_SZ), lambda b, lens: (0, 0)),              # cos_k
            pl.BlockSpec((MAX_SEQ, KV_SZ), lambda b, lens: (0, 0)),              # sin_k
            pl.BlockSpec((Q_SZ, Q_SZ), lambda b, lens: (0, 0)),                  # rot_q
            pl.BlockSpec((KV_SZ, KV_SZ), lambda b, lens: (0, 0)),                # rot_k
            pl.BlockSpec((N_LAYERS, 1, HIDDEN), lambda b, lens: (0, 0, 0)),      # ln1
            pl.BlockSpec((N_LAYERS, HIDDEN, QKV_OUT), lambda b, lens: (0, 0, 0)),    # wqkv
            pl.BlockSpec((N_LAYERS, HIDDEN, HIDDEN), lambda b, lens: (0, 0, 0)),     # wo
            pl.BlockSpec((N_LAYERS, 1, HIDDEN), lambda b, lens: (0, 0, 0)),      # ln2
            pl.BlockSpec((N_LAYERS, HIDDEN, GU_OUT), lambda b, lens: (0, 0, 0)),     # wgu
            pl.BlockSpec((N_LAYERS, INTERMEDIATE, HIDDEN), lambda b, lens: (0, 0, 0)),  # wd
            pl.BlockSpec((1, HIDDEN), lambda b, lens: (0, 0)),                   # final norm
            pl.BlockSpec((HIDDEN, VOCAB), lambda b, lens: (0, 0)),               # lm_head
        ],
        out_specs=pl.BlockSpec((1, 1, MAX_NEW_TOKENS), lambda b, lens: (b, 0, 0)),
        scratch_shapes=[pltpu.VMEM((MAX_SEQ, KV_SZ), jnp.float32)
                        for _ in range(2 * N_LAYERS)],               # K/V cache per layer
    )
    return pl.pallas_call(
        _decode_kernel,
        out_shape=jax.ShapeDtypeStruct((B, 1, MAX_NEW_TOKENS), jnp.int32),
        grid_spec=grid_spec,
        compiler_params=pltpu.CompilerParams(dimension_semantics=("parallel",)),
    )(lengths, x0, params["embed"],
      consts["cos_q"], consts["sin_q"], consts["cos_k"], consts["sin_k"],
      consts["rot_q"], consts["rot_k"],
      params["ln1"], params["wqkv"], params["wo"],
      params["ln2"], params["wgu"], params["wd"],
      params["final_norm"], params["lm_head"])


# --------------------------------- host-side glue -------------------------------
def rope_tables(max_seq, dim, theta):
    inv_freq = 1.0 / (theta ** (jnp.arange(0, dim, 2, dtype=jnp.float32) / dim))
    pos = jnp.arange(max_seq, dtype=jnp.float32)
    freqs = jnp.outer(pos, inv_freq)                      # [S, D/2]
    emb = jnp.concatenate([freqs, freqs], axis=-1)        # [S, D]
    return jnp.cos(emb), jnp.sin(emb)


def rotate_half_matrix(dim):
    # M such that x @ M == concat([-x2, x1], -1) for x split into halves x1,x2.
    half = dim // 2
    m = jnp.zeros((dim, dim), jnp.float32)
    m = m.at[jnp.arange(half) + half, jnp.arange(half)].set(-1.0)
    m = m.at[jnp.arange(half), jnp.arange(half) + half].set(1.0)
    return m


def make_consts():
    cos, sin = rope_tables(MAX_SEQ, HEAD_DIM, ROPE_THETA)          # [S, D]
    r16 = rotate_half_matrix(HEAD_DIM)
    return {
        "cos_q": jnp.tile(cos, (1, N_HEADS)),
        "sin_q": jnp.tile(sin, (1, N_HEADS)),
        "cos_k": jnp.tile(cos, (1, N_KV_HEADS)),
        "sin_k": jnp.tile(sin, (1, N_KV_HEADS)),
        "rot_q": jnp.kron(jnp.eye(N_HEADS, dtype=jnp.float32), r16).astype(jnp.bfloat16),
        "rot_k": jnp.kron(jnp.eye(N_KV_HEADS, dtype=jnp.float32), r16).astype(jnp.bfloat16),
    }


def init_params(key):
    keys = jax.random.split(key, 2 + N_LAYERS)

    def dense(k, fan_in, fan_out):
        return jax.random.normal(k, (fan_in, fan_out), jnp.float32) / math.sqrt(fan_in)

    scale = 1.0 / math.sqrt(HEAD_DIM)
    wqkv, wo, wgu, wd = [], [], [], []
    for li in range(N_LAYERS):
        lk = jax.random.split(keys[2 + li], 4)
        w = dense(lk[0], HIDDEN, QKV_OUT)
        w = w.at[:, :Q_SZ].multiply(scale)                 # pre-fold 1/sqrt(d) into Q
        wqkv.append(w.astype(jnp.bfloat16))
        wo.append(dense(lk[1], HIDDEN, HIDDEN).astype(jnp.bfloat16))
        wgu.append(dense(lk[2], HIDDEN, GU_OUT).astype(jnp.bfloat16))
        wd.append(dense(lk[3], INTERMEDIATE, HIDDEN).astype(jnp.bfloat16))

    return {
        "embed": (jax.random.normal(keys[0], (VOCAB, HIDDEN), jnp.float32)
                  * 0.02).astype(jnp.bfloat16),
        "final_norm": jnp.ones((1, HIDDEN), jnp.float32),
        "lm_head": dense(keys[1], HIDDEN, VOCAB).astype(jnp.bfloat16),
        "ln1": jnp.ones((N_LAYERS, 1, HIDDEN), jnp.float32),
        "ln2": jnp.ones((N_LAYERS, 1, HIDDEN), jnp.float32),
        "wqkv": jnp.stack(wqkv),
        "wo": jnp.stack(wo),
        "wgu": jnp.stack(wgu),
        "wd": jnp.stack(wd),
    }


@jax.jit
def generate_batch(params, consts, tokens, lengths):
    """Greedy decode MAX_NEW_TOKENS tokens for all conversations in ONE kernel call."""
    x0 = jnp.take(params["embed"], tokens, axis=0).astype(jnp.float32)   # [B, S, H]
    toks = fused_decode(params, consts, x0, lengths)                      # [B, 1, T]
    return toks[:, 0, :]


# ------------------------- Mistral wrapper (forward loop) -----------------------
class MistralPallas:
    """Mirrors `Mistral.forward`'s multi-turn user/assistant loop on token ids.
    The per-turn batched generation mirrors `llm.generate(prompt_list, ...)`.
    """

    def __init__(self, model_id="mistralai/Mistral-7B-Instruct-v0.3",
                 max_tokens=MAX_NEW_TOKENS):
        self.model_id = model_id
        self.max_tokens = max_tokens
        self.params = init_params(jax.random.PRNGKey(0))
        self.consts = make_consts()

    def _generate(self, contexts):
        # contexts: List[List[int]] (one per conversation) -> List[List[int]]
        B = len(contexts)
        tokens = jnp.zeros((B, MAX_SEQ), jnp.int32)
        for b, ctx in enumerate(contexts):
            tokens = tokens.at[b, :len(ctx)].set(jnp.asarray(ctx, jnp.int32))
        lengths = jnp.asarray([len(c) for c in contexts], jnp.int32)
        out = jax.block_until_ready(
            generate_batch(self.params, self.consts, tokens, lengths))
        return [list(map(int, row)) for row in out.tolist()]

    def forward(self, prompts):
        # prompts: List[List[List[int]]] — batch of conversations, each a list of
        # per-turn token-id lists (analog of List[List[str]] in the torch module).
        results = [[] for _ in prompts]
        context = [[] for _ in prompts]
        n_turns = len(prompts[0])
        for i in range(n_turns):
            for b, instance in enumerate(prompts):
                results[b].append({"role": "user", "content": list(instance[i])})
                context[b] = context[b] + list(instance[i]) + [NEWLINE_TOKEN]
            for b in range(len(prompts)):
                assert len(context[b]) + self.max_tokens + 2 <= MAX_SEQ
            gens = self._generate(context)   # ONE fused kernel call per turn (batched)
            for b, gen in enumerate(gens):
                results[b].append({"role": "assistant", "content": gen})
                context[b] = context[b] + [ANSWER_TOKEN] + gen + [NEWLINE_TOKEN]
        return results

    def __str__(self):
        return self.model_id.split("/")[-1]


# ----------------------------------- main ---------------------------------------
if __name__ == "__main__":
    key = jax.random.PRNGKey(0)
    k1, k2 = jax.random.split(key)
    # batch=2 conversations, 2 turns each, small token-id prompts
    p1 = jax.random.randint(k1, (2, 3), 12, VOCAB)
    p2 = jax.random.randint(k2, (2, 4), 12, VOCAB)
    prompts = [
        [[int(t) for t in p1[turn]] for turn in range(2)],
        [[int(t) for t in p2[turn]] for turn in range(2)],
    ]

    model = MistralPallas()
    results = model.forward(prompts)

    # structural check: per conversation -> [user, assistant, user, assistant]
    assert len(results) == 2
    for conv in results:
        assert len(conv) == 4
        assert conv[0]["role"] == "user" and conv[1]["role"] == "assistant"
        assert conv[2]["role"] == "user" and conv[3]["role"] == "assistant"
        assert len(conv[1]["content"]) == MAX_NEW_TOKENS
        assert len(conv[3]["content"]) == MAX_NEW_TOKENS
        for tok in conv[1]["content"] + conv[3]["content"]:
            assert 0 <= tok < VOCAB

    jax.block_until_ready(model.params["embed"])
    print("KERNEL_OK")
</pallas_src>

<mosaic_0001>
module attributes {stable_mosaic.version = 11 : i64} {
  func.func @_decode_kernel(%arg0: i32, %arg1: memref<2xi32, #tpu.memory_space<smem>>, %arg2: memref<1x32x64xf32, #tpu.memory_space<vmem>>, %arg3: memref<256x64xbf16, #tpu.memory_space<vmem>>, %arg4: memref<32x64xf32, #tpu.memory_space<vmem>>, %arg5: memref<32x64xf32, #tpu.memory_space<vmem>>, %arg6: memref<32x32xf32, #tpu.memory_space<vmem>>, %arg7: memref<32x32xf32, #tpu.memory_space<vmem>>, %arg8: memref<64x64xbf16, #tpu.memory_space<vmem>>, %arg9: memref<32x32xbf16, #tpu.memory_space<vmem>>, %arg10: memref<2x1x64xf32, #tpu.memory_space<vmem>>, %arg11: memref<2x64x128xbf16, #tpu.memory_space<vmem>>, %arg12: memref<2x64x64xbf16, #tpu.memory_space<vmem>>, %arg13: memref<2x1x64xf32, #tpu.memory_space<vmem>>, %arg14: memref<2x64x256xbf16, #tpu.memory_space<vmem>>, %arg15: memref<2x128x64xbf16, #tpu.memory_space<vmem>>, %arg16: memref<1x64xf32, #tpu.memory_space<vmem>>, %arg17: memref<64x256xbf16, #tpu.memory_space<vmem>>, %arg18: memref<1x1x4xi32, #tpu.memory_space<vmem>>, %arg19: memref<32x32xf32, #tpu.memory_space<vmem>>, %arg20: memref<32x32xf32, #tpu.memory_space<vmem>>, %arg21: memref<32x32xf32, #tpu.memory_space<vmem>>, %arg22: memref<32x32xf32, #tpu.memory_space<vmem>>) attributes {dimension_semantics = [#tpu.dimension_semantics<parallel>], iteration_bounds = array<i64: 2>, scalar_prefetch = 1 : i64, scratch_operands = 4 : i64, tpu.core_type = #tpu.core_type<tc>, window_params = [{transform_indices = @transform_0, window_bounds = array<i64: 1, 32, 64>}, {pipeline_mode = #tpu.pipeline_mode<synchronous>, transform_indices = @transform_1, window_bounds = array<i64: 256, 64>}, {pipeline_mode = #tpu.pipeline_mode<synchronous>, transform_indices = @transform_2, window_bounds = array<i64: 32, 64>}, {pipeline_mode = #tpu.pipeline_mode<synchronous>, transform_indices = @transform_3, window_bounds = array<i64: 32, 64>}, {pipeline_mode = #tpu.pipeline_mode<synchronous>, transform_indices = @transform_4, window_bounds = array<i64: 32, 32>}, {pipeline_mode = #tpu.pipeline_mode<synchronous>, transform_indices = @transform_5, window_bounds = array<i64: 32, 32>}, {pipeline_mode = #tpu.pipeline_mode<synchronous>, transform_indices = @transform_6, window_bounds = array<i64: 64, 64>}, {pipeline_mode = #tpu.pipeline_mode<synchronous>, transform_indices = @transform_7, window_bounds = array<i64: 32, 32>}, {pipeline_mode = #tpu.pipeline_mode<synchronous>, transform_indices = @transform_8, window_bounds = array<i64: 2, 1, 64>}, {pipeline_mode = #tpu.pipeline_mode<synchronous>, transform_indices = @transform_9, window_bounds = array<i64: 2, 64, 128>}, {pipeline_mode = #tpu.pipeline_mode<synchronous>, transform_indices = @transform_10, window_bounds = array<i64: 2, 64, 64>}, {pipeline_mode = #tpu.pipeline_mode<synchronous>, transform_indices = @transform_11, window_bounds = array<i64: 2, 1, 64>}, {pipeline_mode = #tpu.pipeline_mode<synchronous>, transform_indices = @transform_12, window_bounds = array<i64: 2, 64, 256>}, {pipeline_mode = #tpu.pipeline_mode<synchronous>, transform_indices = @transform_13, window_bounds = array<i64: 2, 128, 64>}, {pipeline_mode = #tpu.pipeline_mode<synchronous>, transform_indices = @transform_14, window_bounds = array<i64: 1, 64>}, {pipeline_mode = #tpu.pipeline_mode<synchronous>, transform_indices = @transform_15, window_bounds = array<i64: 64, 256>}, {transform_indices = @transform_16, window_bounds = array<i64: 1, 1, 4>}]} {
    %0 = arith.index_cast %arg0 : i32 to index
    %1 = memref.load %arg1[%0] : memref<2xi32, #tpu.memory_space<smem>>
    %c0 = arith.constant 0 : index
    %c0_0 = arith.constant 0 : index
    %2 = vector.load %arg8[%c0, %c0_0] : memref<64x64xbf16, #tpu.memory_space<vmem>>, vector<64x64xbf16>
    %c0_1 = arith.constant 0 : index
    %c0_2 = arith.constant 0 : index
    %3 = vector.load %arg9[%c0_1, %c0_2] : memref<32x32xbf16, #tpu.memory_space<vmem>>, vector<32x32xbf16>
    %c0_3 = arith.constant 0 : index
    %c0_4 = arith.constant 0 : index
    %4 = vector.load %arg16[%c0_3, %c0_4] : memref<1x64xf32, #tpu.memory_space<vmem>>, vector<1x64xf32>
    %c0_5 = arith.constant 0 : index
    %c0_6 = arith.constant 0 : index
    %5 = vector.load %arg17[%c0_5, %c0_6] : memref<64x256xbf16, #tpu.memory_space<vmem>>, vector<64x256xbf16>
    %c0_7 = arith.constant 0 : index
    %c0_8 = arith.constant 0 : index
    %c0_9 = arith.constant 0 : index
    %6 = vector.load %arg2[%c0_7, %c0_8, %c0_9] : memref<1x32x64xf32, #tpu.memory_space<vmem>>, vector<1x32x64xf32>
    %7 = vector.shape_cast %6 : vector<1x32x64xf32> to vector<32x64xf32>
    %8 = tpu.iota {dimensions = array<i32: 0>} : vector<32x32xi32>
    %9 = tpu.iota {dimensions = array<i32: 1>} : vector<32x32xi32>
    %10 = arith.cmpi sle, %9, %8 : vector<32x32xi32>
    %11 = vector.broadcast %1 : i32 to vector<32x32xi32>
    %12 = arith.cmpi slt, %9, %11 : vector<32x32xi32>
    %13 = arith.andi %10, %12 : vector<32x32xi1>
    %cst = arith.constant 0.000000e+00 : f32
    %cst_10 = arith.constant -1.000000e+09 : f32
    %14 = vector.broadcast %cst : f32 to vector<32x32xf32>
    %15 = vector.broadcast %cst_10 : f32 to vector<32x32xf32>
    %16 = arith.select %13, %14, %15 : vector<32x32xi1>, vector<32x32xf32>
    %c0_11 = arith.constant 0 : index
    %c0_12 = arith.constant 0 : index
    %17 = vector.load %arg4[%c0_11, %c0_12] : memref<32x64xf32, #tpu.memory_space<vmem>>, vector<32x64xf32>
    %c0_13 = arith.constant 0 : index
    %c0_14 = arith.constant 0 : index
    %18 = vector.load %arg5[%c0_13, %c0_14] : memref<32x64xf32, #tpu.memory_space<vmem>>, vector<32x64xf32>
    %c0_15 = arith.constant 0 : index
    %c0_16 = arith.constant 0 : index
    %19 = vector.load %arg6[%c0_15, %c0_16] : memref<32x32xf32, #tpu.memory_space<vmem>>, vector<32x32xf32>
    %c0_17 = arith.constant 0 : index
    %c0_18 = arith.constant 0 : index
    %20 = vector.load %arg7[%c0_17, %c0_18] : memref<32x32xf32, #tpu.memory_space<vmem>>, vector<32x32xf32>
    %c0_19 = arith.constant 0 : index
    %c0_20 = arith.constant 0 : index
    %c0_21 = arith.constant 0 : index
    %21 = vector.load %arg12[%c0_19, %c0_20, %c0_21] : memref<2x64x64xbf16, #tpu.memory_space<vmem>>, vector<1x64x64xbf16>
    %22 = vector.shape_cast %21 : vector<1x64x64xbf16> to vector<64x64xbf16>
    %c0_22 = arith.constant 0 : index
    %c0_23 = arith.constant 0 : index
    %c0_24 = arith.constant 0 : index
    %23 = vector.load %arg10[%c0_22, %c0_23, %c0_24] : memref<2x1x64xf32, #tpu.memory_space<vmem>>, vector<1x1x64xf32>
    %24 = vector.shape_cast %23 : vector<1x1x64xf32> to vector<1x64xf32>
    %c0_25 = arith.constant 0 : index
    %c0_26 = arith.constant 0 : index
    %c0_27 = arith.constant 0 : index
    %25 = vector.load %arg11[%c0_25, %c0_26, %c0_27] : memref<2x64x128xbf16, #tpu.memory_space<vmem>>, vector<1x64x128xbf16>
    %26 = vector.shape_cast %25 : vector<1x64x128xbf16> to vector<64x128xbf16>
    %27 = arith.mulf %7, %7 : vector<32x64xf32>
    %cst_28 = arith.constant dense<0.000000e+00> : vector<32xf32>
    %28 = vector.multi_reduction <add>, %27, %cst_28 [1] : vector<32x64xf32> to vector<32xf32>
    %29 = vector.shape_cast %28 : vector<32xf32> to vector<32x1xf32>
    %cst_29 = arith.constant 6.400000e+01 : f32
    %30 = vector.broadcast %cst_29 : f32 to vector<32x1xf32>
    %31 = arith.divf %29, %30 : vector<32x1xf32>
    %cst_30 = arith.constant 9.99999974E-6 : f32
    %32 = vector.broadcast %cst_30 : f32 to vector<32x1xf32>
    %33 = arith.addf %31, %32 : vector<32x1xf32>
    %34 = math.rsqrt %33 : vector<32x1xf32>
    %35 = vector.broadcast %34 : vector<32x1xf32> to vector<32x64xf32>
    %36 = arith.mulf %7, %35 : vector<32x64xf32>
    %37 = vector.broadcast %24 : vector<1x64xf32> to vector<32x64xf32>
    %38 = arith.mulf %36, %37 : vector<32x64xf32>
    %39 = arith.truncf %38 : vector<32x64xf32> to vector<32x64xbf16>
    %cst_31 = arith.constant dense<0.000000e+00> : vector<32x128xf32>
    %40 = tpu.matmul %39, %26, %cst_31 {dimension_numbers = #tpu.dot_dimension_numbers<[1], [0], [0], [1], [0, 0, 1, 1], [], []>} : vector<32x64xbf16>, vector<64x128xbf16>, vector<32x128xf32> -> vector<32x128xf32>
    %41 = vector.extract_strided_slice %40 {offsets = [0, 0], sizes = [32, 64], strides = [1, 1]} : vector<32x128xf32> to vector<32x64xf32>
    %42 = arith.truncf %41 : vector<32x64xf32> to vector<32x64xbf16>
    %cst_32 = arith.constant dense<0.000000e+00> : vector<32x64xf32>
    %43 = tpu.matmul %42, %2, %cst_32 {dimension_numbers = #tpu.dot_dimension_numbers<[1], [0], [0], [1], [0, 0, 1, 1], [], []>} : vector<32x64xbf16>, vector<64x64xbf16>, vector<32x64xf32> -> vector<32x64xf32>
    %44 = arith.mulf %41, %17 : vector<32x64xf32>
    %45 = arith.mulf %43, %18 : vector<32x64xf32>
    %46 = arith.addf %44, %45 : vector<32x64xf32>
    %47 = vector.extract_strided_slice %40 {offsets = [0, 64], sizes = [32, 32], strides = [1, 1]} : vector<32x128xf32> to vector<32x32xf32>
    %48 = arith.truncf %47 : vector<32x32xf32> to vector<32x32xbf16>
    %cst_33 = arith.constant dense<0.000000e+00> : vector<32x32xf32>
    %49 = tpu.matmul %48, %3, %cst_33 {dimension_numbers = #tpu.dot_dimension_numbers<[1], [0], [0], [1], [0, 0, 1, 1], [], []>} : vector<32x32xbf16>, vector<32x32xbf16>, vector<32x32xf32> -> vector<32x32xf32>
    %50 = arith.mulf %47, %19 : vector<32x32xf32>
    %51 = arith.mulf %49, %20 : vector<32x32xf32>
    %52 = arith.addf %50, %51 : vector<32x32xf32>
    %53 = vector.extract_strided_slice %40 {offsets = [0, 96], sizes = [32, 32], strides = [1, 1]} : vector<32x128xf32> to vector<32x32xf32>
    %c0_34 = arith.constant 0 : index
    %c0_35 = arith.constant 0 : index
    %54 = vector.load %arg19[%c0_34, %c0_35] : memref<32x32xf32, #tpu.memory_space<vmem>>, vector<32x32xf32>
    tpu.vector_store %arg19[%c0_34, %c0_35], %52 {strides = array<i32>} : memref<32x32xf32, #tpu.memory_space<vmem>>, vector<32x32xf32>,
    %c0_36 = arith.constant 0 : index
    %c0_37 = arith.constant 0 : index
    %55 = vector.load %arg20[%c0_36, %c0_37] : memref<32x32xf32, #tpu.memory_space<vmem>>, vector<32x32xf32>
    tpu.vector_store %arg20[%c0_36, %c0_37], %53 {strides = array<i32>} : memref<32x32xf32, #tpu.memory_space<vmem>>, vector<32x32xf32>,
    %56 = arith.truncf %52 : vector<32x32xf32> to vector<32x32xbf16>
    %57 = arith.truncf %53 : vector<32x32xf32> to vector<32x32xbf16>
    %cst_38 = arith.constant 0.000000e+00 : f32
    %58 = vector.broadcast %cst_38 : f32 to vector<32x64xf32>
    %59 = vector.extract_strided_slice %46 {offsets = [0, 0], sizes = [32, 16], strides = [1, 1]} : vector<32x64xf32> to vector<32x16xf32>
    %60 = arith.truncf %59 : vector<32x16xf32> to vector<32x16xbf16>
    %61 = vector.extract_strided_slice %56 {offsets = [0, 0], sizes = [32, 16], strides = [1, 1]} : vector<32x32xbf16> to vector<32x16xbf16>
    %62 = vector.extract_strided_slice %57 {offsets = [0, 0], sizes = [32, 16], strides = [1, 1]} : vector<32x32xbf16> to vector<32x16xbf16>
    %cst_39 = arith.constant dense<0.000000e+00> : vector<32x32xf32>
    %63 = tpu.matmul %60, %61, %cst_39 {dimension_numbers = #tpu.dot_dimension_numbers<[1], [1], [0], [0], [0, 0, 1, 0], [], []>} : vector<32x16xbf16>, vector<32x16xbf16>, vector<32x32xf32> -> vector<32x32xf32>
    %64 = arith.addf %63, %16 : vector<32x32xf32>
    %cst_40 = arith.constant dense<0xFF800000> : vector<32xf32>
    %65 = vector.multi_reduction <maximumf>, %64, %cst_40 [1] : vector<32x32xf32> to vector<32xf32>
    %66 = vector.shape_cast %65 : vector<32xf32> to vector<32x1xf32>
    %67 = vector.broadcast %66 : vector<32x1xf32> to vector<32x32xf32>
    %68 = arith.subf %64, %67 : vector<32x32xf32>
    %69 = math.exp %68 : vector<32x32xf32>
    %cst_41 = arith.constant dense<0.000000e+00> : vector<32xf32>
    %70 = vector.multi_reduction <add>, %69, %cst_41 [1] : vector<32x32xf32> to vector<32xf32>
    %71 = vector.shape_cast %70 : vector<32xf32> to vector<32x1xf32>
    %72 = arith.truncf %69 : vector<32x32xf32> to vector<32x32xbf16>
    %cst_42 = arith.constant dense<0.000000e+00> : vector<32x16xf32>
    %73 = tpu.matmul %72, %62, %cst_42 {dimension_numbers = #tpu.dot_dimension_numbers<[1], [0], [0], [1], [0, 0, 1, 1], [], []>} : vector<32x32xbf16>, vector<32x16xbf16>, vector<32x16xf32> -> vector<32x16xf32>
    %74 = tpu.reciprocal %71 {approx = true} : vector<32x1xf32> -> vector<32x1xf32>
    %75 = vector.broadcast %74 : vector<32x1xf32> to vector<32x16xf32>
    %76 = arith.mulf %73, %75 : vector<32x16xf32>
    %77 = arith.truncf %76 : vector<32x16xf32> to vector<32x16xbf16>
    %78 = vector.extract_strided_slice %22 {offsets = [0, 0], sizes = [16, 64], strides = [1, 1]} : vector<64x64xbf16> to vector<16x64xbf16>
    %cst_43 = arith.constant dense<0.000000e+00> : vector<32x64xf32>
    %79 = tpu.matmul %77, %78, %cst_43 {dimension_numbers = #tpu.dot_dimension_numbers<[1], [0], [0], [1], [0, 0, 1, 1], [], []>} : vector<32x16xbf16>, vector<16x64xbf16>, vector<32x64xf32> -> vector<32x64xf32>
    %80 = arith.addf %58, %79 : vector<32x64xf32>
    %81 = vector.extract_strided_slice %46 {offsets = [0, 16], sizes = [32, 16], strides = [1, 1]} : vector<32x64xf32> to vector<32x16xf32>
    %82 = arith.truncf %81 : vector<32x16xf32> to vector<32x16xbf16>
    %83 = vector.extract_strided_slice %56 {offsets = [0, 0], sizes = [32, 16], strides = [1, 1]} : vector<32x32xbf16> to vector<32x16xbf16>
    %84 = vector.extract_strided_slice %57 {offsets = [0, 0], sizes = [32, 16], strides = [1, 1]} : vector<32x32xbf16> to vector<32x16xbf16>
    %cst_44 = arith.constant dense<0.000000e+00> : vector<32x32xf32>
    %85 = tpu.matmul %82, %83, %cst_44 {dimension_numbers = #tpu.dot_dimension_numbers<[1], [1], [0], [0], [0, 0, 1, 0], [], []>} : vector<32x16xbf16>, vector<32x16xbf16>, vector<32x32xf32> -> vector<32x32xf32>
    %86 = arith.addf %85, %16 : vector<32x32xf32>
    %cst_45 = arith.constant dense<0xFF800000> : vector<32xf32>
    %87 = vector.multi_reduction <maximumf>, %86, %cst_45 [1] : vector<32x32xf32> to vector<32xf32>
    %88 = vector.shape_cast %87 : vector<32xf32> to vector<32x1xf32>
    %89 = vector.broadcast %88 : vector<32x1xf32> to vector<32x32xf32>
    %90 = arith.subf %86, %89 : vector<32x32xf32>
    %91 = math.exp %90 : vector<32x32xf32>
    %cst_46 = arith.constant dense<0.000000e+00> : vector<32xf32>
    %92 = vector.multi_reduction <add>, %91, %cst_46 [1] : vector<32x32xf32> to vector<32xf32>
    %93 = vector.shape_cast %92 : vector<32xf32> to vector<32x1xf32>
    %94 = arith.truncf %91 : vector<32x32xf32> to vector<32x32xbf16>
    %cst_47 = arith.constant dense<0.000000e+00> : vector<32x16xf32>
    %95 = tpu.matmul %94, %84, %cst_47 {dimension_numbers = #tpu.dot_dimension_numbers<[1], [0], [0], [1], [0, 0, 1, 1], [], []>} : vector<32x32xbf16>, vector<32x16xbf16>, vector<32x16xf32> -> vector<32x16xf32>
    %96 = tpu.reciprocal %93 {approx = true} : vector<32x1xf32> -> vector<32x1xf32>
    %97 = vector.broadcast %96 : vector<32x1xf32> to vector<32x16xf32>
    %98 = arith.mulf %95, %97 : vector<32x16xf32>
    %99 = arith.truncf %98 : vector<32x16xf32> to vector<32x16xbf16>
    %100 = vector.extract_strided_slice %22 {offsets = [16, 0], sizes = [16, 64], strides = [1, 1]} : vector<64x64xbf16> to vector<16x64xbf16>
    %cst_48 = arith.constant dense<0.000000e+00> : vector<32x64xf32>
    %101 = tpu.matmul %99, %100, %cst_48 {dimension_numbers = #tpu.dot_dimension_numbers<[1], [0], [0], [1], [0, 0, 1, 1], [], []>} : vector<32x16xbf16>, vector<16x64xbf16>, vector<32x64xf32> -> vector<32x64xf32>
    %102 = arith.addf %80, %101 : vector<32x64xf32>
    %103 = vector.extract_strided_slice %46 {offsets = [0, 32], sizes = [32, 16], strides = [1, 1]} : vector<32x64xf32> to vector<32x16xf32>
    %104 = arith.truncf %103 : vector<32x16xf32> to vector<32x16xbf16>
    %105 = vector.extract_strided_slice %56 {offsets = [0, 16], sizes = [32, 16], strides = [1, 1]} : vector<32x32xbf16> to vector<32x16xbf16>
    %106 = vector.extract_strided_slice %57 {offsets = [0, 16], sizes = [32, 16], strides = [1, 1]} : vector<32x32xbf16> to vector<32x16xbf16>
    %cst_49 = arith.constant dense<0.000000e+00> : vector<32x32xf32>
    %107 = tpu.matmul %104, %105, %cst_49 {dimension_numbers = #tpu.dot_dimension_numbers<[1], [1], [0], [0], [0, 0, 1, 0], [], []>} : vector<32x16xbf16>, vector<32x16xbf16>, vector<32x32xf32> -> vector<32x32xf32>
    %108 = arith.addf %107, %16 : vector<32x32xf32>
    %cst_50 = arith.constant dense<0xFF800000> : vector<32xf32>
    %109 = vector.multi_reduction <maximumf>, %108, %cst_50 [1] : vector<32x32xf32> to vector<32xf32>
    %110 = vector.shape_cast %109 : vector<32xf32> to vector<32x1xf32>
    %111 = vector.broadcast %110 : vector<32x1xf32> to vector<32x32xf32>
    %112 = arith.subf %108, %111 : vector<32x32xf32>
    %113 = math.exp %112 : vector<32x32xf32>
    %cst_51 = arith.constant dense<0.000000e+00> : vector<32xf32>
    %114 = vector.multi_reduction <add>, %113, %cst_51 [1] : vector<32x32xf32> to vector<32xf32>
    %115 = vector.shape_cast %114 : vector<32xf32> to vector<32x1xf32>
    %116 = arith.truncf %113 : vector<32x32xf32> to vector<32x32xbf16>
    %cst_52 = arith.constant dense<0.000000e+00> : vector<32x16xf32>
    %117 = tpu.matmul %116, %106, %cst_52 {dimension_numbers = #tpu.dot_dimension_numbers<[1], [0], [0], [1], [0, 0, 1, 1], [], []>} : vector<32x32xbf16>, vector<32x16xbf16>, vector<32x16xf32> -> vector<32x16xf32>
    %118 = tpu.reciprocal %115 {approx = true} : vector<32x1xf32> -> vector<32x1xf32>
    %119 = vector.broadcast %118 : vector<32x1xf32> to vector<32x16xf32>
    %120 = arith.mulf %117, %119 : vector<32x16xf32>
    %121 = arith.truncf %120 : vector<32x16xf32> to vector<32x16xbf16>
    %122 = vector.extract_strided_slice %22 {offsets = [32, 0], sizes = [16, 64], strides = [1, 1]} : vector<64x64xbf16> to vector<16x64xbf16>
    %cst_53 = arith.constant dense<0.000000e+00> : vector<32x64xf32>
    %123 = tpu.matmul %121, %122, %cst_53 {dimension_numbers = #tpu.dot_dimension_numbers<[1], [0], [0], [1], [0, 0, 1, 1], [], []>} : vector<32x16xbf16>, vector<16x64xbf16>, vector<32x64xf32> -> vector<32x64xf32>
    %124 = arith.addf %102, %123 : vector<32x64xf32>
    %125 = vector.extract_strided_slice %46 {offsets = [0, 48], sizes = [32, 16], strides = [1, 1]} : vector<32x64xf32> to vector<32x16xf32>
    %126 = arith.truncf %125 : vector<32x16xf32> to vector<32x16xbf16>
    %127 = vector.extract_strided_slice %56 {offsets = [0, 16], sizes = [32, 16], strides = [1, 1]} : vector<32x32xbf16> to vector<32x16xbf16>
    %128 = vector.extract_strided_slice %57 {offsets = [0, 16], sizes = [32, 16], strides = [1, 1]} : vector<32x32xbf16> to vector<32x16xbf16>
    %cst_54 = arith.constant dense<0.000000e+00> : vector<32x32xf32>
    %129 = tpu.matmul %126, %127, %cst_54 {dimension_numbers = #tpu.dot_dimension_numbers<[1], [1], [0], [0], [0, 0, 1, 0], [], []>} : vector<32x16xbf16>, vector<32x16xbf16>, vector<32x32xf32> -> vector<32x32xf32>
    %130 = arith.addf %129, %16 : vector<32x32xf32>
    %cst_55 = arith.constant dense<0xFF800000> : vector<32xf32>
    %131 = vector.multi_reduction <maximumf>, %130, %cst_55 [1] : vector<32x32xf32> to vector<32xf32>
    %132 = vector.shape_cast %131 : vector<32xf32> to vector<32x1xf32>
    %133 = vector.broadcast %132 : vector<32x1xf32> to vector<32x32xf32>
    %134 = arith.subf %130, %133 : vector<32x32xf32>
    %135 = math.exp %134 : vector<32x32xf32>
    %cst_56 = arith.constant dense<0.000000e+00> : vector<32xf32>
    %136 = vector.multi_reduction <add>, %135, %cst_56 [1] : vector<32x32xf32> to vector<32xf32>
    %137 = vector.shape_cast %136 : vector<32xf32> to vector<32x1xf32>
    %138 = arith.truncf %135 : vector<32x32xf32> to vector<32x32xbf16>
    %cst_57 = arith.constant dense<0.000000e+00> : vector<32x16xf32>
    %139 = tpu.matmul %138, %128, %cst_57 {dimension_numbers = #tpu.dot_dimension_numbers<[1], [0], [0], [1], [0, 0, 1, 1], [], []>} : vector<32x32xbf16>, vector<32x16xbf16>, vector<32x16xf32> -> vector<32x16xf32>
    %140 = tpu.reciprocal %137 {approx = true} : vector<32x1xf32> -> vector<32x1xf32>
    %141 = vector.broadcast %140 : vector<32x1xf32> to vector<32x16xf32>
    %142 = arith.mulf %139, %141 : vector<32x16xf32>
    %143 = arith.truncf %142 : vector<32x16xf32> to vector<32x16xbf16>
    %144 = vector.extract_strided_slice %22 {offsets = [48, 0], sizes = [16, 64], strides = [1, 1]} : vector<64x64xbf16> to vector<16x64xbf16>
    %cst_58 = arith.constant dense<0.000000e+00> : vector<32x64xf32>
    %145 = tpu.matmul %143, %144, %cst_58 {dimension_numbers = #tpu.dot_dimension_numbers<[1], [0], [0], [1], [0, 0, 1, 1], [], []>} : vector<32x16xbf16>, vector<16x64xbf16>, vector<32x64xf32> -> vector<32x64xf32>
    %146 = arith.addf %124, %145 : vector<32x64xf32>
    %147 = arith.addf %7, %146 : vector<32x64xf32>
    %c0_59 = arith.constant 0 : index
    %c0_60 = arith.constant 0 : index
    %c0_61 = arith.constant 0 : index
    %148 = vector.load %arg13[%c0_59, %c0_60, %c0_61] : memref<2x1x64xf32, #tpu.memory_space<vmem>>, vector<1x1x64xf32>
    %149 = vector.shape_cast %148 : vector<1x1x64xf32> to vector<1x64xf32>
    %c0_62 = arith.constant 0 : index
    %c0_63 = arith.constant 0 : index
    %c0_64 = arith.constant 0 : index
    %150 = vector.load %arg14[%c0_62, %c0_63, %c0_64] : memref<2x64x256xbf16, #tpu.memory_space<vmem>>, vector<1x64x256xbf16>
    %151 = vector.shape_cast %150 : vector<1x64x256xbf16> to vector<64x256xbf16>
    %c0_65 = arith.constant 0 : index
    %c0_66 = arith.constant 0 : index
    %c0_67 = arith.constant 0 : index
    %152 = vector.load %arg15[%c0_65, %c0_66, %c0_67] : memref<2x128x64xbf16, #tpu.memory_space<vmem>>, vector<1x128x64xbf16>
    %153 = vector.shape_cast %152 : vector<1x128x64xbf16> to vector<128x64xbf16>
    %154 = arith.mulf %147, %147 : vector<32x64xf32>
    %cst_68 = arith.constant dense<0.000000e+00> : vector<32xf32>
    %155 = vector.multi_reduction <add>, %154, %cst_68 [1] : vector<32x64xf32> to vector<32xf32>
    %156 = vector.shape_cast %155 : vector<32xf32> to vector<32x1xf32>
    %cst_69 = arith.constant 6.400000e+01 : f32
    %157 = vector.broadcast %cst_69 : f32 to vector<32x1xf32>
    %158 = arith.divf %156, %157 : vector<32x1xf32>
    %cst_70 = arith.constant 9.99999974E-6 : f32
    %159 = vector.broadcast %cst_70 : f32 to vector<32x1xf32>
    %160 = arith.addf %158, %159 : vector<32x1xf32>
    %161 = math.rsqrt %160 : vector<32x1xf32>
    %162 = vector.broadcast %161 : vector<32x1xf32> to vector<32x64xf32>
    %163 = arith.mulf %147, %162 : vector<32x64xf32>
    %164 = vector.broadcast %149 : vector<1x64xf32> to vector<32x64xf32>
    %165 = arith.mulf %163, %164 : vector<32x64xf32>
    %166 = arith.truncf %165 : vector<32x64xf32> to vector<32x64xbf16>
    %cst_71 = arith.constant dense<0.000000e+00> : vector<32x256xf32>
    %167 = tpu.matmul %166, %151, %cst_71 {dimension_numbers = #tpu.dot_dimension_numbers<[1], [0], [0], [1], [0, 0, 1, 1], [], []>} : vector<32x64xbf16>, vector<64x256xbf16>, vector<32x256xf32> -> vector<32x256xf32>
    %168 = vector.extract_strided_slice %167 {offsets = [0, 0], sizes = [32, 128], strides = [1, 1]} : vector<32x256xf32> to vector<32x128xf32>
    %169 = vector.extract_strided_slice %167 {offsets = [0, 128], sizes = [32, 128], strides = [1, 1]} : vector<32x256xf32> to vector<32x128xf32>
    %cst_72 = arith.constant 0.000000e+00 : f32
    %170 = vector.broadcast %cst_72 : f32 to vector<32x128xf32>
    %171 = arith.subf %170, %168 : vector<32x128xf32>
    %172 = math.exp %171 : vector<32x128xf32>
    %cst_73 = arith.constant 1.000000e+00 : f32
    %173 = vector.broadcast %cst_73 : f32 to vector<32x128xf32>
    %174 = arith.addf %173, %172 : vector<32x128xf32>
    %175 = tpu.reciprocal %174 {approx = true} : vector<32x128xf32> -> vector<32x128xf32>
    %176 = arith.mulf %168, %175 : vector<32x128xf32>
    %177 = arith.mulf %176, %169 : vector<32x128xf32>
    %178 = arith.truncf %177 : vector<32x128xf32> to vector<32x128xbf16>
    %cst_74 = arith.constant dense<0.000000e+00> : vector<32x64xf32>
    %179 = tpu.matmul %178, %153, %cst_74 {dimension_numbers = #tpu.dot_dimension_numbers<[1], [0], [0], [1], [0, 0, 1, 1], [], []>} : vector<32x128xbf16>, vector<128x64xbf16>, vector<32x64xf32> -> vector<32x64xf32>
    %180 = arith.addf %147, %179 : vector<32x64xf32>
    %c1 = arith.constant 1 : index
    %c0_75 = arith.constant 0 : index
    %c0_76 = arith.constant 0 : index
    %181 = vector.load %arg12[%c1, %c0_75, %c0_76] : memref<2x64x64xbf16, #tpu.memory_space<vmem>>, vector<1x64x64xbf16>
    %182 = vector.shape_cast %181 : vector<1x64x64xbf16> to vector<64x64xbf16>
    %c1_77 = arith.constant 1 : index
    %c0_78 = arith.constant 0 : index
    %c0_79 = arith.constant 0 : index
    %183 = vector.load %arg10[%c1_77, %c0_78, %c0_79] : memref<2x1x64xf32, #tpu.memory_space<vmem>>, vector<1x1x64xf32>
    %184 = vector.shape_cast %183 : vector<1x1x64xf32> to vector<1x64xf32>
    %c1_80 = arith.constant 1 : index
    %c0_81 = arith.constant 0 : index
    %c0_82 = arith.constant 0 : index
    %185 = vector.load %arg11[%c1_80, %c0_81, %c0_82] : memref<2x64x128xbf16, #tpu.memory_space<vmem>>, vector<1x64x128xbf16>
    %186 = vector.shape_cast %185 : vector<1x64x128xbf16> to vector<64x128xbf16>
    %187 = arith.mulf %180, %180 : vector<32x64xf32>
    %cst_83 = arith.constant dense<0.000000e+00> : vector<32xf32>
    %188 = vector.multi_reduction <add>, %187, %cst_83 [1] : vector<32x64xf32> to vector<32xf32>
    %189 = vector.shape_cast %188 : vector<32xf32> to vector<32x1xf32>
    %cst_84 = arith.constant 6.400000e+01 : f32
    %190 = vector.broadcast %cst_84 : f32 to vector<32x1xf32>
    %191 = arith.divf %189, %190 : vector<32x1xf32>
    %cst_85 = arith.constant 9.99999974E-6 : f32
    %192 = vector.broadcast %cst_85 : f32 to vector<32x1xf32>
    %193 = arith.addf %191, %192 : vector<32x1xf32>
    %194 = math.rsqrt %193 : vector<32x1xf32>
    %195 = vector.broadcast %194 : vector<32x1xf32> to vector<32x64xf32>
    %196 = arith.mulf %180, %195 : vector<32x64xf32>
    %197 = vector.broadcast %184 : vector<1x64xf32> to vector<32x64xf32>
    %198 = arith.mulf %196, %197 : vector<32x64xf32>
    %199 = arith.truncf %198 : vector<32x64xf32> to vector<32x64xbf16>
    %cst_86 = arith.constant dense<0.000000e+00> : vector<32x128xf32>
    %200 = tpu.matmul %199, %186, %cst_86 {dimension_numbers = #tpu.dot_dimension_numbers<[1], [0], [0], [1], [0, 0, 1, 1], [], []>} : vector<32x64xbf16>, vector<64x128xbf16>, vector<32x128xf32> -> vector<32x128xf32>
    %201 = vector.extract_strided_slice %200 {offsets = [0, 0], sizes = [32, 64], strides = [1, 1]} : vector<32x128xf32> to vector<32x64xf32>
    %202 = arith.truncf %201 : vector<32x64xf32> to vector<32x64xbf16>
    %cst_87 = arith.constant dense<0.000000e+00> : vector<32x64xf32>
    %203 = tpu.matmul %202, %2, %cst_87 {dimension_numbers = #tpu.dot_dimension_numbers<[1], [0], [0], [1], [0, 0, 1, 1], [], []>} : vector<32x64xbf16>, vector<64x64xbf16>, vector<32x64xf32> -> vector<32x64xf32>
    %204 = arith.mulf %201, %17 : vector<32x64xf32>
    %205 = arith.mulf %203, %18 : vector<32x64xf32>
    %206 = arith.addf %204, %205 : vector<32x64xf32>
    %207 = vector.extract_strided_slice %200 {offsets = [0, 64], sizes = [32, 32], strides = [1, 1]} : vector<32x128xf32> to vector<32x32xf32>
    %208 = arith.truncf %207 : vector<32x32xf32> to vector<32x32xbf16>
    %cst_88 = arith.constant dense<0.000000e+00> : vector<32x32xf32>
    %209 = tpu.matmul %208, %3, %cst_88 {dimension_numbers = #tpu.dot_dimension_numbers<[1], [0], [0], [1], [0, 0, 1, 1], [], []>} : vector<32x32xbf16>, vector<32x32xbf16>, vector<32x32xf32> -> vector<32x32xf32>
    %210 = arith.mulf %207, %19 : vector<32x32xf32>
    %211 = arith.mulf %209, %20 : vector<32x32xf32>
    %212 = arith.addf %210, %211 : vector<32x32xf32>
    %213 = vector.extract_strided_slice %200 {offsets = [0, 96], sizes = [32, 32], strides = [1, 1]} : vector<32x128xf32> to vector<32x32xf32>
    %c0_89 = arith.constant 0 : index
    %c0_90 = arith.constant 0 : index
    %214 = vector.load %arg21[%c0_89, %c0_90] : memref<32x32xf32, #tpu.memory_space<vmem>>, vector<32x32xf32>
    tpu.vector_store %arg21[%c0_89, %c0_90], %212 {strides = array<i32>} : memref<32x32xf32, #tpu.memory_space<vmem>>, vector<32x32xf32>,
    %c0_91 = arith.constant 0 : index
    %c0_92 = arith.constant 0 : index
    %215 = vector.load %arg22[%c0_91, %c0_92] : memref<32x32xf32, #tpu.memory_space<vmem>>, vector<32x32xf32>
    tpu.vector_store %arg22[%c0_91, %c0_92], %213 {strides = array<i32>} : memref<32x32xf32, #tpu.memory_space<vmem>>, vector<32x32xf32>,
    %216 = arith.truncf %212 : vector<32x32xf32> to vector<32x32xbf16>
    %217 = arith.truncf %213 : vector<32x32xf32> to vector<32x32xbf16>
    %cst_93 = arith.constant 0.000000e+00 : f32
    %218 = vector.broadcast %cst_93 : f32 to vector<32x64xf32>
    %219 = vector.extract_strided_slice %206 {offsets = [0, 0], sizes = [32, 16], strides = [1, 1]} : vector<32x64xf32> to vector<32x16xf32>
    %220 = arith.truncf %219 : vector<32x16xf32> to vector<32x16xbf16>
    %221 = vector.extract_strided_slice %216 {offsets = [0, 0], sizes = [32, 16], strides = [1, 1]} : vector<32x32xbf16> to vector<32x16xbf16>
    %222 = vector.extract_strided_slice %217 {offsets = [0, 0], sizes = [32, 16], strides = [1, 1]} : vector<32x32xbf16> to vector<32x16xbf16>
    %cst_94 = arith.constant dense<0.000000e+00> : vector<32x32xf32>
    %223 = tpu.matmul %220, %221, %cst_94 {dimension_numbers = #tpu.dot_dimension_numbers<[1], [1], [0], [0], [0, 0, 1, 0], [], []>} : vector<32x16xbf16>, vector<32x16xbf16>, vector<32x32xf32> -> vector<32x32xf32>
    %224 = arith.addf %223, %16 : vector<32x32xf32>
    %cst_95 = arith.constant dense<0xFF800000> : vector<32xf32>
    %225 = vector.multi_reduction <maximumf>, %224, %cst_95 [1] : vector<32x32xf32> to vector<32xf32>
    %226 = vector.shape_cast %225 : vector<32xf32> to vector<32x1xf32>
    %227 = vector.broadcast %226 : vector<32x1xf32> to vector<32x32xf32>
    %228 = arith.subf %224, %227 : vector<32x32xf32>
    %229 = math.exp %228 : vector<32x32xf32>
    %cst_96 = arith.constant dense<0.000000e+00> : vector<32xf32>
    %230 = vector.multi_reduction <add>, %229, %cst_96 [1] : vector<32x32xf32> to vector<32xf32>
    %231 = vector.shape_cast %230 : vector<32xf32> to vector<32x1xf32>
    %232 = arith.truncf %229 : vector<32x32xf32> to vector<32x32xbf16>
    %cst_97 = arith.constant dense<0.000000e+00> : vector<32x16xf32>
    %233 = tpu.matmul %232, %222, %cst_97 {dimension_numbers = #tpu.dot_dimension_numbers<[1], [0], [0], [1], [0, 0, 1, 1], [], []>} : vector<32x32xbf16>, vector<32x16xbf16>, vector<32x16xf32> -> vector<32x16xf32>
    %234 = tpu.reciprocal %231 {approx = true} : vector<32x1xf32> -> vector<32x1xf32>
    %235 = vector.broadcast %234 : vector<32x1xf32> to vector<32x16xf32>
    %236 = arith.mulf %233, %235 : vector<32x16xf32>
    %237 = arith.truncf %236 : vector<32x16xf32> to vector<32x16xbf16>
    %238 = vector.extract_strided_slice %182 {offsets = [0, 0], sizes = [16, 64], strides = [1, 1]} : vector<64x64xbf16> to vector<16x64xbf16>
    %cst_98 = arith.constant dense<0.000000e+00> : vector<32x64xf32>
    %239 = tpu.matmul %237, %238, %cst_98 {dimension_numbers = #tpu.dot_dimension_numbers<[1], [0], [0], [1], [0, 0, 1, 1], [], []>} : vector<32x16xbf16>, vector<16x64xbf16>, vector<32x64xf32> -> vector<32x64xf32>
    %240 = arith.addf %218, %239 : vector<32x64xf32>
    %241 = vector.extract_strided_slice %206 {offsets = [0, 16], sizes = [32, 16], strides = [1, 1]} : vector<32x64xf32> to vector<32x16xf32>
    %242 = arith.truncf %241 : vector<32x16xf32> to vector<32x16xbf16>
    %243 = vector.extract_strided_slice %216 {offsets = [0, 0], sizes = [32, 16], strides = [1, 1]} : vector<32x32xbf16> to vector<32x16xbf16>
    %244 = vector.extract_strided_slice %217 {offsets = [0, 0], sizes = [32, 16], strides = [1, 1]} : vector<32x32xbf16> to vector<32x16xbf16>
    %cst_99 = arith.constant dense<0.000000e+00> : vector<32x32xf32>
    %245 = tpu.matmul %242, %243, %cst_99 {dimension_numbers = #tpu.dot_dimension_numbers<[1], [1], [0], [0], [0, 0, 1, 0], [], []>} : vector<32x16xbf16>, vector<32x16xbf16>, vector<32x32xf32> -> vector<32x32xf32>
    %246 = arith.addf %245, %16 : vector<32x32xf32>
    %cst_100 = arith.constant dense<0xFF800000> : vector<32xf32>
    %247 = vector.multi_reduction <maximumf>, %246, %cst_100 [1] : vector<32x32xf32> to vector<32xf32>
    %248 = vector.shape_cast %247 : vector<32xf32> to vector<32x1xf32>
    %249 = vector.broadcast %248 : vector<32x1xf32> to vector<32x32xf32>
    %250 = arith.subf %246, %249 : vector<32x32xf32>
    %251 = math.exp %250 : vector<32x32xf32>
    %cst_101 = arith.constant dense<0.000000e+00> : vector<32xf32>
    %252 = vector.multi_reduction <add>, %251, %cst_101 [1] : vector<32x32xf32> to vector<32xf32>
    %253 = vector.shape_cast %252 : vector<32xf32> to vector<32x1xf32>
    %254 = arith.truncf %251 : vector<32x32xf32> to vector<32x32xbf16>
    %cst_102 = arith.constant dense<0.000000e+00> : vector<32x16xf32>
    %255 = tpu.matmul %254, %244, %cst_102 {dimension_numbers = #tpu.dot_dimension_numbers<[1], [0], [0], [1], [0, 0, 1, 1], [], []>} : vector<32x32xbf16>, vector<32x16xbf16>, vector<32x16xf32> -> vector<32x16xf32>
    %256 = tpu.reciprocal %253 {approx = true} : vector<32x1xf32> -> vector<32x1xf32>
    %257 = vector.broadcast %256 : vector<32x1xf32> to vector<32x16xf32>
    %258 = arith.mulf %255, %257 : vector<32x16xf32>
    %259 = arith.truncf %258 : vector<32x16xf32> to vector<32x16xbf16>
    %260 = vector.extract_strided_slice %182 {offsets = [16, 0], sizes = [16, 64], strides = [1, 1]} : vector<64x64xbf16> to vector<16x64xbf16>
    %cst_103 = arith.constant dense<0.000000e+00> : vector<32x64xf32>
    %261 = tpu.matmul %259, %260, %cst_103 {dimension_numbers = #tpu.dot_dimension_numbers<[1], [0], [0], [1], [0, 0, 1, 1], [], []>} : vector<32x16xbf16>, vector<16x64xbf16>, vector<32x64xf32> -> vector<32x64xf32>
    %262 = arith.addf %240, %261 : vector<32x64xf32>
    %263 = vector.extract_strided_slice %206 {offsets = [0, 32], sizes = [32, 16], strides = [1, 1]} : vector<32x64xf32> to vector<32x16xf32>
    %264 = arith.truncf %263 : vector<32x16xf32> to vector<32x16xbf16>
    %265 = vector.extract_strided_slice %216 {offsets = [0, 16], sizes = [32, 16], strides = [1, 1]} : vector<32x32xbf16> to vector<32x16xbf16>
    %266 = vector.extract_strided_slice %217 {offsets = [0, 16], sizes = [32, 16], strides = [1, 1]} : vector<32x32xbf16> to vector<32x16xbf16>
    %cst_104 = arith.constant dense<0.000000e+00> : vector<32x32xf32>
    %267 = tpu.matmul %264, %265, %cst_104 {dimension_numbers = #tpu.dot_dimension_numbers<[1], [1], [0], [0], [0, 0, 1, 0], [], []>} : vector<32x16xbf16>, vector<32x16xbf16>, vector<32x32xf32> -> vector<32x32xf32>
    %268 = arith.addf %267, %16 : vector<32x32xf32>
    %cst_105 = arith.constant dense<0xFF800000> : vector<32xf32>
    %269 = vector.multi_reduction <maximumf>, %268, %cst_105 [1] : vector<32x32xf32> to vector<32xf32>
    %270 = vector.shape_cast %269 : vector<32xf32> to vector<32x1xf32>
    %271 = vector.broadcast %270 : vector<32x1xf32> to vector<32x32xf32>
    %272 = arith.subf %268, %271 : vector<32x32xf32>
    %273 = math.exp %272 : vector<32x32xf32>
    %cst_106 = arith.constant dense<0.000000e+00> : vector<32xf32>
    %274 = vector.multi_reduction <add>, %273, %cst_106 [1] : vector<32x32xf32> to vector<32xf32>
    %275 = vector.shape_cast %274 : vector<32xf32> to vector<32x1xf32>
    %276 = arith.truncf %273 : vector<32x32xf32> to vector<32x32xbf16>
    %cst_107 = arith.constant dense<0.000000e+00> : vector<32x16xf32>
    %277 = tpu.matmul %276, %266, %cst_107 {dimension_numbers = #tpu.dot_dimension_numbers<[1], [0], [0], [1], [0, 0, 1, 1], [], []>} : vector<32x32xbf16>, vector<32x16xbf16>, vector<32x16xf32> -> vector<32x16xf32>
    %278 = tpu.reciprocal %275 {approx = true} : vector<32x1xf32> -> vector<32x1xf32>
    %279 = vector.broadcast %278 : vector<32x1xf32> to vector<32x16xf32>
    %280 = arith.mulf %277, %279 : vector<32x16xf32>
    %281 = arith.truncf %280 : vector<32x16xf32> to vector<32x16xbf16>
    %282 = vector.extract_strided_slice %182 {offsets = [32, 0], sizes = [16, 64], strides = [1, 1]} : vector<64x64xbf16> to vector<16x64xbf16>
    %cst_108 = arith.constant dense<0.000000e+00> : vector<32x64xf32>
    %283 = tpu.matmul %281, %282, %cst_108 {dimension_numbers = #tpu.dot_dimension_numbers<[1], [0], [0], [1], [0, 0, 1, 1], [], []>} : vector<32x16xbf16>, vector<16x64xbf16>, vector<32x64xf32> -> vector<32x64xf32>
    %284 = arith.addf %262, %283 : vector<32x64xf32>
    %285 = vector.extract_strided_slice %206 {offsets = [0, 48], sizes = [32, 16], strides = [1, 1]} : vector<32x64xf32> to vector<32x16xf32>
    %286 = arith.truncf %285 : vector<32x16xf32> to vector<32x16xbf16>
    %287 = vector.extract_strided_slice %216 {offsets = [0, 16], sizes = [32, 16], strides = [1, 1]} : vector<32x32xbf16> to vector<32x16xbf16>
    %288 = vector.extract_strided_slice %217 {offsets = [0, 16], sizes = [32, 16], strides = [1, 1]} : vector<32x32xbf16> to vector<32x16xbf16>
    %cst_109 = arith.constant dense<0.000000e+00> : vector<32x32xf32>
    %289 = tpu.matmul %286, %287, %cst_109 {dimension_numbers = #tpu.dot_dimension_numbers<[1], [1], [0], [0], [0, 0, 1, 0], [], []>} : vector<32x16xbf16>, vector<32x16xbf16>, vector<32x32xf32> -> vector<32x32xf32>
    %290 = arith.addf %289, %16 : vector<32x32xf32>
    %cst_110 = arith.constant dense<0xFF800000> : vector<32xf32>
    %291 = vector.multi_reduction <maximumf>, %290, %cst_110 [1] : vector<32x32xf32> to vector<32xf32>
    %292 = vector.shape_cast %291 : vector<32xf32> to vector<32x1xf32>
    %293 = vector.broadcast %292 : vector<32x1xf32> to vector<32x32xf32>
    %294 = arith.subf %290, %293 : vector<32x32xf32>
    %295 = math.exp %294 : vector<32x32xf32>
    %cst_111 = arith.constant dense<0.000000e+00> : vector<32xf32>
    %296 = vector.multi_reduction <add>, %295, %cst_111 [1] : vector<32x32xf32> to vector<32xf32>
    %297 = vector.shape_cast %296 : vector<32xf32> to vector<32x1xf32>
    %298 = arith.truncf %295 : vector<32x32xf32> to vector<32x32xbf16>
    %cst_112 = arith.constant dense<0.000000e+00> : vector<32x16xf32>
    %299 = tpu.matmul %298, %288, %cst_112 {dimension_numbers = #tpu.dot_dimension_numbers<[1], [0], [0], [1], [0, 0, 1, 1], [], []>} : vector<32x32xbf16>, vector<32x16xbf16>, vector<32x16xf32> -> vector<32x16xf32>
    %300 = tpu.reciprocal %297 {approx = true} : vector<32x1xf32> -> vector<32x1xf32>
    %301 = vector.broadcast %300 : vector<32x1xf32> to vector<32x16xf32>
    %302 = arith.mulf %299, %301 : vector<32x16xf32>
    %303 = arith.truncf %302 : vector<32x16xf32> to vector<32x16xbf16>
    %304 = vector.extract_strided_slice %182 {offsets = [48, 0], sizes = [16, 64], strides = [1, 1]} : vector<64x64xbf16> to vector<16x64xbf16>
    %cst_113 = arith.constant dense<0.000000e+00> : vector<32x64xf32>
    %305 = tpu.matmul %303, %304, %cst_113 {dimension_numbers = #tpu.dot_dimension_numbers<[1], [0], [0], [1], [0, 0, 1, 1], [], []>} : vector<32x16xbf16>, vector<16x64xbf16>, vector<32x64xf32> -> vector<32x64xf32>
    %306 = arith.addf %284, %305 : vector<32x64xf32>
    %307 = arith.addf %180, %306 : vector<32x64xf32>
    %c1_114 = arith.constant 1 : index
    %c0_115 = arith.constant 0 : index
    %c0_116 = arith.constant 0 : index
    %308 = vector.load %arg13[%c1_114, %c0_115, %c0_116] : memref<2x1x64xf32, #tpu.memory_space<vmem>>, vector<1x1x64xf32>
    %309 = vector.shape_cast %308 : vector<1x1x64xf32> to vector<1x64xf32>
    %c1_117 = arith.constant 1 : index
    %c0_118 = arith.constant 0 : index
    %c0_119 = arith.constant 0 : index
    %310 = vector.load %arg14[%c1_117, %c0_118, %c0_119] : memref<2x64x256xbf16, #tpu.memory_space<vmem>>, vector<1x64x256xbf16>
    %311 = vector.shape_cast %310 : vector<1x64x256xbf16> to vector<64x256xbf16>
    %c1_120 = arith.constant 1 : index
    %c0_121 = arith.constant 0 : index
    %c0_122 = arith.constant 0 : index
    %312 = vector.load %arg15[%c1_120, %c0_121, %c0_122] : memref<2x128x64xbf16, #tpu.memory_space<vmem>>, vector<1x128x64xbf16>
    %313 = vector.shape_cast %312 : vector<1x128x64xbf16> to vector<128x64xbf16>
    %314 = arith.mulf %307, %307 : vector<32x64xf32>
    %cst_123 = arith.constant dense<0.000000e+00> : vector<32xf32>
    %315 = vector.multi_reduction <add>, %314, %cst_123 [1] : vector<32x64xf32> to vector<32xf32>
    %316 = vector.shape_cast %315 : vector<32xf32> to vector<32x1xf32>
    %cst_124 = arith.constant 6.400000e+01 : f32
    %317 = vector.broadcast %cst_124 : f32 to vector<32x1xf32>
    %318 = arith.divf %316, %317 : vector<32x1xf32>
    %cst_125 = arith.constant 9.99999974E-6 : f32
    %319 = vector.broadcast %cst_125 : f32 to vector<32x1xf32>
    %320 = arith.addf %318, %319 : vector<32x1xf32>
    %321 = math.rsqrt %320 : vector<32x1xf32>
    %322 = vector.broadcast %321 : vector<32x1xf32> to vector<32x64xf32>
    %323 = arith.mulf %307, %322 : vector<32x64xf32>
    %324 = vector.broadcast %309 : vector<1x64xf32> to vector<32x64xf32>
    %325 = arith.mulf %323, %324 : vector<32x64xf32>
    %326 = arith.truncf %325 : vector<32x64xf32> to vector<32x64xbf16>
    %cst_126 = arith.constant dense<0.000000e+00> : vector<32x256xf32>
    %327 = tpu.matmul %326, %311, %cst_126 {dimension_numbers = #tpu.dot_dimension_numbers<[1], [0], [0], [1], [0, 0, 1, 1], [], []>} : vector<32x64xbf16>, vector<64x256xbf16>, vector<32x256xf32> -> vector<32x256xf32>
    %328 = vector.extract_strided_slice %327 {offsets = [0, 0], sizes = [32, 128], strides = [1, 1]} : vector<32x256xf32> to vector<32x128xf32>
    %329 = vector.extract_strided_slice %327 {offsets = [0, 128], sizes = [32, 128], strides = [1, 1]} : vector<32x256xf32> to vector<32x128xf32>
    %cst_127 = arith.constant 0.000000e+00 : f32
    %330 = vector.broadcast %cst_127 : f32 to vector<32x128xf32>
    %331 = arith.subf %330, %328 : vector<32x128xf32>
    %332 = math.exp %331 : vector<32x128xf32>
    %cst_128 = arith.constant 1.000000e+00 : f32
    %333 = vector.broadcast %cst_128 : f32 to vector<32x128xf32>
    %334 = arith.addf %333, %332 : vector<32x128xf32>
    %335 = tpu.reciprocal %334 {approx = true} : vector<32x128xf32> -> vector<32x128xf32>
    %336 = arith.mulf %328, %335 : vector<32x128xf32>
    %337 = arith.mulf %336, %329 : vector<32x128xf32>
    %338 = arith.truncf %337 : vector<32x128xf32> to vector<32x128xbf16>
    %cst_129 = arith.constant dense<0.000000e+00> : vector<32x64xf32>
    %339 = tpu.matmul %338, %313, %cst_129 {dimension_numbers = #tpu.dot_dimension_numbers<[1], [0], [0], [1], [0, 0, 1, 1], [], []>} : vector<32x128xbf16>, vector<128x64xbf16>, vector<32x64xf32> -> vector<32x64xf32>
    %340 = arith.addf %307, %339 : vector<32x64xf32>
    %341 = tpu.iota {dimensions = array<i32: 0>} : vector<32x1xi32>
    %c1_i32 = arith.constant 1 : i32
    %342 = arith.subi %1, %c1_i32 : i32
    %343 = vector.broadcast %342 : i32 to vector<32x1xi32>
    %344 = arith.cmpi eq, %341, %343 : vector<32x1xi32>
    %345 = arith.extui %344 : vector<32x1xi1> to vector<32x1xi32>
    %346 = arith.sitofp %345 : vector<32x1xi32> to vector<32x1xf32>
    %347 = vector.broadcast %346 : vector<32x1xf32> to vector<32x64xf32>
    %348 = arith.mulf %340, %347 : vector<32x64xf32>
    %cst_130 = arith.constant dense<0.000000e+00> : vector<64xf32>
    %349 = vector.multi_reduction <add>, %348, %cst_130 [0] : vector<32x64xf32> to vector<64xf32>
    %350 = vector.shape_cast %349 : vector<64xf32> to vector<1x64xf32>
    %351 = arith.mulf %350, %350 : vector<1x64xf32>
    %cst_131 = arith.constant dense<0.000000e+00> : vector<1xf32>
    %352 = vector.multi_reduction <add>, %351, %cst_131 [1] : vector<1x64xf32> to vector<1xf32>
    %353 = vector.shape_cast %352 : vector<1xf32> to vector<1x1xf32>
    %cst_132 = arith.constant 6.400000e+01 : f32
    %354 = vector.broadcast %cst_132 : f32 to vector<1x1xf32>
    %355 = arith.divf %353, %354 : vector<1x1xf32>
    %cst_133 = arith.constant 9.99999974E-6 : f32
    %356 = vector.broadcast %cst_133 : f32 to vector<1x1xf32>
    %357 = arith.addf %355, %356 : vector<1x1xf32>
    %358 = math.rsqrt %357 : vector<1x1xf32>
    %359 = vector.broadcast %358 : vector<1x1xf32> to vector<1x64xf32>
    %360 = arith.mulf %350, %359 : vector<1x64xf32>
    %361 = arith.mulf %360, %4 : vector<1x64xf32>
    %362 = arith.truncf %361 : vector<1x64xf32> to vector<1x64xbf16>
    %cst_134 = arith.constant dense<0.000000e+00> : vector<1x256xf32>
    %363 = tpu.matmul %362, %5, %cst_134 {dimension_numbers = #tpu.dot_dimension_numbers<[1], [0], [0], [1], [0, 0, 1, 1], [], []>} : vector<1x64xbf16>, vector<64x256xbf16>, vector<1x256xf32> -> vector<1x256xf32>
    %cst_135 = arith.constant dense<0xFF800000> : vector<1xf32>
    %364 = vector.multi_reduction <maximumf>, %363, %cst_135 [1] : vector<1x256xf32> to vector<1xf32>
    %365 = vector.shape_cast %364 : vector<1xf32> to vector<1x1xf32>
    %366 = tpu.iota {dimensions = array<i32: 1>} : vector<1x256xi32>
    %367 = vector.broadcast %365 : vector<1x1xf32> to vector<1x256xf32>
    %368 = arith.cmpf oge, %363, %367 : vector<1x256xf32>
    %c256_i32 = arith.constant 256 : i32
    %369 = vector.broadcast %c256_i32 : i32 to vector<1x256xi32>
    %370 = arith.select %368, %366, %369 : vector<1x256xi1>, vector<1x256xi32>
    %cst_136 = arith.constant dense<2147483647> : vector<1xi32>
    %371 = vector.multi_reduction <minsi>, %370, %cst_136 [1] : vector<1x256xi32> to vector<1xi32>
    %372 = vector.shape_cast %371 : vector<1xi32> to vector<1x1xi32>
    %373 = tpu.iota {dimensions = array<i32: 1>} : vector<1x4xi32>
    %c0_i32 = arith.constant 0 : i32
    %374 = vector.broadcast %c0_i32 : i32 to vector<1x4xi32>
    %375 = arith.cmpi eq, %373, %374 : vector<1x4xi32>
    %c0_i32_137 = arith.constant 0 : i32
    %376 = vector.broadcast %c0_i32_137 : i32 to vector<1x4xi32>
    %377 = vector.shape_cast %372 : vector<1x1xi32> to vector<1x1xi32>
    %378 = vector.broadcast %377 : vector<1x1xi32> to vector<1x4xi32>
    %379 = arith.select %375, %378, %376 : vector<1x4xi1>, vector<1x4xi32>
    %c0_138 = arith.constant 0 : index
    %c0_139 = arith.constant 0 : index
    %380 = vector.load %arg3[%c0_138, %c0_139] : memref<256x64xbf16, #tpu.memory_space<vmem>>, vector<256x64xbf16>
    %381 = tpu.iota {dimensions = array<i32: 1>} : vector<1x256xi32>
    %382 = tpu.iota {dimensions = array<i32: 1>} : vector<1x32xi32>
    %c1_i32_140 = arith.constant 1 : i32
    %c3_i32 = arith.constant 3 : i32
    %383 = arith.addi %c1_i32_140, %c3_i32 : i32
    %c1_i32_141 = arith.constant 1 : i32
    %384:2 = scf.for %arg23 = %c1_i32_140 to %383 step %c1_i32_141 iter_args(%arg24 = %372, %arg25 = %379) -> (vector<1x1xi32>, vector<1x4xi32>)  : i32 {
      %388 = arith.addi %1, %arg23 : i32
      %c1_i32_146 = arith.constant 1 : i32
      %389 = arith.subi %388, %c1_i32_146 : i32
      %390 = vector.broadcast %arg24 : vector<1x1xi32> to vector<1x256xi32>
      %391 = arith.cmpi eq, %381, %390 : vector<1x256xi32>
      %392 = arith.extui %391 : vector<1x256xi1> to vector<1x256xi32>
      %393 = arith.sitofp %392 : vector<1x256xi32> to vector<1x256xf32>
      %394 = arith.truncf %393 : vector<1x256xf32> to vector<1x256xbf16>
      %cst_147 = arith.constant dense<0.000000e+00> : vector<1x64xf32>
      %395 = tpu.matmul %394, %380, %cst_147 {dimension_numbers = #tpu.dot_dimension_numbers<[1], [0], [0], [1], [0, 0, 1, 1], [], []>} : vector<1x256xbf16>, vector<256x64xbf16>, vector<1x64xf32> -> vector<1x64xf32>
      %396 = arith.index_cast %389 : i32 to index
      %c0_148 = arith.constant 0 : index
      %397 = vector.load %arg4[%396, %c0_148] : memref<32x64xf32, #tpu.memory_space<vmem>>, vector<1x64xf32>
      %398 = arith.index_cast %389 : i32 to index
      %c0_149 = arith.constant 0 : index
      %399 = vector.load %arg5[%398, %c0_149] : memref<32x64xf32, #tpu.memory_space<vmem>>, vector<1x64xf32>
      %400 = arith.index_cast %389 : i32 to index
      %c0_150 = arith.constant 0 : index
      %401 = vector.load %arg6[%400, %c0_150] : memref<32x32xf32, #tpu.memory_space<vmem>>, vector<1x32xf32>
      %402 = arith.index_cast %389 : i32 to index
      %c0_151 = arith.constant 0 : index
      %403 = vector.load %arg7[%402, %c0_151] : memref<32x32xf32, #tpu.memory_space<vmem>>, vector<1x32xf32>
      %404 = vector.broadcast %389 : i32 to vector<1x32xi32>
      %405 = arith.cmpi sle, %382, %404 : vector<1x32xi32>
      %cst_152 = arith.constant 0.000000e+00 : f32
      %cst_153 = arith.constant -1.000000e+09 : f32
      %406 = vector.broadcast %cst_152 : f32 to vector<1x32xf32>
      %407 = vector.broadcast %cst_153 : f32 to vector<1x32xf32>
      %408 = arith.select %405, %406, %407 : vector<1x32xi1>, vector<1x32xf32>
      %c0_154 = arith.constant 0 : index
      %c0_155 = arith.constant 0 : index
      %c0_156 = arith.constant 0 : index
      %409 = vector.load %arg10[%c0_154, %c0_155, %c0_156] : memref<2x1x64xf32, #tpu.memory_space<vmem>>, vector<1x1x64xf32>
      %410 = vector.shape_cast %409 : vector<1x1x64xf32> to vector<1x64xf32>
      %c0_157 = arith.constant 0 : index
      %c0_158 = arith.constant 0 : index
      %c0_159 = arith.constant 0 : index
      %411 = vector.load %arg11[%c0_157, %c0_158, %c0_159] : memref<2x64x128xbf16, #tpu.memory_space<vmem>>, vector<1x64x128xbf16>
      %412 = vector.shape_cast %411 : vector<1x64x128xbf16> to vector<64x128xbf16>
      %413 = arith.mulf %395, %395 : vector<1x64xf32>
      %cst_160 = arith.constant dense<0.000000e+00> : vector<1xf32>
      %414 = vector.multi_reduction <add>, %413, %cst_160 [1] : vector<1x64xf32> to vector<1xf32>
      %415 = vector.shape_cast %414 : vector<1xf32> to vector<1x1xf32>
      %cst_161 = arith.constant 6.400000e+01 : f32
      %416 = vector.broadcast %cst_161 : f32 to vector<1x1xf32>
      %417 = arith.divf %415, %416 : vector<1x1xf32>
      %cst_162 = arith.constant 9.99999974E-6 : f32
      %418 = vector.broadcast %cst_162 : f32 to vector<1x1xf32>
      %419 = arith.addf %417, %418 : vector<1x1xf32>
      %420 = math.rsqrt %419 : vector<1x1xf32>
      %421 = vector.broadcast %420 : vector<1x1xf32> to vector<1x64xf32>
      %422 = arith.mulf %395, %421 : vector<1x64xf32>
      %423 = arith.mulf %422, %410 : vector<1x64xf32>
      %424 = arith.truncf %423 : vector<1x64xf32> to vector<1x64xbf16>
      %cst_163 = arith.constant dense<0.000000e+00> : vector<1x128xf32>
      %425 = tpu.matmul %424, %412, %cst_163 {dimension_numbers = #tpu.dot_dimension_numbers<[1], [0], [0], [1], [0, 0, 1, 1], [], []>} : vector<1x64xbf16>, vector<64x128xbf16>, vector<1x128xf32> -> vector<1x128xf32>
      %426 = vector.extract_strided_slice %425 {offsets = [0, 0], sizes = [1, 64], strides = [1, 1]} : vector<1x128xf32> to vector<1x64xf32>
      %427 = arith.truncf %426 : vector<1x64xf32> to vector<1x64xbf16>
      %cst_164 = arith.constant dense<0.000000e+00> : vector<1x64xf32>
      %428 = tpu.matmul %427, %2, %cst_164 {dimension_numbers = #tpu.dot_dimension_numbers<[1], [0], [0], [1], [0, 0, 1, 1], [], []>} : vector<1x64xbf16>, vector<64x64xbf16>, vector<1x64xf32> -> vector<1x64xf32>
      %429 = arith.mulf %426, %397 : vector<1x64xf32>
      %430 = arith.mulf %428, %399 : vector<1x64xf32>
      %431 = arith.addf %429, %430 : vector<1x64xf32>
      %432 = vector.extract_strided_slice %425 {offsets = [0, 64], sizes = [1, 32], strides = [1, 1]} : vector<1x128xf32> to vector<1x32xf32>
      %433 = arith.truncf %432 : vector<1x32xf32> to vector<1x32xbf16>
      %cst_165 = arith.constant dense<0.000000e+00> : vector<1x32xf32>
      %434 = tpu.matmul %433, %3, %cst_165 {dimension_numbers = #tpu.dot_dimension_numbers<[1], [0], [0], [1], [0, 0, 1, 1], [], []>} : vector<1x32xbf16>, vector<32x32xbf16>, vector<1x32xf32> -> vector<1x32xf32>
      %435 = arith.mulf %432, %401 : vector<1x32xf32>
      %436 = arith.mulf %434, %403 : vector<1x32xf32>
      %437 = arith.addf %435, %436 : vector<1x32xf32>
      %438 = vector.extract_strided_slice %425 {offsets = [0, 96], sizes = [1, 32], strides = [1, 1]} : vector<1x128xf32> to vector<1x32xf32>
      %439 = arith.index_cast %389 : i32 to index
      %c0_166 = arith.constant 0 : index
      %440 = vector.load %arg19[%439, %c0_166] : memref<32x32xf32, #tpu.memory_space<vmem>>, vector<1x32xf32>
      tpu.vector_store %arg19[%439, %c0_166], %437 {strides = array<i32>} : memref<32x32xf32, #tpu.memory_space<vmem>>, vector<1x32xf32>,
      %441 = arith.index_cast %389 : i32 to index
      %c0_167 = arith.constant 0 : index
      %442 = vector.load %arg20[%441, %c0_167] : memref<32x32xf32, #tpu.memory_space<vmem>>, vector<1x32xf32>
      tpu.vector_store %arg20[%441, %c0_167], %438 {strides = array<i32>} : memref<32x32xf32, #tpu.memory_space<vmem>>, vector<1x32xf32>,
      %c0_168 = arith.constant 0 : index
      %c0_169 = arith.constant 0 : index
      %443 = vector.load %arg19[%c0_168, %c0_169] : memref<32x32xf32, #tpu.memory_space<vmem>>, vector<32x32xf32>
      %c0_170 = arith.constant 0 : index
      %c0_171 = arith.constant 0 : index
      %444 = vector.load %arg20[%c0_170, %c0_171] : memref<32x32xf32, #tpu.memory_space<vmem>>, vector<32x32xf32>
      %c0_172 = arith.constant 0 : index
      %c0_173 = arith.constant 0 : index
      %c0_174 = arith.constant 0 : index
      %445 = vector.load %arg12[%c0_172, %c0_173, %c0_174] : memref<2x64x64xbf16, #tpu.memory_space<vmem>>, vector<1x64x64xbf16>
      %446 = vector.shape_cast %445 : vector<1x64x64xbf16> to vector<64x64xbf16>
      %447 = arith.truncf %443 : vector<32x32xf32> to vector<32x32xbf16>
      %448 = arith.truncf %444 : vector<32x32xf32> to vector<32x32xbf16>
      %cst_175 = arith.constant 0.000000e+00 : f32
      %449 = vector.broadcast %cst_175 : f32 to vector<1x64xf32>
      %450 = vector.extract_strided_slice %431 {offsets = [0, 0], sizes = [1, 16], strides = [1, 1]} : vector<1x64xf32> to vector<1x16xf32>
      %451 = arith.truncf %450 : vector<1x16xf32> to vector<1x16xbf16>
      %452 = vector.extract_strided_slice %447 {offsets = [0, 0], sizes = [32, 16], strides = [1, 1]} : vector<32x32xbf16> to vector<32x16xbf16>
      %453 = vector.extract_strided_slice %448 {offsets = [0, 0], sizes = [32, 16], strides = [1, 1]} : vector<32x32xbf16> to vector<32x16xbf16>
      %cst_176 = arith.constant dense<0.000000e+00> : vector<1x32xf32>
      %454 = tpu.matmul %451, %452, %cst_176 {dimension_numbers = #tpu.dot_dimension_numbers<[1], [1], [0], [0], [0, 0, 1, 0], [], []>} : vector<1x16xbf16>, vector<32x16xbf16>, vector<1x32xf32> -> vector<1x32xf32>
      %455 = arith.addf %454, %408 : vector<1x32xf32>
      %cst_177 = arith.constant dense<0xFF800000> : vector<1xf32>
      %456 = vector.multi_reduction <maximumf>, %455, %cst_177 [1] : vector<1x32xf32> to vector<1xf32>
      %457 = vector.shape_cast %456 : vector<1xf32> to vector<1x1xf32>
      %458 = vector.broadcast %457 : vector<1x1xf32> to vector<1x32xf32>
      %459 = arith.subf %455, %458 : vector<1x32xf32>
      %460 = math.exp %459 : vector<1x32xf32>
      %cst_178 = arith.constant dense<0.000000e+00> : vector<1xf32>
      %461 = vector.multi_reduction <add>, %460, %cst_178 [1] : vector<1x32xf32> to vector<1xf32>
      %462 = vector.shape_cast %461 : vector<1xf32> to vector<1x1xf32>
      %463 = arith.truncf %460 : vector<1x32xf32> to vector<1x32xbf16>
      %cst_179 = arith.constant dense<0.000000e+00> : vector<1x16xf32>
      %464 = tpu.matmul %463, %453, %cst_179 {dimension_numbers = #tpu.dot_dimension_numbers<[1], [0], [0], [1], [0, 0, 1, 1], [], []>} : vector<1x32xbf16>, vector<32x16xbf16>, vector<1x16xf32> -> vector<1x16xf32>
      %465 = tpu.reciprocal %462 {approx = true} : vector<1x1xf32> -> vector<1x1xf32>
      %466 = vector.broadcast %465 : vector<1x1xf32> to vector<1x16xf32>
      %467 = arith.mulf %464, %466 : vector<1x16xf32>
      %468 = arith.truncf %467 : vector<1x16xf32> to vector<1x16xbf16>
      %469 = vector.extract_strided_slice %446 {offsets = [0, 0], sizes = [16, 64], strides = [1, 1]} : vector<64x64xbf16> to vector<16x64xbf16>
      %cst_180 = arith.constant dense<0.000000e+00> : vector<1x64xf32>
      %470 = tpu.matmul %468, %469, %cst_180 {dimension_numbers = #tpu.dot_dimension_numbers<[1], [0], [0], [1], [0, 0, 1, 1], [], []>} : vector<1x16xbf16>, vector<16x64xbf16>, vector<1x64xf32> -> vector<1x64xf32>
      %471 = arith.addf %449, %470 : vector<1x64xf32>
      %472 = vector.extract_strided_slice %431 {offsets = [0, 16], sizes = [1, 16], strides = [1, 1]} : vector<1x64xf32> to vector<1x16xf32>
      %473 = arith.truncf %472 : vector<1x16xf32> to vector<1x16xbf16>
      %474 = vector.extract_strided_slice %447 {offsets = [0, 0], sizes = [32, 16], strides = [1, 1]} : vector<32x32xbf16> to vector<32x16xbf16>
      %475 = vector.extract_strided_slice %448 {offsets = [0, 0], sizes = [32, 16], strides = [1, 1]} : vector<32x32xbf16> to vector<32x16xbf16>
      %cst_181 = arith.constant dense<0.000000e+00> : vector<1x32xf32>
      %476 = tpu.matmul %473, %474, %cst_181 {dimension_numbers = #tpu.dot_dimension_numbers<[1], [1], [0], [0], [0, 0, 1, 0], [], []>} : vector<1x16xbf16>, vector<32x16xbf16>, vector<1x32xf32> -> vector<1x32xf32>
      %477 = arith.addf %476, %408 : vector<1x32xf32>
      %cst_182 = arith.constant dense<0xFF800000> : vector<1xf32>
      %478 = vector.multi_reduction <maximumf>, %477, %cst_182 [1] : vector<1x32xf32> to vector<1xf32>
      %479 = vector.shape_cast %478 : vector<1xf32> to vector<1x1xf32>
      %480 = vector.broadcast %479 : vector<1x1xf32> to vector<1x32xf32>
      %481 = arith.subf %477, %480 : vector<1x32xf32>
      %482 = math.exp %481 : vector<1x32xf32>
      %cst_183 = arith.constant dense<0.000000e+00> : vector<1xf32>
      %483 = vector.multi_reduction <add>, %482, %cst_183 [1] : vector<1x32xf32> to vector<1xf32>
      %484 = vector.shape_cast %483 : vector<1xf32> to vector<1x1xf32>
      %485 = arith.truncf %482 : vector<1x32xf32> to vector<1x32xbf16>
      %cst_184 = arith.constant dense<0.000000e+00> : vector<1x16xf32>
      %486 = tpu.matmul %485, %475, %cst_184 {dimension_numbers = #tpu.dot_dimension_numbers<[1], [0], [0], [1], [0, 0, 1, 1], [], []>} : vector<1x32xbf16>, vector<32x16xbf16>, vector<1x16xf32> -> vector<1x16xf32>
      %487 = tpu.reciprocal %484 {approx = true} : vector<1x1xf32> -> vector<1x1xf32>
      %488 = vector.broadcast %487 : vector<1x1xf32> to vector<1x16xf32>
      %489 = arith.mulf %486, %488 : vector<1x16xf32>
      %490 = arith.truncf %489 : vector<1x16xf32> to vector<1x16xbf16>
      %491 = vector.extract_strided_slice %446 {offsets = [16, 0], sizes = [16, 64], strides = [1, 1]} : vector<64x64xbf16> to vector<16x64xbf16>
      %cst_185 = arith.constant dense<0.000000e+00> : vector<1x64xf32>
      %492 = tpu.matmul %490, %491, %cst_185 {dimension_numbers = #tpu.dot_dimension_numbers<[1], [0], [0], [1], [0, 0, 1, 1], [], []>} : vector<1x16xbf16>, vector<16x64xbf16>, vector<1x64xf32> -> vector<1x64xf32>
      %493 = arith.addf %471, %492 : vector<1x64xf32>
      %494 = vector.extract_strided_slice %431 {offsets = [0, 32], sizes = [1, 16], strides = [1, 1]} : vector<1x64xf32> to vector<1x16xf32>
      %495 = arith.truncf %494 : vector<1x16xf32> to vector<1x16xbf16>
      %496 = vector.extract_strided_slice %447 {offsets = [0, 16], sizes = [32, 16], strides = [1, 1]} : vector<32x32xbf16> to vector<32x16xbf16>
      %497 = vector.extract_strided_slice %448 {offsets = [0, 16], sizes = [32, 16], strides = [1, 1]} : vector<32x32xbf16> to vector<32x16xbf16>
      %cst_186 = arith.constant dense<0.000000e+00> : vector<1x32xf32>
      %498 = tpu.matmul %495, %496, %cst_186 {dimension_numbers = #tpu.dot_dimension_numbers<[1], [1], [0], [0], [0, 0, 1, 0], [], []>} : vector<1x16xbf16>, vector<32x16xbf16>, vector<1x32xf32> -> vector<1x32xf32>
      %499 = arith.addf %498, %408 : vector<1x32xf32>
      %cst_187 = arith.constant dense<0xFF800000> : vector<1xf32>
      %500 = vector.multi_reduction <maximumf>, %499, %cst_187 [1] : vector<1x32xf32> to vector<1xf32>
      %501 = vector.shape_cast %500 : vector<1xf32> to vector<1x1xf32>
      %502 = vector.broadcast %501 : vector<1x1xf32> to vector<1x32xf32>
      %503 = arith.subf %499, %502 : vector<1x32xf32>
      %504 = math.exp %503 : vector<1x32xf32>
      %cst_188 = arith.constant dense<0.000000e+00> : vector<1xf32>
      %505 = vector.multi_reduction <add>, %504, %cst_188 [1] : vector<1x32xf32> to vector<1xf32>
      %506 = vector.shape_cast %505 : vector<1xf32> to vector<1x1xf32>
      %507 = arith.truncf %504 : vector<1x32xf32> to vector<1x32xbf16>
      %cst_189 = arith.constant dense<0.000000e+00> : vector<1x16xf32>
      %508 = tpu.matmul %507, %497, %cst_189 {dimension_numbers = #tpu.dot_dimension_numbers<[1], [0], [0], [1], [0, 0, 1, 1], [], []>} : vector<1x32xbf16>, vector<32x16xbf16>, vector<1x16xf32> -> vector<1x16xf32>
      %509 = tpu.reciprocal %506 {approx = true} : vector<1x1xf32> -> vector<1x1xf32>
      %510 = vector.broadcast %509 : vector<1x1xf32> to vector<1x16xf32>
      %511 = arith.mulf %508, %510 : vector<1x16xf32>
      %512 = arith.truncf %511 : vector<1x16xf32> to vector<1x16xbf16>
      %513 = vector.extract_strided_slice %446 {offsets = [32, 0], sizes = [16, 64], strides = [1, 1]} : vector<64x64xbf16> to vector<16x64xbf16>
      %cst_190 = arith.constant dense<0.000000e+00> : vector<1x64xf32>
      %514 = tpu.matmul %512, %513, %cst_190 {dimension_numbers = #tpu.dot_dimension_numbers<[1], [0], [0], [1], [0, 0, 1, 1], [], []>} : vector<1x16xbf16>, vector<16x64xbf16>, vector<1x64xf32> -> vector<1x64xf32>
      %515 = arith.addf %493, %514 : vector<1x64xf32>
      %516 = vector.extract_strided_slice %431 {offsets = [0, 48], sizes = [1, 16], strides = [1, 1]} : vector<1x64xf32> to vector<1x16xf32>
      %517 = arith.truncf %516 : vector<1x16xf32> to vector<1x16xbf16>
      %518 = vector.extract_strided_slice %447 {offsets = [0, 16], sizes = [32, 16], strides = [1, 1]} : vector<32x32xbf16> to vector<32x16xbf16>
      %519 = vector.extract_strided_slice %448 {offsets = [0, 16], sizes = [32, 16], strides = [1, 1]} : vector<32x32xbf16> to vector<32x16xbf16>
      %cst_191 = arith.constant dense<0.000000e+00> : vector<1x32xf32>
      %520 = tpu.matmul %517, %518, %cst_191 {dimension_numbers = #tpu.dot_dimension_numbers<[1], [1], [0], [0], [0, 0, 1, 0], [], []>} : vector<1x16xbf16>, vector<32x16xbf16>, vector<1x32xf32> -> vector<1x32xf32>
      %521 = arith.addf %520, %408 : vector<1x32xf32>
      %cst_192 = arith.constant dense<0xFF800000> : vector<1xf32>
      %522 = vector.multi_reduction <maximumf>, %521, %cst_192 [1] : vector<1x32xf32> to vector<1xf32>
      %523 = vector.shape_cast %522 : vector<1xf32> to vector<1x1xf32>
      %524 = vector.broadcast %523 : vector<1x1xf32> to vector<1x32xf32>
      %525 = arith.subf %521, %524 : vector<1x32xf32>
      %526 = math.exp %525 : vector<1x32xf32>
      %cst_193 = arith.constant dense<0.000000e+00> : vector<1xf32>
      %527 = vector.multi_reduction <add>, %526, %cst_193 [1] : vector<1x32xf32> to vector<1xf32>
      %528 = vector.shape_cast %527 : vector<1xf32> to vector<1x1xf32>
      %529 = arith.truncf %526 : vector<1x32xf32> to vector<1x32xbf16>
      %cst_194 = arith.constant dense<0.000000e+00> : vector<1x16xf32>
      %530 = tpu.matmul %529, %519, %cst_194 {dimension_numbers = #tpu.dot_dimension_numbers<[1], [0], [0], [1], [0, 0, 1, 1], [], []>} : vector<1x32xbf16>, vector<32x16xbf16>, vector<1x16xf32> -> vector<1x16xf32>
      %531 = tpu.reciprocal %528 {approx = true} : vector<1x1xf32> -> vector<1x1xf32>
      %532 = vector.broadcast %531 : vector<1x1xf32> to vector<1x16xf32>
      %533 = arith.mulf %530, %532 : vector<1x16xf32>
      %534 = arith.truncf %533 : vector<1x16xf32> to vector<1x16xbf16>
      %535 = vector.extract_strided_slice %446 {offsets = [48, 0], sizes = [16, 64], strides = [1, 1]} : vector<64x64xbf16> to vector<16x64xbf16>
      %cst_195 = arith.constant dense<0.000000e+00> : vector<1x64xf32>
      %536 = tpu.matmul %534, %535, %cst_195 {dimension_numbers = #tpu.dot_dimension_numbers<[1], [0], [0], [1], [0, 0, 1, 1], [], []>} : vector<1x16xbf16>, vector<16x64xbf16>, vector<1x64xf32> -> vector<1x64xf32>
      %537 = arith.addf %515, %536 : vector<1x64xf32>
      %538 = arith.addf %395, %537 : vector<1x64xf32>
      %c0_196 = arith.constant 0 : index
      %c0_197 = arith.constant 0 : index
      %c0_198 = arith.constant 0 : index
      %539 = vector.load %arg13[%c0_196, %c0_197, %c0_198] : memref<2x1x64xf32, #tpu.memory_space<vmem>>, vector<1x1x64xf32>
      %540 = vector.shape_cast %539 : vector<1x1x64xf32> to vector<1x64xf32>
      %c0_199 = arith.constant 0 : index
      %c0_200 = arith.constant 0 : index
      %c0_201 = arith.constant 0 : index
      %541 = vector.load %arg14[%c0_199, %c0_200, %c0_201] : memref<2x64x256xbf16, #tpu.memory_space<vmem>>, vector<1x64x256xbf16>
      %542 = vector.shape_cast %541 : vector<1x64x256xbf16> to vector<64x256xbf16>
      %c0_202 = arith.constant 0 : index
      %c0_203 = arith.constant 0 : index
      %c0_204 = arith.constant 0 : index
      %543 = vector.load %arg15[%c0_202, %c0_203, %c0_204] : memref<2x128x64xbf16, #tpu.memory_space<vmem>>, vector<1x128x64xbf16>
      %544 = vector.shape_cast %543 : vector<1x128x64xbf16> to vector<128x64xbf16>
      %545 = arith.mulf %538, %538 : vector<1x64xf32>
      %cst_205 = arith.constant dense<0.000000e+00> : vector<1xf32>
      %546 = vector.multi_reduction <add>, %545, %cst_205 [1] : vector<1x64xf32> to vector<1xf32>
      %547 = vector.shape_cast %546 : vector<1xf32> to vector<1x1xf32>
      %cst_206 = arith.constant 6.400000e+01 : f32
      %548 = vector.broadcast %cst_206 : f32 to vector<1x1xf32>
      %549 = arith.divf %547, %548 : vector<1x1xf32>
      %cst_207 = arith.constant 9.99999974E-6 : f32
      %550 = vector.broadcast %cst_207 : f32 to vector<1x1xf32>
      %551 = arith.addf %549, %550 : vector<1x1xf32>
      %552 = math.rsqrt %551 : vector<1x1xf32>
      %553 = vector.broadcast %552 : vector<1x1xf32> to vector<1x64xf32>
      %554 = arith.mulf %538, %553 : vector<1x64xf32>
      %555 = arith.mulf %554, %540 : vector<1x64xf32>
      %556 = arith.truncf %555 : vector<1x64xf32> to vector<1x64xbf16>
      %cst_208 = arith.constant dense<0.000000e+00> : vector<1x256xf32>
      %557 = tpu.matmul %556, %542, %cst_208 {dimension_numbers = #tpu.dot_dimension_numbers<[1], [0], [0], [1], [0, 0, 1, 1], [], []>} : vector<1x64xbf16>, vector<64x256xbf16>, vector<1x256xf32> -> vector<1x256xf32>
      %558 = vector.extract_strided_slice %557 {offsets = [0, 0], sizes = [1, 128], strides = [1, 1]} : vector<1x256xf32> to vector<1x128xf32>
      %559 = vector.extract_strided_slice %557 {offsets = [0, 128], sizes = [1, 128], strides = [1, 1]} : vector<1x256xf32> to vector<1x128xf32>
      %cst_209 = arith.constant 0.000000e+00 : f32
      %560 = vector.broadcast %cst_209 : f32 to vector<1x128xf32>
      %561 = arith.subf %560, %558 : vector<1x128xf32>
      %562 = math.exp %561 : vector<1x128xf32>
      %cst_210 = arith.constant 1.000000e+00 : f32
      %563 = vector.broadcast %cst_210 : f32 to vector<1x128xf32>
      %564 = arith.addf %563, %562 : vector<1x128xf32>
      %565 = tpu.reciprocal %564 {approx = true} : vector<1x128xf32> -> vector<1x128xf32>
      %566 = arith.mulf %558, %565 : vector<1x128xf32>
      %567 = arith.mulf %566, %559 : vector<1x128xf32>
      %568 = arith.truncf %567 : vector<1x128xf32> to vector<1x128xbf16>
      %cst_211 = arith.constant dense<0.000000e+00> : vector<1x64xf32>
      %569 = tpu.matmul %568, %544, %cst_211 {dimension_numbers = #tpu.dot_dimension_numbers<[1], [0], [0], [1], [0, 0, 1, 1], [], []>} : vector<1x128xbf16>, vector<128x64xbf16>, vector<1x64xf32> -> vector<1x64xf32>
      %570 = arith.addf %538, %569 : vector<1x64xf32>
      %c1_212 = arith.constant 1 : index
      %c0_213 = arith.constant 0 : index
      %c0_214 = arith.constant 0 : index
      %571 = vector.load %arg10[%c1_212, %c0_213, %c0_214] : memref<2x1x64xf32, #tpu.memory_space<vmem>>, vector<1x1x64xf32>
      %572 = vector.shape_cast %571 : vector<1x1x64xf32> to vector<1x64xf32>
      %c1_215 = arith.constant 1 : index
      %c0_216 = arith.constant 0 : index
      %c0_217 = arith.constant 0 : index
      %573 = vector.load %arg11[%c1_215, %c0_216, %c0_217] : memref<2x64x128xbf16, #tpu.memory_space<vmem>>, vector<1x64x128xbf16>
      %574 = vector.shape_cast %573 : vector<1x64x128xbf16> to vector<64x128xbf16>
      %575 = arith.mulf %570, %570 : vector<1x64xf32>
      %cst_218 = arith.constant dense<0.000000e+00> : vector<1xf32>
      %576 = vector.multi_reduction <add>, %575, %cst_218 [1] : vector<1x64xf32> to vector<1xf32>
      %577 = vector.shape_cast %576 : vector<1xf32> to vector<1x1xf32>
      %cst_219 = arith.constant 6.400000e+01 : f32
      %578 = vector.broadcast %cst_219 : f32 to vector<1x1xf32>
      %579 = arith.divf %577, %578 : vector<1x1xf32>
      %cst_220 = arith.constant 9.99999974E-6 : f32
      %580 = vector.broadcast %cst_220 : f32 to vector<1x1xf32>
      %581 = arith.addf %579, %580 : vector<1x1xf32>
      %582 = math.rsqrt %581 : vector<1x1xf32>
      %583 = vector.broadcast %582 : vector<1x1xf32> to vector<1x64xf32>
      %584 = arith.mulf %570, %583 : vector<1x64xf32>
      %585 = arith.mulf %584, %572 : vector<1x64xf32>
      %586 = arith.truncf %585 : vector<1x64xf32> to vector<1x64xbf16>
      %cst_221 = arith.constant dense<0.000000e+00> : vector<1x128xf32>
      %587 = tpu.matmul %586, %574, %cst_221 {dimension_numbers = #tpu.dot_dimension_numbers<[1], [0], [0], [1], [0, 0, 1, 1], [], []>} : vector<1x64xbf16>, vector<64x128xbf16>, vector<1x128xf32> -> vector<1x128xf32>
      %588 = vector.extract_strided_slice %587 {offsets = [0, 0], sizes = [1, 64], strides = [1, 1]} : vector<1x128xf32> to vector<1x64xf32>
      %589 = arith.truncf %588 : vector<1x64xf32> to vector<1x64xbf16>
      %cst_222 = arith.constant dense<0.000000e+00> : vector<1x64xf32>
      %590 = tpu.matmul %589, %2, %cst_222 {dimension_numbers = #tpu.dot_dimension_numbers<[1], [0], [0], [1], [0, 0, 1, 1], [], []>} : vector<1x64xbf16>, vector<64x64xbf16>, vector<1x64xf32> -> vector<1x64xf32>
      %591 = arith.mulf %588, %397 : vector<1x64xf32>
      %592 = arith.mulf %590, %399 : vector<1x64xf32>
      %593 = arith.addf %591, %592 : vector<1x64xf32>
      %594 = vector.extract_strided_slice %587 {offsets = [0, 64], sizes = [1, 32], strides = [1, 1]} : vector<1x128xf32> to vector<1x32xf32>
      %595 = arith.truncf %594 : vector<1x32xf32> to vector<1x32xbf16>
      %cst_223 = arith.constant dense<0.000000e+00> : vector<1x32xf32>
      %596 = tpu.matmul %595, %3, %cst_223 {dimension_numbers = #tpu.dot_dimension_numbers<[1], [0], [0], [1], [0, 0, 1, 1], [], []>} : vector<1x32xbf16>, vector<32x32xbf16>, vector<1x32xf32> -> vector<1x32xf32>
      %597 = arith.mulf %594, %401 : vector<1x32xf32>
      %598 = arith.mulf %596, %403 : vector<1x32xf32>
      %599 = arith.addf %597, %598 : vector<1x32xf32>
      %600 = vector.extract_strided_slice %587 {offsets = [0, 96], sizes = [1, 32], strides = [1, 1]} : vector<1x128xf32> to vector<1x32xf32>
      %601 = arith.index_cast %389 : i32 to index
      %c0_224 = arith.constant 0 : index
      %602 = vector.load %arg21[%601, %c0_224] : memref<32x32xf32, #tpu.memory_space<vmem>>, vector<1x32xf32>
      tpu.vector_store %arg21[%601, %c0_224], %599 {strides = array<i32>} : memref<32x32xf32, #tpu.memory_space<vmem>>, vector<1x32xf32>,
      %603 = arith.index_cast %389 : i32 to index
      %c0_225 = arith.constant 0 : index
      %604 = vector.load %arg22[%603, %c0_225] : memref<32x32xf32, #tpu.memory_space<vmem>>, vector<1x32xf32>
      tpu.vector_store %arg22[%603, %c0_225], %600 {strides = array<i32>} : memref<32x32xf32, #tpu.memory_space<vmem>>, vector<1x32xf32>,
      %c0_226 = arith.constant 0 : index
      %c0_227 = arith.constant 0 : index
      %605 = vector.load %arg21[%c0_226, %c0_227] : memref<32x32xf32, #tpu.memory_space<vmem>>, vector<32x32xf32>
      %c0_228 = arith.constant 0 : index
      %c0_229 = arith.constant 0 : index
      %606 = vector.load %arg22[%c0_228, %c0_229] : memref<32x32xf32, #tpu.memory_space<vmem>>, vector<32x32xf32>
      %c1_230 = arith.constant 1 : index
      %c0_231 = arith.constant 0 : index
      %c0_232 = arith.constant 0 : index
      %607 = vector.load %arg12[%c1_230, %c0_231, %c0_232] : memref<2x64x64xbf16, #tpu.memory_space<vmem>>, vector<1x64x64xbf16>
      %608 = vector.shape_cast %607 : vector<1x64x64xbf16> to vector<64x64xbf16>
      %609 = arith.truncf %605 : vector<32x32xf32> to vector<32x32xbf16>
      %610 = arith.truncf %606 : vector<32x32xf32> to vector<32x32xbf16>
      %cst_233 = arith.constant 0.000000e+00 : f32
      %611 = vector.broadcast %cst_233 : f32 to vector<1x64xf32>
      %612 = vector.extract_strided_slice %593 {offsets = [0, 0], sizes = [1, 16], strides = [1, 1]} : vector<1x64xf32> to vector<1x16xf32>
      %613 = arith.truncf %612 : vector<1x16xf32> to vector<1x16xbf16>
      %614 = vector.extract_strided_slice %609 {offsets = [0, 0], sizes = [32, 16], strides = [1, 1]} : vector<32x32xbf16> to vector<32x16xbf16>
      %615 = vector.extract_strided_slice %610 {offsets = [0, 0], sizes = [32, 16], strides = [1, 1]} : vector<32x32xbf16> to vector<32x16xbf16>
      %cst_234 = arith.constant dense<0.000000e+00> : vector<1x32xf32>
      %616 = tpu.matmul %613, %614, %cst_234 {dimension_numbers = #tpu.dot_dimension_numbers<[1], [1], [0], [0], [0, 0, 1, 0], [], []>} : vector<1x16xbf16>, vector<32x16xbf16>, vector<1x32xf32> -> vector<1x32xf32>
      %617 = arith.addf %616, %408 : vector<1x32xf32>
      %cst_235 = arith.constant dense<0xFF800000> : vector<1xf32>
      %618 = vector.multi_reduction <maximumf>, %617, %cst_235 [1] : vector<1x32xf32> to vector<1xf32>
      %619 = vector.shape_cast %618 : vector<1xf32> to vector<1x1xf32>
      %620 = vector.broadcast %619 : vector<1x1xf32> to vector<1x32xf32>
      %621 = arith.subf %617, %620 : vector<1x32xf32>
      %622 = math.exp %621 : vector<1x32xf32>
      %cst_236 = arith.constant dense<0.000000e+00> : vector<1xf32>
      %623 = vector.multi_reduction <add>, %622, %cst_236 [1] : vector<1x32xf32> to vector<1xf32>
      %624 = vector.shape_cast %623 : vector<1xf32> to vector<1x1xf32>
      %625 = arith.truncf %622 : vector<1x32xf32> to vector<1x32xbf16>
      %cst_237 = arith.constant dense<0.000000e+00> : vector<1x16xf32>
      %626 = tpu.matmul %625, %615, %cst_237 {dimension_numbers = #tpu.dot_dimension_numbers<[1], [0], [0], [1], [0, 0, 1, 1], [], []>} : vector<1x32xbf16>, vector<32x16xbf16>, vector<1x16xf32> -> vector<1x16xf32>
      %627 = tpu.reciprocal %624 {approx = true} : vector<1x1xf32> -> vector<1x1xf32>
      %628 = vector.broadcast %627 : vector<1x1xf32> to vector<1x16xf32>
      %629 = arith.mulf %626, %628 : vector<1x16xf32>
      %630 = arith.truncf %629 : vector<1x16xf32> to vector<1x16xbf16>
      %631 = vector.extract_strided_slice %608 {offsets = [0, 0], sizes = [16, 64], strides = [1, 1]} : vector<64x64xbf16> to vector<16x64xbf16>
      %cst_238 = arith.constant dense<0.000000e+00> : vector<1x64xf32>
      %632 = tpu.matmul %630, %631, %cst_238 {dimension_numbers = #tpu.dot_dimension_numbers<[1], [0], [0], [1], [0, 0, 1, 1], [], []>} : vector<1x16xbf16>, vector<16x64xbf16>, vector<1x64xf32> -> vector<1x64xf32>
      %633 = arith.addf %611, %632 : vector<1x64xf32>
      %634 = vector.extract_strided_slice %593 {offsets = [0, 16], sizes = [1, 16], strides = [1, 1]} : vector<1x64xf32> to vector<1x16xf32>
      %635 = arith.truncf %634 : vector<1x16xf32> to vector<1x16xbf16>
      %636 = vector.extract_strided_slice %609 {offsets = [0, 0], sizes = [32, 16], strides = [1, 1]} : vector<32x32xbf16> to vector<32x16xbf16>
      %637 = vector.extract_strided_slice %610 {offsets = [0, 0], sizes = [32, 16], strides = [1, 1]} : vector<32x32xbf16> to vector<32x16xbf16>
      %cst_239 = arith.constant dense<0.000000e+00> : vector<1x32xf32>
      %638 = tpu.matmul %635, %636, %cst_239 {dimension_numbers = #tpu.dot_dimension_numbers<[1], [1], [0], [0], [0, 0, 1, 0], [], []>} : vector<1x16xbf16>, vector<32x16xbf16>, vector<1x32xf32> -> vector<1x32xf32>
      %639 = arith.addf %638, %408 : vector<1x32xf32>
      %cst_240 = arith.constant dense<0xFF800000> : vector<1xf32>
      %640 = vector.multi_reduction <maximumf>, %639, %cst_240 [1] : vector<1x32xf32> to vector<1xf32>
      %641 = vector.shape_cast %640 : vector<1xf32> to vector<1x1xf32>
      %642 = vector.broadcast %641 : vector<1x1xf32> to vector<1x32xf32>
      %643 = arith.subf %639, %642 : vector<1x32xf32>
      %644 = math.exp %643 : vector<1x32xf32>
      %cst_241 = arith.constant dense<0.000000e+00> : vector<1xf32>
      %645 = vector.multi_reduction <add>, %644, %cst_241 [1] : vector<1x32xf32> to vector<1xf32>
      %646 = vector.shape_cast %645 : vector<1xf32> to vector<1x1xf32>
      %647 = arith.truncf %644 : vector<1x32xf32> to vector<1x32xbf16>
      %cst_242 = arith.constant dense<0.000000e+00> : vector<1x16xf32>
      %648 = tpu.matmul %647, %637, %cst_242 {dimension_numbers = #tpu.dot_dimension_numbers<[1], [0], [0], [1], [0, 0, 1, 1], [], []>} : vector<1x32xbf16>, vector<32x16xbf16>, vector<1x16xf32> -> vector<1x16xf32>
      %649 = tpu.reciprocal %646 {approx = true} : vector<1x1xf32> -> vector<1x1xf32>
      %650 = vector.broadcast %649 : vector<1x1xf32> to vector<1x16xf32>
      %651 = arith.mulf %648, %650 : vector<1x16xf32>
      %652 = arith.truncf %651 : vector<1x16xf32> to vector<1x16xbf16>
      %653 = vector.extract_strided_slice %608 {offsets = [16, 0], sizes = [16, 64], strides = [1, 1]} : vector<64x64xbf16> to vector<16x64xbf16>
      %cst_243 = arith.constant dense<0.000000e+00> : vector<1x64xf32>
      %654 = tpu.matmul %652, %653, %cst_243 {dimension_numbers = #tpu.dot_dimension_numbers<[1], [0], [0], [1], [0, 0, 1, 1], [], []>} : vector<1x16xbf16>, vector<16x64xbf16>, vector<1x64xf32> -> vector<1x64xf32>
      %655 = arith.addf %633, %654 : vector<1x64xf32>
      %656 = vector.extract_strided_slice %593 {offsets = [0, 32], sizes = [1, 16], strides = [1, 1]} : vector<1x64xf32> to vector<1x16xf32>
      %657 = arith.truncf %656 : vector<1x16xf32> to vector<1x16xbf16>
      %658 = vector.extract_strided_slice %609 {offsets = [0, 16], sizes = [32, 16], strides = [1, 1]} : vector<32x32xbf16> to vector<32x16xbf16>
      %659 = vector.extract_strided_slice %610 {offsets = [0, 16], sizes = [32, 16], strides = [1, 1]} : vector<32x32xbf16> to vector<32x16xbf16>
      %cst_244 = arith.constant dense<0.000000e+00> : vector<1x32xf32>
      %660 = tpu.matmul %657, %658, %cst_244 {dimension_numbers = #tpu.dot_dimension_numbers<[1], [1], [0], [0], [0, 0, 1, 0], [], []>} : vector<1x16xbf16>, vector<32x16xbf16>, vector<1x32xf32> -> vector<1x32xf32>
      %661 = arith.addf %660, %408 : vector<1x32xf32>
      %cst_245 = arith.constant dense<0xFF800000> : vector<1xf32>
      %662 = vector.multi_reduction <maximumf>, %661, %cst_245 [1] : vector<1x32xf32> to vector<1xf32>
      %663 = vector.shape_cast %662 : vector<1xf32> to vector<1x1xf32>
      %664 = vector.broadcast %663 : vector<1x1xf32> to vector<1x32xf32>
      %665 = arith.subf %661, %664 : vector<1x32xf32>
      %666 = math.exp %665 : vector<1x32xf32>
      %cst_246 = arith.constant dense<0.000000e+00> : vector<1xf32>
      %667 = vector.multi_reduction <add>, %666, %cst_246 [1] : vector<1x32xf32> to vector<1xf32>
      %668 = vector.shape_cast %667 : vector<1xf32> to vector<1x1xf32>
      %669 = arith.truncf %666 : vector<1x32xf32> to vector<1x32xbf16>
      %cst_247 = arith.constant dense<0.000000e+00> : vector<1x16xf32>
      %670 = tpu.matmul %669, %659, %cst_247 {dimension_numbers = #tpu.dot_dimension_numbers<[1], [0], [0], [1], [0, 0, 1, 1], [], []>} : vector<1x32xbf16>, vector<32x16xbf16>, vector<1x16xf32> -> vector<1x16xf32>
      %671 = tpu.reciprocal %668 {approx = true} : vector<1x1xf32> -> vector<1x1xf32>
      %672 = vector.broadcast %671 : vector<1x1xf32> to vector<1x16xf32>
      %673 = arith.mulf %670, %672 : vector<1x16xf32>
      %674 = arith.truncf %673 : vector<1x16xf32> to vector<1x16xbf16>
      %675 = vector.extract_strided_slice %608 {offsets = [32, 0], sizes = [16, 64], strides = [1, 1]} : vector<64x64xbf16> to vector<16x64xbf16>
      %cst_248 = arith.constant dense<0.000000e+00> : vector<1x64xf32>
      %676 = tpu.matmul %674, %675, %cst_248 {dimension_numbers = #tpu.dot_dimension_numbers<[1], [0], [0], [1], [0, 0, 1, 1], [], []>} : vector<1x16xbf16>, vector<16x64xbf16>, vector<1x64xf32> -> vector<1x64xf32>
      %677 = arith.addf %655, %676 : vector<1x64xf32>
      %678 = vector.extract_strided_slice %593 {offsets = [0, 48], sizes = [1, 16], strides = [1, 1]} : vector<1x64xf32> to vector<1x16xf32>
      %679 = arith.truncf %678 : vector<1x16xf32> to vector<1x16xbf16>
      %680 = vector.extract_strided_slice %609 {offsets = [0, 16], sizes = [32, 16], strides = [1, 1]} : vector<32x32xbf16> to vector<32x16xbf16>
      %681 = vector.extract_strided_slice %610 {offsets = [0, 16], sizes = [32, 16], strides = [1, 1]} : vector<32x32xbf16> to vector<32x16xbf16>
      %cst_249 = arith.constant dense<0.000000e+00> : vector<1x32xf32>
      %682 = tpu.matmul %679, %680, %cst_249 {dimension_numbers = #tpu.dot_dimension_numbers<[1], [1], [0], [0], [0, 0, 1, 0], [], []>} : vector<1x16xbf16>, vector<32x16xbf16>, vector<1x32xf32> -> vector<1x32xf32>
      %683 = arith.addf %682, %408 : vector<1x32xf32>
      %cst_250 = arith.constant dense<0xFF800000> : vector<1xf32>
      %684 = vector.multi_reduction <maximumf>, %683, %cst_250 [1] : vector<1x32xf32> to vector<1xf32>
      %685 = vector.shape_cast %684 : vector<1xf32> to vector<1x1xf32>
      %686 = vector.broadcast %685 : vector<1x1xf32> to vector<1x32xf32>
      %687 = arith.subf %683, %686 : vector<1x32xf32>
      %688 = math.exp %687 : vector<1x32xf32>
      %cst_251 = arith.constant dense<0.000000e+00> : vector<1xf32>
      %689 = vector.multi_reduction <add>, %688, %cst_251 [1] : vector<1x32xf32> to vector<1xf32>
      %690 = vector.shape_cast %689 : vector<1xf32> to vector<1x1xf32>
      %691 = arith.truncf %688 : vector<1x32xf32> to vector<1x32xbf16>
      %cst_252 = arith.constant dense<0.000000e+00> : vector<1x16xf32>
      %692 = tpu.matmul %691, %681, %cst_252 {dimension_numbers = #tpu.dot_dimension_numbers<[1], [0], [0], [1], [0, 0, 1, 1], [], []>} : vector<1x32xbf16>, vector<32x16xbf16>, vector<1x16xf32> -> vector<1x16xf32>
      %693 = tpu.reciprocal %690 {approx = true} : vector<1x1xf32> -> vector<1x1xf32>
      %694 = vector.broadcast %693 : vector<1x1xf32> to vector<1x16xf32>
      %695 = arith.mulf %692, %694 : vector<1x16xf32>
      %696 = arith.truncf %695 : vector<1x16xf32> to vector<1x16xbf16>
      %697 = vector.extract_strided_slice %608 {offsets = [48, 0], sizes = [16, 64], strides = [1, 1]} : vector<64x64xbf16> to vector<16x64xbf16>
      %cst_253 = arith.constant dense<0.000000e+00> : vector<1x64xf32>
      %698 = tpu.matmul %696, %697, %cst_253 {dimension_numbers = #tpu.dot_dimension_numbers<[1], [0], [0], [1], [0, 0, 1, 1], [], []>} : vector<1x16xbf16>, vector<16x64xbf16>, vector<1x64xf32> -> vector<1x64xf32>
      %699 = arith.addf %677, %698 : vector<1x64xf32>
      %700 = arith.addf %570, %699 : vector<1x64xf32>
      %c1_254 = arith.constant 1 : index
      %c0_255 = arith.constant 0 : index
      %c0_256 = arith.constant 0 : index
      %701 = vector.load %arg13[%c1_254, %c0_255, %c0_256] : memref<2x1x64xf32, #tpu.memory_space<vmem>>, vector<1x1x64xf32>
      %702 = vector.shape_cast %701 : vector<1x1x64xf32> to vector<1x64xf32>
      %c1_257 = arith.constant 1 : index
      %c0_258 = arith.constant 0 : index
      %c0_259 = arith.constant 0 : index
      %703 = vector.load %arg14[%c1_257, %c0_258, %c0_259] : memref<2x64x256xbf16, #tpu.memory_space<vmem>>, vector<1x64x256xbf16>
      %704 = vector.shape_cast %703 : vector<1x64x256xbf16> to vector<64x256xbf16>
      %c1_260 = arith.constant 1 : index
      %c0_261 = arith.constant 0 : index
      %c0_262 = arith.constant 0 : index
      %705 = vector.load %arg15[%c1_260, %c0_261, %c0_262] : memref<2x128x64xbf16, #tpu.memory_space<vmem>>, vector<1x128x64xbf16>
      %706 = vector.shape_cast %705 : vector<1x128x64xbf16> to vector<128x64xbf16>
      %707 = arith.mulf %700, %700 : vector<1x64xf32>
      %cst_263 = arith.constant dense<0.000000e+00> : vector<1xf32>
      %708 = vector.multi_reduction <add>, %707, %cst_263 [1] : vector<1x64xf32> to vector<1xf32>
      %709 = vector.shape_cast %708 : vector<1xf32> to vector<1x1xf32>
      %cst_264 = arith.constant 6.400000e+01 : f32
      %710 = vector.broadcast %cst_264 : f32 to vector<1x1xf32>
      %711 = arith.divf %709, %710 : vector<1x1xf32>
      %cst_265 = arith.constant 9.99999974E-6 : f32
      %712 = vector.broadcast %cst_265 : f32 to vector<1x1xf32>
      %713 = arith.addf %711, %712 : vector<1x1xf32>
      %714 = math.rsqrt %713 : vector<1x1xf32>
      %715 = vector.broadcast %714 : vector<1x1xf32> to vector<1x64xf32>
      %716 = arith.mulf %700, %715 : vector<1x64xf32>
      %717 = arith.mulf %716, %702 : vector<1x64xf32>
      %718 = arith.truncf %717 : vector<1x64xf32> to vector<1x64xbf16>
      %cst_266 = arith.constant dense<0.000000e+00> : vector<1x256xf32>
      %719 = tpu.matmul %718, %704, %cst_266 {dimension_numbers = #tpu.dot_dimension_numbers<[1], [0], [0], [1], [0, 0, 1, 1], [], []>} : vector<1x64xbf16>, vector<64x256xbf16>, vector<1x256xf32> -> vector<1x256xf32>
      %720 = vector.extract_strided_slice %719 {offsets = [0, 0], sizes = [1, 128], strides = [1, 1]} : vector<1x256xf32> to vector<1x128xf32>
      %721 = vector.extract_strided_slice %719 {offsets = [0, 128], sizes = [1, 128], strides = [1, 1]} : vector<1x256xf32> to vector<1x128xf32>
      %cst_267 = arith.constant 0.000000e+00 : f32
      %722 = vector.broadcast %cst_267 : f32 to vector<1x128xf32>
      %723 = arith.subf %722, %720 : vector<1x128xf32>
      %724 = math.exp %723 : vector<1x128xf32>
      %cst_268 = arith.constant 1.000000e+00 : f32
      %725 = vector.broadcast %cst_268 : f32 to vector<1x128xf32>
      %726 = arith.addf %725, %724 : vector<1x128xf32>
      %727 = tpu.reciprocal %726 {approx = true} : vector<1x128xf32> -> vector<1x128xf32>
      %728 = arith.mulf %720, %727 : vector<1x128xf32>
      %729 = arith.mulf %728, %721 : vector<1x128xf32>
      %730 = arith.truncf %729 : vector<1x128xf32> to vector<1x128xbf16>
      %cst_269 = arith.constant dense<0.000000e+00> : vector<1x64xf32>
      %731 = tpu.matmul %730, %706, %cst_269 {dimension_numbers = #tpu.dot_dimension_numbers<[1], [0], [0], [1], [0, 0, 1, 1], [], []>} : vector<1x128xbf16>, vector<128x64xbf16>, vector<1x64xf32> -> vector<1x64xf32>
      %732 = arith.addf %700, %731 : vector<1x64xf32>
      %733 = arith.mulf %732, %732 : vector<1x64xf32>
      %cst_270 = arith.constant dense<0.000000e+00> : vector<1xf32>
      %734 = vector.multi_reduction <add>, %733, %cst_270 [1] : vector<1x64xf32> to vector<1xf32>
      %735 = vector.shape_cast %734 : vector<1xf32> to vector<1x1xf32>
      %cst_271 = arith.constant 6.400000e+01 : f32
      %736 = vector.broadcast %cst_271 : f32 to vector<1x1xf32>
      %737 = arith.divf %735, %736 : vector<1x1xf32>
      %cst_272 = arith.constant 9.99999974E-6 : f32
      %738 = vector.broadcast %cst_272 : f32 to vector<1x1xf32>
      %739 = arith.addf %737, %738 : vector<1x1xf32>
      %740 = math.rsqrt %739 : vector<1x1xf32>
      %741 = vector.broadcast %740 : vector<1x1xf32> to vector<1x64xf32>
      %742 = arith.mulf %732, %741 : vector<1x64xf32>
      %743 = arith.mulf %742, %4 : vector<1x64xf32>
      %744 = arith.truncf %743 : vector<1x64xf32> to vector<1x64xbf16>
      %cst_273 = arith.constant dense<0.000000e+00> : vector<1x256xf32>
      %745 = tpu.matmul %744, %5, %cst_273 {dimension_numbers = #tpu.dot_dimension_numbers<[1], [0], [0], [1], [0, 0, 1, 1], [], []>} : vector<1x64xbf16>, vector<64x256xbf16>, vector<1x256xf32> -> vector<1x256xf32>
      %cst_274 = arith.constant dense<0xFF800000> : vector<1xf32>
      %746 = vector.multi_reduction <maximumf>, %745, %cst_274 [1] : vector<1x256xf32> to vector<1xf32>
      %747 = vector.shape_cast %746 : vector<1xf32> to vector<1x1xf32>
      %748 = tpu.iota {dimensions = array<i32: 1>} : vector<1x256xi32>
      %749 = vector.broadcast %747 : vector<1x1xf32> to vector<1x256xf32>
      %750 = arith.cmpf oge, %745, %749 : vector<1x256xf32>
      %c256_i32_275 = arith.constant 256 : i32
      %751 = vector.broadcast %c256_i32_275 : i32 to vector<1x256xi32>
      %752 = arith.select %750, %748, %751 : vector<1x256xi1>, vector<1x256xi32>
      %cst_276 = arith.constant dense<2147483647> : vector<1xi32>
      %753 = vector.multi_reduction <minsi>, %752, %cst_276 [1] : vector<1x256xi32> to vector<1xi32>
      %754 = vector.shape_cast %753 : vector<1xi32> to vector<1x1xi32>
      %755 = vector.broadcast %arg23 : i32 to vector<1x4xi32>
      %756 = arith.cmpi eq, %373, %755 : vector<1x4xi32>
      %757 = vector.shape_cast %754 : vector<1x1xi32> to vector<1x1xi32>
      %758 = vector.broadcast %757 : vector<1x1xi32> to vector<1x4xi32>
      %759 = arith.select %756, %758, %arg25 : vector<1x4xi1>, vector<1x4xi32>
      scf.yield %754, %759 : vector<1x1xi32>, vector<1x4xi32>
    }
    %c3_i32_142 = arith.constant 3 : i32
    %c0_143 = arith.constant 0 : index
    %c0_144 = arith.constant 0 : index
    %c0_145 = arith.constant 0 : index
    %385 = vector.load %arg18[%c0_143, %c0_144, %c0_145] : memref<1x1x4xi32, #tpu.memory_space<vmem>>, vector<1x1x4xi32>
    %386 = vector.shape_cast %385 : vector<1x1x4xi32> to vector<1x4xi32>
    %387 = vector.shape_cast %384#1 : vector<1x4xi32> to vector<1x1x4xi32>
    tpu.vector_store %arg18[%c0_143, %c0_144, %c0_145], %387 {strides = array<i32>} : memref<1x1x4xi32, #tpu.memory_space<vmem>>, vector<1x1x4xi32>,
    return
  }
  func.func @transform_0(%arg0: i32, %arg1: memref<2xi32, #tpu.memory_space<smem>>) -> (i32, i32, i32) {
    %c0_i32 = arith.constant 0 : i32
    %c0_i32_0 = arith.constant 0 : i32
    %c0_i32_1 = arith.constant 0 : i32
    return %arg0, %c0_i32, %c0_i32_0 : i32, i32, i32
  }
  func.func @transform_1(%arg0: i32, %arg1: memref<2xi32, #tpu.memory_space<smem>>) -> (i32, i32) {
    %c0_i32 = arith.constant 0 : i32
    %c0_i32_0 = arith.constant 0 : i32
    %c0_i32_1 = arith.constant 0 : i32
    return %c0_i32, %c0_i32_0 : i32, i32
  }
  func.func @transform_2(%arg0: i32, %arg1: memref<2xi32, #tpu.memory_space<smem>>) -> (i32, i32) {
    %c0_i32 = arith.constant 0 : i32
    %c0_i32_0 = arith.constant 0 : i32
    %c0_i32_1 = arith.constant 0 : i32
    return %c0_i32, %c0_i32_0 : i32, i32
  }
  func.func @transform_3(%arg0: i32, %arg1: memref<2xi32, #tpu.memory_space<smem>>) -> (i32, i32) {
    %c0_i32 = arith.constant 0 : i32
    %c0_i32_0 = arith.constant 0 : i32
    %c0_i32_1 = arith.constant 0 : i32
    return %c0_i32, %c0_i32_0 : i32, i32
  }
  func.func @transform_4(%arg0: i32, %arg1: memref<2xi32, #tpu.memory_space<smem>>) -> (i32, i32) {
    %c0_i32 = arith.constant 0 : i32
    %c0_i32_0 = arith.constant 0 : i32
    %c0_i32_1 = arith.constant 0 : i32
    return %c0_i32, %c0_i32_0 : i32, i32
  }
  func.func @transform_5(%arg0: i32, %arg1: memref<2xi32, #tpu.memory_space<smem>>) -> (i32, i32) {
    %c0_i32 = arith.constant 0 : i32
    %c0_i32_0 = arith.constant 0 : i32
    %c0_i32_1 = arith.constant 0 : i32
    return %c0_i32, %c0_i32_0 : i32, i32
  }
  func.func @transform_6(%arg0: i32, %arg1: memref<2xi32, #tpu.memory_space<smem>>) -> (i32, i32) {
    %c0_i32 = arith.constant 0 : i32
    %c0_i32_0 = arith.constant 0 : i32
    %c0_i32_1 = arith.constant 0 : i32
    return %c0_i32, %c0_i32_0 : i32, i32
  }
  func.func @transform_7(%arg0: i32, %arg1: memref<2xi32, #tpu.memory_space<smem>>) -> (i32, i32) {
    %c0_i32 = arith.constant 0 : i32
    %c0_i32_0 = arith.constant 0 : i32
    %c0_i32_1 = arith.constant 0 : i32
    return %c0_i32, %c0_i32_0 : i32, i32
  }
  func.func @transform_8(%arg0: i32, %arg1: memref<2xi32, #tpu.memory_space<smem>>) -> (i32, i32, i32) {
    %c0_i32 = arith.constant 0 : i32
    %c0_i32_0 = arith.constant 0 : i32
    %c0_i32_1 = arith.constant 0 : i32
    %c0_i32_2 = arith.constant 0 : i32
    return %c0_i32, %c0_i32_0, %c0_i32_1 : i32, i32, i32
  }
  func.func @transform_9(%arg0: i32, %arg1: memref<2xi32, #tpu.memory_space<smem>>) -> (i32, i32, i32) {
    %c0_i32 = arith.constant 0 : i32
    %c0_i32_0 = arith.constant 0 : i32
    %c0_i32_1 = arith.constant 0 : i32
    %c0_i32_2 = arith.constant 0 : i32
    return %c0_i32, %c0_i32_0, %c0_i32_1 : i32, i32, i32
  }
  func.func @transform_10(%arg0: i32, %arg1: memref<2xi32, #tpu.memory_space<smem>>) -> (i32, i32, i32) {
    %c0_i32 = arith.constant 0 : i32
    %c0_i32_0 = arith.constant 0 : i32
    %c0_i32_1 = arith.constant 0 : i32
    %c0_i32_2 = arith.constant 0 : i32
    return %c0_i32, %c0_i32_0, %c0_i32_1 : i32, i32, i32
  }
  func.func @transform_11(%arg0: i32, %arg1: memref<2xi32, #tpu.memory_space<smem>>) -> (i32, i32, i32) {
    %c0_i32 = arith.constant 0 : i32
    %c0_i32_0 = arith.constant 0 : i32
    %c0_i32_1 = arith.constant 0 : i32
    %c0_i32_2 = arith.constant 0 : i32
    return %c0_i32, %c0_i32_0, %c0_i32_1 : i32, i32, i32
  }
  func.func @transform_12(%arg0: i32, %arg1: memref<2xi32, #tpu.memory_space<smem>>) -> (i32, i32, i32) {
    %c0_i32 = arith.constant 0 : i32
    %c0_i32_0 = arith.constant 0 : i32
    %c0_i32_1 = arith.constant 0 : i32
    %c0_i32_2 = arith.constant 0 : i32
    return %c0_i32, %c0_i32_0, %c0_i32_1 : i32, i32, i32
  }
  func.func @transform_13(%arg0: i32, %arg1: memref<2xi32, #tpu.memory_space<smem>>) -> (i32, i32, i32) {
    %c0_i32 = arith.constant 0 : i32
    %c0_i32_0 = arith.constant 0 : i32
    %c0_i32_1 = arith.constant 0 : i32
    %c0_i32_2 = arith.constant 0 : i32
    return %c0_i32, %c0_i32_0, %c0_i32_1 : i32, i32, i32
  }
  func.func @transform_14(%arg0: i32, %arg1: memref<2xi32, #tpu.memory_space<smem>>) -> (i32, i32) {
    %c0_i32 = arith.constant 0 : i32
    %c0_i32_0 = arith.constant 0 : i32
    %c0_i32_1 = arith.constant 0 : i32
    return %c0_i32, %c0_i32_0 : i32, i32
  }
  func.func @transform_15(%arg0: i32, %arg1: memref<2xi32, #tpu.memory_space<smem>>) -> (i32, i32) {
    %c0_i32 = arith.constant 0 : i32
    %c0_i32_0 = arith.constant 0 : i32
    %c0_i32_1 = arith.constant 0 : i32
    return %c0_i32, %c0_i32_0 : i32, i32
  }
  func.func @transform_16(%arg0: i32, %arg1: memref<2xi32, #tpu.memory_space<smem>>) -> (i32, i32, i32) {
    %c0_i32 = arith.constant 0 : i32
    %c0_i32_0 = arith.constant 0 : i32
    %c0_i32_1 = arith.constant 0 : i32
    return %arg0, %c0_i32, %c0_i32_0 : i32, i32, i32
  }
}

</mosaic_0001>

<bundles_post_ra>
// kernel: generate_batch.1
= control target key start
LH: loop header
LB: loop body
LE: loop exit
PB: predicated region body
PF: predicated region fallthrough
CT: control target
= control target key end

     0   :  { %s10266_s0 = inlined_call_operand.vmem [shape: s32[2], index: 0, kind: input, shape index: {}]   ;;  %s10267_s1 = inlined_call_operand.vmem [shape: f32[2,32,64], index: 1, kind: input, shape index: {}]   ;;  %s10268_s2 = inlined_call_operand.vmem [shape: bf16[256,64], index: 2, kind: input, shape index: {}]   ;;  %s10269_s3 = inlined_call_operand.vmem [shape: f32[32,64], index: 3, kind: input, shape index: {}]   ;;  %s10270_s4 = inlined_call_operand.vmem [shape: f32[32,64], index: 4, kind: input, shape index: {}]   ;;  %s10271_s5 = inlined_call_operand.vmem [shape: f32[32,32], index: 5, kind: input, shape index: {}]   ;;  %s10272_s6 = inlined_call_operand.vmem [shape: f32[32,32], index: 6, kind: input, shape index: {}]   ;;  %s10273_s7 = inlined_call_operand.vmem [shape: bf16[64,64], index: 7, kind: input, shape index: {}]   ;;  %s10274_s8 = inlined_call_operand.vmem [shape: bf16[32,32], index: 8, kind: input, shape index: {}]   ;;  %s10275_s9 = inlined_call_operand.vmem [shape: f32[2,1,64], index: 9, kind: input, shape index: {}]   ;;  %s10276_s10 = inlined_call_operand.vmem [shape: bf16[2,64,128], index: 10, kind: input, shape index: {}]   ;;  %s10277_s11 = inlined_call_operand.vmem [shape: bf16[2,64,64], index: 11, kind: input, shape index: {}]   ;;  %s10278_s12 = inlined_call_operand.vmem [shape: f32[2,1,64], index: 12, kind: input, shape index: {}]   ;;  %s10279_s13 = inlined_call_operand.vmem [shape: bf16[2,64,256], index: 13, kind: input, shape index: {}]   ;;  %s10280_s14 = inlined_call_operand.vmem [shape: bf16[2,128,64], index: 14, kind: input, shape index: {}]   ;;  %s10281_s15 = inlined_call_operand.vmem [shape: f32[1,64], index: 15, kind: input, shape index: {}]   ;;  %s10282_s16 = inlined_call_operand.vmem [shape: bf16[64,256], index: 16, kind: input, shape index: {}]   ;;  %s10283_s17 = inlined_call_operand.hbm [shape: s32[2,1,4], index: 17, kind: output, shape index: {}]  }
   0x1   :  { %10325 = sst [smem:[#allocation35_spill]] %s10266_s0 }
   0x2   :  { %10326 = sst [smem:[#allocation36_spill]] %s10267_s1 }
   0x3   :  { %10327 = sst [smem:[#allocation37_spill]] %s10268_s2 }
   0x4   :  { %10328 = sst [smem:[#allocation38_spill]] %s10269_s3 }
   0x5   :  { %10329 = sst [smem:[#allocation39_spill]] %s10273_s7 }
   0x6   :  { %s10330_s26 = sld [smem:[#allocation35_spill]] }
   0xc   :  { %s22_s2 = sshll.u32 %s10330_s26, 4  ;;  %s23_s2 = int_to_ptr.vmem [resolvable:$true] %s22_s2 }
   0xd   :  { %s8128_s27 = scalar_lea.vmem %s23_s2, 16  ;;  %p8133_p1 = scmp.lt.s32.totalorder %s23_s2, %s23_s2 }
   0xe   :  { %p8129_p0 = scmp.ne.s32.totalorder %s23_s2, %s8128_s27  ;;  %p8134_p2 = scmp.lt.s32.totalorder %s8128_s27, %s8128_s27 }
  0x10   :  { %p8135_p3 = por %p8134_p2, %p8133_p1 }
  0x12   :  { %p8136_p4 = pnand %p8135_p3, %p8129_p0 }
  0x14   :  { %8139 = shalt.err (!%p8136_p4)  }
  0x15   :  { %s8228_s28 = smov [#allocation7]  }
  0x16   :  { %25 = dma.vmem_to_smem %s23_s2, 16, %s8228_s28, [#allocation6] }
  0x17   :  { %8194 = dma.done.wait [#allocation6], 16 }
  0x18   :  { %8195 = vsyncadd [#allocation6], 4294967280 }
  0x19   :  { %27 = sfence }
  0x1a   :  { %28 = vsyncpa [#allocation9], 0 }
  0x1b   :  { %30 = vsyncpa [#allocation9 + $0x1], 0  ;;  %s8343_s29 = smov 0   ;;  %s8345_s0 = smov 0  }
  0x1c   :  { %s8347_s30 = smov 0   ;;  %s8349_s18 = smov 0  }
  0x1d LB: > { %10331 = sst [smem:[#allocation12_spill]] %s8202_s29  ;;  %s8364_s2 = sadd.s32 4294967295, %s8214_s18   ;;  %s8214_s18 = sphi %s8349_s18, %s10399_s18   ;;  %s8210_s30 = sphi %s8347_s30, %s10401_s30   ;;  %s8206_s0 = sphi %s8345_s0, %s10403_s0   ;;  %s8202_s29 = sphi %s8343_s29, %s10402_s29  }
  0x1e   : > { %10332 = sst [smem:[#allocation13_spill]] %s8210_s30  ;;  %s6464_s19 = sadd.s32 4294967294, %s8214_s18  }
  0x1f   : > { %s8368_s1 = sadd.s32 1, %s8214_s18   ;;  %s384_s20 = sadd.s32 1, %s8210_s30 }
  0x20   : > { %10333 = sst [smem:[#allocation14_spill]] %s8368_s1  ;;  %s381_s21 = ssub.s32 %s8214_s18, %s8368_s1 }
  0x21   : > { %p394_p5 = scmp.ne.s32.totalorder %s8210_s30, %s8206_s0  ;;  %p382_p6 = scmp.eq.s32.totalorder %s381_s21, 0 }
  0x22   : > { %p395_p7 = scmp.eq.s32.totalorder %s8364_s2, 1  ;;  %p400_p8 = scmp.ne.s32.totalorder %s8206_s0, %s8202_s29 }
  0x23   : > { %p401_p9 = scmp.eq.s32.totalorder %s6464_s19, 1  ;;  %p6467_p12 = scmp.ge.s32.totalorder %s8214_s18, 1 }
  0x24   : > { %s8379_s22 = scalar_select %p382_p6, %s8210_s30, %s384_s20  }
  0x25   : > { %p8381_p10 = por %p395_p7, %p394_p5  ;;  %p8385_p11 = por %p401_p9, %p400_p8 }
  0x26   : > { %10334 = sst [smem:[#allocation15_spill]] %s8379_s22  ;;  %p472_p13 = scmp.lt.s32.totalorder %s8214_s18, 3 }
  0x27   : > { %s10336_s24 = scalar_select %p8385_p11, 1, 0 }
  0x28   : > { %p473_p0 = pnand %p6467_p12, %p472_p13 }
  0x29   : > { %10337 = sst [smem:[#allocation16_spill]] %s10336_s24 }
  0x2a   : > { %476 = sbr.rel (%p473_p0) target bundleno = 15710 (0x3d5e), region = 84 }
  0x2f   : > { %p521_p1 = scmp.lt.s32.totalorder %s8364_s2, 1  ;;  %s10338_s19 = sld [smem:[#allocation36_spill]]  ;;  %vm611_vm0 = vcmask 523264   ;;  %v7732_v12 = vld [vmem:[%s10276_s10 + $0x18] sm:$0xff]   ;;  %v7733_v13 = vld [vmem:[%s10276_s10 + $0x10] sm:$0xff]   ;;  %v7734_v14 = vld [vmem:[%s10276_s10 + $0x8] sm:$0xff]  }
  0x30   : > { %7072 = vmatprep.subr.bf16.mxu0 %v7732_v12  ;;  %v7735_v15 = vld [vmem:[%s10276_s10] sm:$0xff]   ;;  %s10339_s7 = sld [smem:[#allocation39_spill]]  ;;  %v8455_v47 = vld [vmem:[%s10274_s8 + $0x8] sm:$0xff]   ;;  %s10288_s22 = smov 64   ;;  %v584_v55 = vld [vmem:[%s10271_s5 + $0x10] sm:$0xff]  ;;  %vm843_vm1 = vcmask 261120  }
  0x31   : > { %s522_s25 = scalar_select %p521_p1, %s8364_s2, 1  ;;  %7073 = vmatpush3.bf16.msra.mxu0 %v7732_v12  ;;  %v6470_v34 = vld [vmem:[%s10275_s9] ss:$0 sm:$0xff]  ;;  %v585_v56 = vld [vmem:[%s10271_s5 + $0x18] sm:$0xff]  ;;  %v580_v59 = vld [vmem:[%s10270_s4 + $0x10] sm:$0xff]  ;;  %vm993_vm2 = vcmask 130048  }
  0x32   : > { %7074 = vmatprep.subr.bf16.mxu0 %v7733_v13  ;;  %v8460_v48 = vld [vmem:[%s10274_s8] sm:$0xff]   ;;  %s10345_s3 = sld [smem:[#allocation38_spill]]  ;;  %s10346_s28 = smov 64  }
  0x33   : > { %s6801_s26 = sshll.u32 %s522_s25, 5  ;;  %10344 = vst [vmem:[#allocation21_spill] sm:$0xff] %v8460_v48  ;;  %v578_v62 = vld [vmem:[%s10270_s4] sm:$0xff]  ;;  %s8615_s27 = sld [smem:[#allocation7 + %s8364_s2]] }
  0x34   : > { %s10301_s30 = smov 32   ;;  %s10299_s1 = smov 112  }
  0x35   : > { %s8396_s20 = scalar_lea.vmem %s10338_s19, %s6801_s26  ;;  %7075 = vmatpush3.bf16.msra.mxu0 %v7733_v13  ;;  %s10297_s26 = smov 48  }
  0x36   : > { %v551_v0 = vld [vmem:[%s8396_s20 + $0x10] sm:$0xff]  ;;  %v549_v1 = vld [vmem:[%s8396_s20] sm:$0xff]  ;;  %v552_v2 = vld [vmem:[%s8396_s20 + $0x18] sm:$0xff]  ;;  %7076 = vmatprep.subr.bf16.mxu0 %v7734_v14  ;;  %s10295_s24 = smov 96   ;;  %s10293_s21 = smov 80  }
  0x37   : > { %v609_v3 = vmul.f32 %v551_v0, %v551_v0  ;;  %v607_v4 = vmul.f32 %v549_v1, %v549_v1  ;;  %v610_v5 = vmul.f32 %v552_v2, %v552_v2  ;;  %v550_v6 = vld [vmem:[%s8396_s20 + $0x8] sm:$0xff]  ;;  %v8422_v16 = vld [vmem:[%s10339_s7 + $0x18] sm:$0xff]   ;;  %v8427_v17 = vld [vmem:[%s10339_s7 + $0x10] sm:$0xff]   ;;  %s10291_s25 = smov 16   ;;  %s10351_s29 = smov 80  }
  0x38   : > { %v608_v7 = vmul.f32 %v550_v6, %v550_v6  ;;  %10340 = vst [vmem:[#allocation17_spill] sm:$0xff] %v8422_v16  ;;  %10341 = vst [vmem:[#allocation18_spill] sm:$0xff] %v8427_v17  ;;  %7084 = vmatprep.subr.bf16.mxu1 %v8422_v16  ;;  %v8441_v45 = vld [vmem:[%s10339_s7 + $0x8] sm:$0xff]   ;;  %v8448_v46 = vld [vmem:[%s10339_s7] sm:$0xff]  }
  0x39   : > { %v618_v8 = vsel %vm611_vm0, %v609_v3, 0.0  ;;  %v612_v9 = vsel %vm611_vm0, %v607_v4, 0.0  ;;  %v621_v10 = vsel %vm611_vm0, %v610_v5, 0.0  ;;  %7077 = vmatpush3.bf16.msra.mxu0 %v7734_v14  ;;  %7085 = vmatpush3.bf16.msra.mxu1 %v8422_v16  ;;  %10342 = vst [vmem:[#allocation19_spill] sm:$0xff] %v8441_v45  ;;  %10343 = vst [vmem:[#allocation20_spill] sm:$0xff] %v8448_v46  ;;  %v576_v61 = vld [vmem:[%s10345_s3 + $0x10] sm:$0xff] }
  0x3a   : > { %619 = vadd.xlane.f32.xlu1 %v618_v8  ;;  %613 = vadd.xlane.f32.xlu0 %v612_v9  ;;  %v615_v11 = vsel %vm611_vm0, %v608_v7, 0.0  ;;  %v574_v3 = vld [vmem:[%s10345_s3] sm:$0xff]  ;;  %v575_v5 = vld [vmem:[%s10345_s3 + $0x8] sm:$0xff] }
  0x3b   : > { %7078 = vmatprep.subr.bf16.mxu0 %v7735_v15  ;;  %7086 = vmatprep.subr.bf16.mxu1 %v8427_v17 }
  0x3d   : > { %7079 = vmatpush3.bf16.msra.mxu0 %v7735_v15  ;;  %7087 = vmatpush3.bf16.msra.mxu1 %v8427_v17 }
  0x3e   : > { %622 = vadd.xlane.f32.xlu1 %v621_v10  ;;  %616 = vadd.xlane.f32.xlu0 %v615_v11 }
  0x3f   : > { %7088 = vmatprep.subr.bf16.mxu1 %v8441_v45  ;;  %7096 = vmatprep.subr.bf16.mxu0 %v8455_v47 }
  0x41   : > { %7089 = vmatpush3.bf16.msra.mxu1 %v8441_v45 }
  0x42   : > { %7090 = vmatprep.subr.bf16.mxu1 %v8448_v46 }
  0x45   : > { %7091 = vmatpush3.bf16.msra.mxu1 %v8448_v46 }
  0xc3   : > { %v620_v18 = vpop.xlane.xlu1 %619  ;;  %v614_v19 = vpop.xlane.xlu0 %613 }
  0xc4   : > { %v627_v20 = vmul.f32 0.015625, %v620_v18  ;;  %v625_v21 = vmul.f32 0.015625, %v614_v19 }
  0xc6   : > { %v631_v22 = vadd.f32 1e-05, %v627_v20  ;;  %v629_v23 = vadd.f32 1e-05, %v625_v21 }
  0xc7   : > { %v623_v24 = vpop.xlane.xlu1 %622  ;;  %v617_v25 = vpop.xlane.xlu0 %616 }
  0xc8   : > { %7806 = vrsqrt.f32 %v631_v22  ;;  %v628_v26 = vmul.f32 0.015625, %v623_v24  ;;  %v626_v27 = vmul.f32 0.015625, %v617_v25 }
  0xc9   : > { %7808 = vrsqrt.f32 %v629_v23  ;;  %v588_v23 = vld [vmem:[%s10272_s6 + $0x10] sm:$0xff] }
  0xca   : > { %v632_v28 = vadd.f32 1e-05, %v628_v26  ;;  %v630_v29 = vadd.f32 1e-05, %v626_v27  ;;  %v589_v27 = vld [vmem:[%s10272_s6 + $0x18] sm:$0xff] }
  0xcc   : > { %7810 = vrsqrt.f32 %v632_v28 }
  0xcd   : > { %7812 = vrsqrt.f32 %v630_v29  ;;  %v582_v29 = vld [vmem:[%s10271_s5] sm:$0xff] }
  0xd5   : > { %v7807_v30 = vpop.eup %7806 }
  0xd6   : > { %v7809_v31 = vpop.eup %7808  ;;  %v639_v32 = vmul.f32 %v7807_v30, %v551_v0  ;;  %v577_v0 = vld [vmem:[%s10345_s3 + $0x18] sm:$0xff] }
  0xd7   : > { %v637_v35 = vmul.f32 %v7809_v31, %v549_v1  ;;  %v581_v1 = vld [vmem:[%s10270_s4 + $0x18] sm:$0xff]  ;;  %v586_v31 = vld [vmem:[%s10272_s6] sm:$0xff] }
  0xd8   : > { %v649_v39 = vmul.f32 %v6470_v34, %v639_v32  ;;  %v583_v32 = vld [vmem:[%s10271_s5 + $0x8] sm:$0xff] }
  0xd9   : > { %v7811_v33 = vpop.eup %7810  ;;  %v647_v41 = vmul.f32 %v6470_v34, %v637_v35 }
  0xda   : > { %v7813_v36 = vpop.eup %7812  ;;  %v640_v37 = vmul.f32 %v7811_v33, %v552_v2 }
  0xdb   : > { %v638_v38 = vmul.f32 %v7813_v36, %v550_v6  ;;  %v579_v6 = vld [vmem:[%s10270_s4 + $0x8] sm:$0xff] }
  0xdc   : > { %v650_v40 = vmul.f32 %v6470_v34, %v640_v37 }
  0xdd   : > { %v648_v42 = vmul.f32 %v6470_v34, %v638_v38  ;;  %v587_v34 = vld [vmem:[%s10272_s6 + $0x8] sm:$0xff] }
  0xde   : > { %v652_v43 = vpack.c.bf16 %v650_v40, %v649_v39 }
  0xdf   : > { %v651_v44 = vpack.c.bf16 %v648_v42, %v647_v41 }
  0xe1   : > { %7080 = vmatprep.mubr.msk.bf16.mxu0 %vm611_vm0, %v651_v44 }
  0xe2   : > { %7081 = vmatmul.mubr.msk.bf16.vlgmr.msra.gmra.mxu0 %vm611_vm0, %v652_v43 }
  0xe3   : > { %7097 = vmatpush3.bf16.msra.mxu0 %v8455_v47 }
  0xe4   : > { %7098 = vmatprep.subr.bf16.mxu0 %v8460_v48 }
  0xe7   : > { %7099 = vmatpush3.bf16.msra.mxu0 %v8460_v48 }
 0x1a2   : > { %v8466_v49 = vpop.f32.mrf.mxu0 }
 0x1a3   : > { %v815_v7 = vmul.f32 %v8466_v49, %v576_v61 }
 0x1a4   : > { %v8468_v50 = vpop.f32.mrf.mxu0 }
 0x1a5   : > { %v813_v11 = vmul.f32 %v8468_v50, %v574_v3 }
 0x1a6   : > { %v8470_v51 = vpop.f32.mrf.mxu0 }
 0x1a7   : > { %v8474_v52 = vpack.c.bf16 %v8470_v51, %v8466_v49  ;;  %v816_v9 = vmul.f32 %v8470_v51, %v577_v0 }
 0x1a8   : > { %v8476_v53 = vpop.f32.mrf.mxu0 }
 0x1a9   : > { %v8480_v54 = vpack.c.bf16 %v8476_v53, %v8468_v50  ;;  %829 = vrot.lane.b32.xlu1 %v8474_v52, %s10288_s22  ;;  %v814_v15 = vmul.f32 %v8476_v53, %v575_v5  ;;  %v553_v5 = vlaneseq }
 0x1ab   : > { %827 = vrot.lane.b32.xlu0 %v8480_v54, %s10288_s22  ;;  %7092 = vmatprep.mubr.msk.bf16.mxu1 %vm611_vm0, %v8480_v54 }
 0x1ac   : > { %7093 = vmatmul.mubr.msk.bf16.vlgmr.msra.gmra.mxu1 %vm611_vm0, %v8474_v52 }
 0x1ad   : > { %907 = vrot.lane.b32.xlu1 %v584_v55, %s10288_s22 }
 0x1b1   : > { %909 = vrot.lane.b32.xlu1 %v585_v56, %s10288_s22  ;;  %s10348_s22 = smov 112  }
 0x21b   : > { %v830_v58 = vpop.permute.xlu1 %829 }
 0x21d   : > { %v828_v57 = vpop.permute.xlu0 %827 }
 0x21e   : > { %7100 = vmatprep.mubr.msk.bf16.mxu0 %vm843_vm1, %v828_v57 }
 0x21f   : > { %7101 = vmatmul.mubr.msk.bf16.vlgmr.msra.gmra.mxu0 %vm843_vm1, %v830_v58  ;;  %v8558_v37 = vpop.permute.xlu1 %907 }
 0x220   : > { %v917_v40 = vmul.f32 %v8466_v49, %v8558_v37 }
 0x223   : > { %v8560_v38 = vpop.permute.xlu1 %909 }
 0x224   : > { %v918_v41 = vmul.f32 %v8470_v51, %v8560_v38 }
 0x26c   : > { %v7094_v60 = vpop.f32.mrf.mxu1 }
 0x26d   : > { %v819_v2 = vmul.f32 %v7094_v60, %v580_v59 }
 0x26e   : > { %v798_v63 = vpop.f32.mrf.mxu1 }
 0x26f   : > { %v817_v8 = vmul.f32 %v798_v63, %v578_v62  ;;  %v823_v13 = vadd.f32 %v819_v2, %v815_v7 }
 0x270   : > { %v7095_v4 = vpop.f32.mrf.mxu1 }
 0x271   : > { %v820_v10 = vmul.f32 %v7095_v4, %v581_v1  ;;  %v821_v19 = vadd.f32 %v817_v8, %v813_v11  ;;  %v8622_v8 = vand.u32 127, %v553_v5 }
 0x272   : > { %v801_v12 = vpop.f32.mrf.mxu1 }
 0x273   : > { %v824_v14 = vadd.f32 %v820_v10, %v816_v9  ;;  %v818_v18 = vmul.f32 %v801_v12, %v579_v6  ;;  %v8617_v6 = vshrl.u32 %v553_v5, 7  ;;  %v564_v9 = vstv %s8615_s27 }
 0x274   : > { %vm565_vm4 = vcmp.lt.s32.totalorder %v8622_v8, %v564_v9  ;;  %v8230_v12 = vmov -1e+09  }
 0x275   : > { %v8528_v20 = vpack.c.bf16 %v824_v14, %v823_v13  ;;  %v822_v21 = vadd.f32 %v818_v18, %v814_v15  ;;  %v8620_v7 = vadd.s32 16, %v8617_v6  ;;  %v8629_v10 = vadd.s32 24, %v8617_v6 }
 0x276   : > { %vm560_vm5 = vcmp.le.s32.totalorder %v8622_v8, %v8617_v6  ;;  %v8634_v11 = vadd.s32 8, %v8617_v6 }
 0x277   : > { %v8530_v22 = vpack.c.bf16 %v822_v21, %v821_v19  ;;  %vm562_vm3 = vcmp.le.s32.totalorder %v8622_v8, %v8620_v7  ;;  %vm566_vm7 = vmand %vm560_vm5, %vm565_vm4  ;;  %vm563_vm8 = vcmp.le.s32.totalorder %v8622_v8, %v8629_v10 }
 0x278   : > { %vm568_vm6 = vmand %vm562_vm3, %vm565_vm4  ;;  %vm561_vm9 = vcmp.le.s32.totalorder %v8622_v8, %v8634_v11  ;;  %v8642_v15 = vsel %vm566_vm7, 0.0, %v8230_v12  ;;  %vm3931_vm3 = vcmask 1040384  }
 0x279   : > { %7108 = vmatprep.mubr.msk.bf16.mxu1 %vm993_vm2, %v8530_v22  ;;  %v8638_v13 = vsel %vm568_vm6, 0.0, %v8230_v12  ;;  %vm569_vm10 = vmand %vm563_vm8, %vm565_vm4  ;;  %vm3960_vm8 = vcmp.eq.s32.totalorder %v8622_v8, 0 }
 0x27a   : > { %vm567_vm11 = vmand %vm561_vm9, %vm565_vm4 }
 0x2df   : > { %v7102_v24 = vpop.f32.mrf.mxu0 }
 0x2e0   : > { %v921_v25 = vmul.f32 %v7102_v24, %v588_v23  ;;  %v8647_v24 = vsel %vm569_vm10, 0.0, %v8230_v12 }
 0x2e1   : > { %v884_v26 = vpop.f32.mrf.mxu0 }
 0x2e2   : > { %931 = vrot.lane.b32.xlu0 %v921_v25, %s10346_s28  ;;  %v919_v33 = vmul.f32 %v884_v26, %v586_v31  ;;  %v8649_v26 = vsel %vm567_vm11, 0.0, %v8230_v12 }
 0x2e3   : > { %v7103_v28 = vpop.f32.mrf.mxu0 }
 0x2e4   : > { %v922_v30 = vmul.f32 %v7103_v28, %v589_v27 }
 0x2e5   : > { %v887_v35 = vpop.f32.mrf.mxu0 }
 0x2e6   : > { %903 = vrot.lane.b32.xlu0 %v582_v29, %s10346_s28  ;;  %933 = vrot.lane.b32.xlu1 %v922_v30, %s10346_s28  ;;  %v920_v36 = vmul.f32 %v887_v35, %v587_v34 }
 0x2ea   : > { %927 = vrot.lane.b32.xlu0 %v919_v33, %s10346_s28  ;;  %905 = vrot.lane.b32.xlu1 %v583_v32, %s10346_s28 }
 0x2ee   : > { %929 = vrot.lane.b32.xlu1 %v920_v36, %s10346_s28 }
 0x354   : > { %v932_v39 = vpop.permute.xlu0 %931 }
 0x355   : > { %v8568_v44 = vadd.f32 %v932_v39, %v917_v40 }
 0x358   : > { %v8566_v42 = vpop.permute.xlu0 %903  ;;  %v934_v43 = vpop.permute.xlu1 %933 }
 0x359   : > { %v8570_v55 = vadd.f32 %v934_v43, %v918_v41  ;;  %v915_v59 = vmul.f32 %v8566_v42, %v8468_v50 }
 0x35b   : > { %v8574_v56 = vpack.c.bf16 %v8570_v55, %v8568_v44 }
 0x35c   : > { %v8576_v57 = vpop.permute.xlu1 %905  ;;  %v928_v58 = vpop.permute.xlu0 %927 }
 0x35d   : > { %991 = vrot.lane.b32.xlu0 %v8574_v56, %s10346_s28  ;;  %v916_v60 = vmul.f32 %v8576_v57, %v8476_v53  ;;  %v8584_v62 = vadd.f32 %v928_v58, %v915_v59 }
 0x360   : > { %v930_v61 = vpop.permute.xlu1 %929 }
 0x361   : > { %v8586_v63 = vadd.f32 %v930_v61, %v916_v60 }
 0x363   : > { %v8590_v0 = vpack.c.bf16 %v8586_v63, %v8584_v62 }
 0x365   : > { %989 = vrot.lane.b32.xlu1 %v8590_v0, %s10346_s28 }
 0x3cf   : > { %v8594_v1 = vpop.permute.xlu0 %991 }
 0x3d0   : > { %7632 = vmatprep.subr.msk.bf16.mxu1 %vm993_vm2, %v8594_v1  ;;  %v8600_v2 = vsel %vm993_vm2, %v8594_v1, 0 }
 0x3d1   : > { %7105 = vmatpush3.bf16.xpose.msra.mxu1 %v8600_v2 }
 0x3d7   : > { %v8603_v3 = vpop.permute.xlu1 %989 }
 0x3d8   : > { %7633 = vmatprep.subr.msk.bf16.mxu1 %vm993_vm2, %v8603_v3  ;;  %v8609_v4 = vsel %vm993_vm2, %v8603_v3, 0 }
 0x3d9   : > { %7107 = vmatpush3.bf16.xpose.msra.mxu1 %v8609_v4 }
 0x3e0   : > { %7109 = vmatmul.mubr.msk.bf16.vlgmr.msra.gmra.mxu1 %vm993_vm2, %v8528_v20 }
 0x4a0   : > { %v7110_v14 = vpop.f32.mrf.mxu1 }
 0x4a1   : > { %v1049_v18 = vadd.f32 %v7110_v14, %v8638_v13 }
 0x4a2   : > { %v1040_v19 = vpop.f32.mrf.mxu1 }
 0x4a3   : > { %v1041_v21 = vadd.f32 %v1040_v19, %v8642_v15  ;;  %v1061_v23 = vsel %vm843_vm1, %v1049_v18, -inf }
 0x4a4   : > { %1062 = vmax.xlane.f32.xlu0 %v1061_v23  ;;  %v7111_v25 = vpop.f32.mrf.mxu1 }
 0x4a5   : > { %v1052_v28 = vadd.f32 %v7111_v25, %v8647_v24  ;;  %v1055_v30 = vsel %vm843_vm1, %v1041_v21, -inf }
 0x4a6   : > { %v1043_v27 = vpop.f32.mrf.mxu1 }
 0x4a7   : > { %v1044_v29 = vadd.f32 %v1043_v27, %v8649_v26  ;;  %v1064_v32 = vsel %vm843_vm1, %v1052_v28, -inf }
 0x4a8   : > { %1056 = vmax.xlane.f32.xlu0 %v1055_v30 }
 0x4a9   : > { %v1058_v31 = vsel %vm843_vm1, %v1044_v29, -inf }
 0x4aa   : > { %1059 = vmax.xlane.f32.xlu1 %v1058_v31 }
 0x4ac   : > { %1065 = vmax.xlane.f32.xlu0 %v1064_v32 }
 0x4bb   : > { %1093 = vrot.lane.b32.xlu1 %v8480_v54, %s10301_s30 }
 0x4bf   : > { %1166 = vrot.lane.b32.xlu1 %v8530_v22, %s10299_s1 }
 0x4c2   : > { %1095 = vrot.lane.b32.xlu0 %v8474_v52, %s10301_s30 }
 0x4c3   : > { %1168 = vrot.lane.b32.xlu1 %v8528_v20, %s10299_s1 }
 0x52d   : > { %v1063_v33 = vpop.xlane.xlu0 %1062 }
 0x52e   : > { %v1069_v34 = vsub.f32 %v1049_v18, %v1063_v33 }
 0x530   : > { %v1075_v43 = vmul.f32 1.442695, %v1069_v34 }
 0x531   : > { %v1057_v35 = vpop.xlane.xlu0 %1056 }
 0x532   : > { %v1067_v36 = vsub.f32 %v1041_v21, %v1057_v35 }
 0x533   : > { %v1060_v39 = vpop.xlane.xlu1 %1059 }
 0x534   : > { %v1071_v40 = vmul.f32 1.442695, %v1067_v36  ;;  %v1068_v41 = vsub.f32 %v1044_v29, %v1060_v39 }
 0x535   : > { %v1066_v58 = vpop.xlane.xlu0 %1065 }
 0x536   : > { %v1073_v59 = vmul.f32 1.442695, %v1068_v41  ;;  %v1070_v60 = vsub.f32 %v1052_v28, %v1066_v58  ;;  %7814 = vpow2.f32 %v1071_v40 }
 0x537   : > { %v1094_v9 = vpop.permute.xlu1 %1093 }
 0x538   : > { %7816 = vpow2.f32 %v1073_v59  ;;  %v1077_v61 = vmul.f32 1.442695, %v1070_v60 }
 0x539   : > { %7818 = vpow2.f32 %v1075_v43  ;;  %v1096_v5 = vpop.permute.xlu0 %1095 }
 0x53a   : > { %7820 = vpow2.f32 %v1077_v61  ;;  %7112 = vmatprep.subr.bf16.mxu0 %v1096_v5  ;;  %7128 = vmatprep.subr.bf16.mxu1 %v1096_v5 }
 0x53b   : > { %7113 = vmatpush3.bf16.msra.mxu0 %v1096_v5  ;;  %7129 = vmatpush3.bf16.msra.mxu1 %v1096_v5  ;;  %v1167_v25 = vpop.permute.xlu1 %1166 }
 0x53c   : > { %7114 = vmatprep.subr.bf16.mxu0 %v1094_v9  ;;  %7130 = vmatprep.subr.bf16.mxu1 %v1094_v9 }
 0x53f   : > { %7115 = vmatpush3.bf16.msra.mxu0 %v1094_v9  ;;  %7131 = vmatpush3.bf16.msra.mxu1 %v1094_v9 }
 0x540   : > { %7634 = vmatprep.subr.msk.bf16.mxu0 %vm993_vm2, %v8594_v1  ;;  %v1169_v1 = vpop.permute.xlu1 %1168 }
 0x543   : > { %v8666_v12 = vpop.eup %7814 }
 0x545   : > { %v8668_v14 = vpop.eup %7816 }
 0x546   : > { %v8670_v18 = vpop.eup %7818  ;;  %v1091_v19 = vpack.c.bf16 %v8668_v14, %v8666_v12 }
 0x547   : > { %v8674_v21 = vpop.eup %7820 }
 0x548   : > { %7116 = vmatprep.mubr.msk.bf16.mxu0 %vm843_vm1, %v1091_v19  ;;  %v1092_v23 = vpack.c.bf16 %v8674_v21, %v8670_v18 }
 0x54a   : > { %7117 = vmatmul.mubr.msk.bf16.vlgmr.msra.gmra.mxu0 %vm843_vm1, %v1092_v23 }
 0x54b   : > { %7121 = vmatpush3.bf16.xpose.msra.mxu0 %v8600_v2  ;;  %7124 = vmatprep.mubr.msk.bf16.mxu0 %vm993_vm2, %v1167_v25 }
 0x54c   : > { %7635 = vmatprep.subr.msk.bf16.mxu0 %vm993_vm2, %v8603_v3 }
 0x553   : > { %7123 = vmatpush3.bf16.xpose.msra.mxu0 %v8609_v4 }
 0x55a   : > { %7125 = vmatmul.mubr.msk.bf16.vlgmr.msra.gmra.mxu0 %vm993_vm2, %v1169_v1 }
 0x60a   : > { %v8686_v27 = vpop.f32.mrf.mxu0 }
 0x60c   : > { %v8688_v28 = vpop.f32.mrf.mxu0 }
 0x60e   : > { %v8690_v29 = vpop.f32.mrf.mxu0 }
 0x610   : > { %v8692_v30 = vpop.f32.mrf.mxu0 }
 0x61a   : > { %v7126_v31 = vpop.f32.mrf.mxu0 }
 0x61b   : > { %v1219_v3 = vadd.f32 %v7126_v31, %v8638_v13 }
 0x61c   : > { %v1210_v2 = vpop.f32.mrf.mxu0 }
 0x61d   : > { %v1211_v32 = vadd.f32 %v1210_v2, %v8642_v15  ;;  %v1231_v40 = vsel %vm843_vm1, %v1219_v3, -inf }
 0x61e   : > { %v7127_v33 = vpop.f32.mrf.mxu0 }
 0x61f   : > { %v1225_v4 = vsel %vm843_vm1, %v1211_v32, -inf  ;;  %v1222_v36 = vadd.f32 %v7127_v33, %v8647_v24 }
 0x620   : > { %v1213_v34 = vpop.f32.mrf.mxu0  ;;  %1226 = vmax.xlane.f32.xlu0 %v1225_v4 }
 0x621   : > { %v1214_v35 = vadd.f32 %v1213_v34, %v8649_v26  ;;  %v1234_v41 = vsel %vm843_vm1, %v1222_v36, -inf }
 0x623   : > { %v1228_v39 = vsel %vm843_vm1, %v1214_v35, -inf }
 0x624   : > { %1229 = vmax.xlane.f32.xlu1 %v1228_v39  ;;  %1232 = vmax.xlane.f32.xlu0 %v1231_v40 }
 0x628   : > { %1235 = vmax.xlane.f32.xlu0 %v1234_v41  ;;  %v7742_v41 = vld [vmem:[%s10277_s11 + $0x8] sm:$0xff]  }
 0x629   : > { %7136 = vmatprep.subr.bf16.mxu1 %v7742_v41 }
 0x6a9   : > { %v1227_v43 = vpop.xlane.xlu0 %1226 }
 0x6aa   : > { %v1237_v58 = vsub.f32 %v1211_v32, %v1227_v43  ;;  %v1085_v43 = vsel %vm843_vm1, %v8670_v18, 0.0 }
 0x6ac   : > { %v1241_v59 = vmul.f32 1.442695, %v1237_v58  ;;  %v1088_v58 = vsel %vm843_vm1, %v8674_v21, 0.0 }
 0x6ad   : > { %v1230_v60 = vpop.xlane.xlu1 %1229  ;;  %v1233_v61 = vpop.xlane.xlu0 %1232 }
 0x6ae   : > { %v1238_v5 = vsub.f32 %v1214_v35, %v1230_v60  ;;  %v1239_v9 = vsub.f32 %v1219_v3, %v1233_v61  ;;  %7822 = vpow2.f32 %v1241_v59 }
 0x6b0   : > { %v1243_v19 = vmul.f32 1.442695, %v1238_v5  ;;  %v1245_v23 = vmul.f32 1.442695, %v1239_v9 }
 0x6b1   : > { %v1236_v25 = vpop.xlane.xlu0 %1235 }
 0x6b2   : > { %7824 = vpow2.f32 %v1243_v19  ;;  %v1240_v1 = vsub.f32 %v1222_v36, %v1236_v25 }
 0x6b3   : > { %7826 = vpow2.f32 %v1245_v23 }
 0x6b4   : > { %v1247_v31 = vmul.f32 1.442695, %v1240_v1 }
 0x6b6   : > { %7828 = vpow2.f32 %v1247_v31 }
 0x6bb   : > { %v7823_v2 = vpop.eup %7822 }
 0x6bc   : > { %v1249_v36 = vsel %vm843_vm1, %v7823_v2, 0.0 }
 0x6bf   : > { %v7825_v33 = vpop.eup %7824 }
 0x6c0   : > { %v7827_v4 = vpop.eup %7826  ;;  %v1252_v34 = vsel %vm843_vm1, %v7825_v33, 0.0  ;;  %v1261_v32 = vpack.c.bf16 %v7825_v33, %v7823_v2 }
 0x6c1   : > { %1253 = vadd.xlane.f32.xlu1 %v1252_v34  ;;  %v1255_v39 = vsel %vm843_vm1, %v7827_v4, 0.0 }
 0x6c2   : > { %1256 = vadd.xlane.f32.xlu0 %v1255_v39  ;;  %7132 = vmatprep.mubr.msk.bf16.mxu1 %vm843_vm1, %v1261_v32 }
 0x6c3   : > { %v7829_v3 = vpop.eup %7828 }
 0x6c4   : > { %v1258_v35 = vsel %vm843_vm1, %v7829_v3, 0.0  ;;  %v1262_v40 = vpack.c.bf16 %v7829_v3, %v7827_v4 }
 0x6c5   : > { %1259 = vadd.xlane.f32.xlu1 %v1258_v35 }
 0x6c6   : > { %1250 = vadd.xlane.f32.xlu0 %v1249_v36  ;;  %7133 = vmatmul.mubr.msk.bf16.vlgmr.msra.gmra.mxu1 %vm843_vm1, %v1262_v40 }
 0x6c7   : > { %7137 = vmatpush3.bf16.msra.mxu1 %v7742_v41 }
 0x6d6   : > { %1454 = vrot.lane.b32.xlu1 %v8590_v0, %s10297_s26  ;;  %v1079_v0 = vsel %vm843_vm1, %v8666_v12, 0.0 }
 0x6da   : > { %1450 = vrot.lane.b32.xlu1 %v8530_v22, %s10295_s24 }
 0x6dc   : > { %1456 = vrot.lane.b32.xlu0 %v8574_v56, %s10297_s26  ;;  %v1082_v56 = vsel %vm843_vm1, %v8668_v14, 0.0  ;;  %s10353_s26 = smov 16  }
 0x6de   : > { %1452 = vrot.lane.b32.xlu1 %v8528_v20, %s10295_s24  ;;  %s10349_s24 = smov 48  }
 0x6e0   : > { %1693 = vrot.lane.b32.xlu0 %v8530_v22, %s10293_s21 }
 0x6e2   : > { %1695 = vrot.lane.b32.xlu1 %v8528_v20, %s10293_s21  ;;  %v7743_v20 = vld [vmem:[%s10277_s11] sm:$0xff]   ;;  %s10350_s21 = smov 96  }
 0x6e3   : > { %7142 = vmatprep.subr.bf16.mxu0 %v7743_v20 }
 0x6e4   : > { %7143 = vmatpush3.bf16.msra.mxu0 %v7743_v20 }
 0x6ff   : > { %1080 = vadd.xlane.f32.xlu0 %v1079_v0 }
 0x703   : > { %1086 = vadd.xlane.f32.xlu0 %v1085_v43 }
 0x706   : > { %1083 = vadd.xlane.f32.xlu1 %v1082_v56 }
 0x707   : > { %1089 = vadd.xlane.f32.xlu0 %v1088_v58 }
 0x74a   : > { %v1254_v18 = vpop.xlane.xlu1 %1253 }
 0x74b   : > { %v1257_v22 = vpop.xlane.xlu0 %1256  ;;  %7830 = vrcp.f32 %v1254_v18 }
 0x74e   : > { %v1260_v60 = vpop.xlane.xlu1 %1259 }
 0x74f   : > { %v1251_v12 = vpop.xlane.xlu0 %1250  ;;  %7832 = vrcp.f32 %v1260_v60 }
 0x750   : > { %7834 = vrcp.f32 %v1251_v12 }
 0x751   : > { %7836 = vrcp.f32 %v1257_v22 }
 0x752   : > { %v1455_v61 = vpop.permute.xlu1 %1454 }
 0x753   : > { %v1457_v59 = vpop.permute.xlu0 %1456  ;;  %v1465_v58 = vsel %vm993_vm2, %v1455_v61, 0 }
 0x754   : > { %7636 = vmatprep.subr.msk.bf16.mxu1 %vm993_vm2, %v1457_v59  ;;  %v1468_v56 = vsel %vm993_vm2, %v1457_v59, 0 }
 0x756   : > { %v1451_v14 = vpop.permute.xlu1 %1450 }
 0x757   : > { %v1694_v21 = vpop.permute.xlu0 %1693 }
 0x758   : > { %v7831_v25 = vpop.eup %7830 }
 0x75a   : > { %v1453_v5 = vpop.permute.xlu1 %1452 }
 0x75c   : > { %v7833_v31 = vpop.eup %7832 }
 0x75d   : > { %v7835_v33 = vpop.eup %7834 }
 0x75e   : > { %v1696_v2 = vpop.permute.xlu1 %1695  ;;  %v7837_v39 = vpop.eup %7836 }
 0x786   : > { %v7134_v9 = vpop.f32.mrf.mxu1 }
 0x787   : > { %v1324_v40 = vmul.f32 %v7837_v39, %v7134_v9 }
 0x788   : > { %v1081_v19 = vpop.xlane.xlu0 %1080  ;;  %v1303_v23 = vpop.f32.mrf.mxu1 }
 0x789   : > { %v1322_v3 = vmul.f32 %v7835_v33, %v1303_v23  ;;  %7838 = vrcp.f32 %v1081_v19 }
 0x78a   : > { %v7135_v1 = vpop.f32.mrf.mxu1 }
 0x78b   : > { %v1325_v4 = vmul.f32 %v7833_v31, %v7135_v1 }
 0x78c   : > { %v1087_v34 = vpop.xlane.xlu0 %1086  ;;  %v1306_v32 = vpop.f32.mrf.mxu1 }
 0x78d   : > { %v1323_v35 = vmul.f32 %v7831_v25, %v1306_v32  ;;  %7840 = vrcp.f32 %v1087_v34  ;;  %v1327_v0 = vpack.c.bf16 %v1325_v4, %v1324_v40 }
 0x78f   : > { %v1326_v36 = vpack.c.bf16 %v1323_v35, %v1322_v3  ;;  %v1084_v41 = vpop.xlane.xlu1 %1083 }
 0x790   : > { %7842 = vrcp.f32 %v1084_v41  ;;  %v1090_v43 = vpop.xlane.xlu0 %1089 }
 0x791   : > { %7844 = vrcp.f32 %v1090_v43  ;;  %7138 = vmatprep.mubr.msk.bf16.mxu1 %vm993_vm2, %v1326_v36 }
 0x792   : > { %7139 = vmatmul.mubr.msk.bf16.vlgmr.msra.gmra.mxu1 %vm993_vm2, %v1327_v0 }
 0x793   : > { %7149 = vmatpush3.bf16.xpose.msra.mxu1 %v1468_v56  ;;  %7152 = vmatprep.mubr.msk.bf16.mxu1 %vm993_vm2, %v1451_v14 }
 0x794   : > { %7637 = vmatprep.subr.msk.bf16.mxu1 %vm993_vm2, %v1455_v61 }
 0x796   : > { %v7839_v20 = vpop.eup %7838 }
 0x797   : > { %v1158_v60 = vmul.f32 %v7839_v20, %v8688_v28 }
 0x79a   : > { %v7841_v22 = vpop.eup %7840 }
 0x79b   : > { %7151 = vmatpush3.bf16.xpose.msra.mxu1 %v1465_v58  ;;  %v1160_v19 = vmul.f32 %v7841_v22, %v8686_v27 }
 0x79c   : > { %7638 = vmatprep.subr.msk.bf16.mxu1 %vm993_vm2, %v1457_v59 }
 0x79d   : > { %v7843_v12 = vpop.eup %7842 }
 0x79e   : > { %v7845_v18 = vpop.eup %7844  ;;  %v1159_v9 = vmul.f32 %v7843_v12, %v8692_v30 }
 0x79f   : > { %v1161_v23 = vmul.f32 %v7845_v18, %v8690_v29 }
 0x7a0   : > { %v1162_v14 = vpack.c.bf16 %v1159_v9, %v1158_v60 }
 0x7a1   : > { %v1163_v25 = vpack.c.bf16 %v1161_v23, %v1160_v19 }
 0x7a2   : > { %7153 = vmatmul.mubr.msk.bf16.vlgmr.msra.gmra.mxu1 %vm993_vm2, %v1453_v5  ;;  %7144 = vmatprep.mubr.msk.bf16.mxu0 %vm993_vm2, %v1162_v14 }
 0x7a3   : > { %7171 = vmatpush3.bf16.xpose.msra.mxu1 %v1468_v56  ;;  %7174 = vmatprep.mubr.msk.bf16.mxu1 %vm993_vm2, %v1694_v21 }
 0x7a4   : > { %7145 = vmatmul.mubr.msk.bf16.vlgmr.msra.gmra.mxu0 %vm993_vm2, %v1163_v25  ;;  %7639 = vmatprep.subr.msk.bf16.mxu1 %vm993_vm2, %v1455_v61 }
 0x7ab   : > { %7173 = vmatpush3.bf16.xpose.msra.mxu1 %v1465_v58 }
 0x7b2   : > { %7175 = vmatmul.mubr.msk.bf16.vlgmr.msra.gmra.mxu1 %vm993_vm2, %v1696_v2 }
 0x852   : > { %v7140_v28 = vpop.f32.mrf.mxu1 }
 0x854   : > { %v1374_v27 = vpop.f32.mrf.mxu1 }
 0x856   : > { %v7141_v30 = vpop.f32.mrf.mxu1 }
 0x858   : > { %v8752_v29 = vpop.f32.mrf.mxu1 }
 0x862   : > { %v7154_v59 = vpop.f32.mrf.mxu1 }
 0x863   : > { %v1513_v5 = vadd.f32 %v7154_v59, %v8638_v13 }
 0x864   : > { %v7146_v1 = vpop.f32.mrf.mxu0  ;;  %v1504_v31 = vpop.f32.mrf.mxu1 }
 0x865   : > { %v8755_v33 = vadd.f32 %v7146_v1, %v7140_v28  ;;  %v1505_v21 = vadd.f32 %v1504_v31, %v8642_v15  ;;  %v1525_v4 = vsel %vm843_vm1, %v1513_v5, -inf }
 0x866   : > { %1526 = vmax.xlane.f32.xlu0 %v1525_v4  ;;  %v1435_v61 = vpop.f32.mrf.mxu0  ;;  %v7155_v34 = vpop.f32.mrf.mxu1 }
 0x867   : > { %v8759_v2 = vadd.f32 %v1435_v61, %v1374_v27  ;;  %v1516_v32 = vadd.f32 %v7155_v34, %v8647_v24  ;;  %v1519_v41 = vsel %vm843_vm1, %v1505_v21, -inf }
 0x868   : > { %v7147_v39 = vpop.f32.mrf.mxu0  ;;  %v1507_v3 = vpop.f32.mrf.mxu1 }
 0x869   : > { %v8762_v35 = vadd.f32 %v7147_v39, %v7141_v30  ;;  %v1508_v40 = vadd.f32 %v1507_v3, %v8649_v26  ;;  %v1528_v36 = vsel %vm843_vm1, %v1516_v32, -inf }
 0x86a   : > { %1529 = vmax.xlane.f32.xlu1 %v1528_v36  ;;  %1520 = vmax.xlane.f32.xlu0 %v1519_v41 }
 0x86b   : > { %v1522_v0 = vsel %vm843_vm1, %v1508_v40, -inf }
 0x86e   : > { %1523 = vmax.xlane.f32.xlu1 %v1522_v0 }
 0x872   : > { %v7176_v28 = vpop.f32.mrf.mxu1 }
 0x873   : > { %v1746_v41 = vadd.f32 %v7176_v28, %v8638_v13 }
 0x874   : > { %v1737_v27 = vpop.f32.mrf.mxu1 }
 0x875   : > { %v1738_v34 = vadd.f32 %v1737_v27, %v8642_v15 }
 0x877   : > { %v1752_v0 = vsel %vm843_vm1, %v1738_v34, -inf }
 0x87f   : > { %1557 = vrot.lane.b32.xlu1 %v8480_v54, %s10291_s25  ;;  %v7744_v54 = vld [vmem:[%s10277_s11 + $0x10] sm:$0xff]  }
 0x880   : > { %1559 = vrot.lane.b32.xlu0 %v8474_v52, %s10291_s25 }
 0x8ef   : > { %v1527_v43 = vpop.xlane.xlu0 %1526 }
 0x8f0   : > { %v1533_v56 = vsub.f32 %v1513_v5, %v1527_v43  ;;  %v7177_v5 = vpop.f32.mrf.mxu1 }
 0x8f1   : > { %v1749_v43 = vadd.f32 %v7177_v5, %v8647_v24 }
 0x8f2   : > { %v1539_v58 = vmul.f32 1.442695, %v1533_v56  ;;  %v1740_v4 = vpop.f32.mrf.mxu1 }
 0x8f3   : > { %v1530_v20 = vpop.xlane.xlu1 %1529  ;;  %v1521_v22 = vpop.xlane.xlu0 %1520  ;;  %v1741_v3 = vadd.f32 %v1740_v4, %v8649_v26 }
 0x8f4   : > { %7846 = vpow2.f32 %v1539_v58  ;;  %v1534_v12 = vsub.f32 %v1516_v32, %v1530_v20  ;;  %v1531_v18 = vsub.f32 %v1505_v21, %v1521_v22  ;;  %v1758_v58 = vsel %vm843_vm1, %v1746_v41, -inf }
 0x8f5   : > { %v1755_v56 = vsel %vm843_vm1, %v1741_v3, -inf  ;;  %v1761_v20 = vsel %vm843_vm1, %v1749_v43, -inf }
 0x8f6   : > { %v1535_v60 = vmul.f32 1.442695, %v1531_v18  ;;  %v1541_v9 = vmul.f32 1.442695, %v1534_v12 }
 0x8f7   : > { %v1524_v19 = vpop.xlane.xlu1 %1523  ;;  %v8772_v23 = vpop.permute.xlu0 %1559 }
 0x8f8   : > { %v1532_v14 = vsub.f32 %v1508_v40, %v1524_v19  ;;  %7156 = vmatprep.subr.bf16.mxu0 %v8772_v23  ;;  %7848 = vpow2.f32 %v1535_v60 }
 0x8f9   : > { %7157 = vmatpush3.bf16.msra.mxu0 %v8772_v23  ;;  %7850 = vpow2.f32 %v1541_v9 }
 0x8fa   : > { %v1537_v52 = vmul.f32 1.442695, %v1532_v14 }
 0x8fb   : > { %v8779_v25 = vpop.permute.xlu1 %1557 }
 0x8fc   : > { %7852 = vpow2.f32 %v1537_v52  ;;  %7158 = vmatprep.subr.bf16.mxu0 %v8779_v25 }
 0x8fd   : > { %7159 = vmatpush3.bf16.msra.mxu0 %v8779_v25 }
 0x8fe   : > { %7164 = vmatprep.subr.bf16.mxu0 %v7744_v54 }
 0x901   : > { %v7847_v30 = vpop.eup %7846 }
 0x902   : > { %v1549_v59 = vsel %vm843_vm1, %v7847_v30, 0.0 }
 0x903   : > { %1550 = vadd.xlane.f32.xlu0 %v1549_v59 }
 0x905   : > { %v7849_v1 = vpop.eup %7848 }
 0x906   : > { %v1543_v31 = vsel %vm843_vm1, %v7849_v1, 0.0  ;;  %v7851_v21 = vpop.eup %7850 }
 0x907   : > { %1544 = vadd.xlane.f32.xlu1 %v1543_v31  ;;  %v1552_v40 = vsel %vm843_vm1, %v7851_v21, 0.0  ;;  %v1556_v36 = vpack.c.bf16 %v7851_v21, %v7847_v30 }
 0x909   : > { %v7853_v61 = vpop.eup %7852 }
 0x90a   : > { %v1546_v32 = vsel %vm843_vm1, %v7853_v61, 0.0  ;;  %v1555_v39 = vpack.c.bf16 %v7853_v61, %v7849_v1 }
 0x90b   : > { %1547 = vadd.xlane.f32.xlu0 %v1546_v32  ;;  %1553 = vadd.xlane.f32.xlu1 %v1552_v40 }
 0x90c   : > { %7160 = vmatprep.mubr.msk.bf16.mxu0 %vm843_vm1, %v1555_v39 }
 0x90d   : > { %7161 = vmatmul.mubr.msk.bf16.vlgmr.msra.gmra.mxu0 %vm843_vm1, %v1556_v36  ;;  %v1438_v36 = vpop.f32.mrf.mxu0 }
 0x90e   : > { %7165 = vmatpush3.bf16.msra.mxu0 %v7744_v54 }
 0x90f   : > { %7178 = vmatprep.subr.bf16.mxu0 %v8772_v23  ;;  %1753 = vmax.xlane.f32.xlu0 %v1752_v0 }
 0x910   : > { %1756 = vmax.xlane.f32.xlu1 %v1755_v56 }
 0x913   : > { %1759 = vmax.xlane.f32.xlu0 %v1758_v58 }
 0x914   : > { %1762 = vmax.xlane.f32.xlu1 %v1761_v20 }
 0x98c   : > { %v1551_v22 = vpop.xlane.xlu0 %1550 }
 0x990   : > { %v1545_v12 = vpop.xlane.xlu1 %1544 }
 0x994   : > { %v1548_v18 = vpop.xlane.xlu0 %1547  ;;  %v1554_v60 = vpop.xlane.xlu1 %1553 }
 0x998   : > { %v1754_v9 = vpop.xlane.xlu0 %1753 }
 0x999   : > { %v1757_v19 = vpop.xlane.xlu1 %1756  ;;  %v1764_v14 = vsub.f32 %v1738_v34, %v1754_v9 }
 0x99a   : > { %v1765_v52 = vsub.f32 %v1741_v3, %v1757_v19 }
 0x99b   : > { %v1768_v54 = vmul.f32 1.442695, %v1764_v14 }
 0x99c   : > { %v1770_v28 = vmul.f32 1.442695, %v1765_v52  ;;  %v1760_v27 = vpop.xlane.xlu0 %1759 }
 0x99d   : > { %7854 = vpow2.f32 %v1768_v54  ;;  %v1763_v30 = vpop.xlane.xlu1 %1762  ;;  %v1766_v59 = vsub.f32 %v1746_v41, %v1760_v27 }
 0x99e   : > { %7856 = vpow2.f32 %v1770_v28  ;;  %v1767_v5 = vsub.f32 %v1749_v43, %v1763_v30 }
 0x99f   : > { %v1772_v1 = vmul.f32 1.442695, %v1766_v59 }
 0x9a0   : > { %v1774_v31 = vmul.f32 1.442695, %v1767_v5 }
 0x9a1   : > { %7858 = vpow2.f32 %v1772_v1 }
 0x9a2   : > { %7860 = vpow2.f32 %v1774_v31 }
 0x9a3   : > { %7862 = vrcp.f32 %v1545_v12 }
 0x9a4   : > { %7864 = vrcp.f32 %v1554_v60 }
 0x9a5   : > { %7866 = vrcp.f32 %v1548_v18  ;;  %v7745_v18 = vld [vmem:[%s10277_s11 + $0x18] sm:$0xff]  }
 0x9a6   : > { %7868 = vrcp.f32 %v1551_v22 }
 0x9aa   : > { %v7855_v21 = vpop.eup %7854 }
 0x9ab   : > { %v7857_v4 = vpop.eup %7856  ;;  %v1776_v61 = vsel %vm843_vm1, %v7855_v21, 0.0 }
 0x9ac   : > { %v1779_v32 = vsel %vm843_vm1, %v7857_v4, 0.0  ;;  %1777 = vadd.xlane.f32.xlu0 %v1776_v61  ;;  %v1788_v12 = vpack.c.bf16 %v7857_v4, %v7855_v21  ;;  %v1439_v61 = vadd.f32 %v1438_v36, %v8752_v29 }
 0x9ad   : > { %1780 = vadd.xlane.f32.xlu1 %v1779_v32 }
 0x9ae   : > { %v7859_v34 = vpop.eup %7858 }
 0x9af   : > { %v7861_v39 = vpop.eup %7860  ;;  %v1782_v3 = vsel %vm843_vm1, %v7859_v34, 0.0 }
 0x9b0   : > { %v1785_v40 = vsel %vm843_vm1, %v7861_v39, 0.0  ;;  %1783 = vadd.xlane.f32.xlu0 %v1782_v3  ;;  %v7863_v43 = vpop.eup %7862  ;;  %v1789_v22 = vpack.c.bf16 %v7861_v39, %v7859_v34 }
 0x9b1   : > { %1786 = vadd.xlane.f32.xlu1 %v1785_v40  ;;  %v7865_v58 = vpop.eup %7864 }
 0x9b2   : > { %v7867_v20 = vpop.eup %7866 }
 0x9b3   : > { %v7869_v14 = vpop.eup %7868 }
 0x9cd   : > { %v7162_v41 = vpop.f32.mrf.mxu0 }
 0x9ce   : > { %v1624_v28 = vmul.f32 %v7869_v14, %v7162_v41 }
 0x9cf   : > { %v1603_v0 = vpop.f32.mrf.mxu0 }
 0x9d0   : > { %v1622_v52 = vmul.f32 %v7863_v43, %v1603_v0 }
 0x9d1   : > { %v7163_v56 = vpop.f32.mrf.mxu0 }
 0x9d2   : > { %v1625_v9 = vmul.f32 %v7865_v58, %v7163_v56 }
 0x9d3   : > { %v1606_v19 = vpop.f32.mrf.mxu0 }
 0x9d4   : > { %v1623_v54 = vmul.f32 %v7867_v20, %v1606_v19  ;;  %v1627_v30 = vpack.c.bf16 %v1625_v9, %v1624_v28 }
 0x9d6   : > { %v1626_v27 = vpack.c.bf16 %v1623_v54, %v1622_v52 }
 0x9d8   : > { %7166 = vmatprep.mubr.msk.bf16.mxu0 %vm993_vm2, %v1626_v27  ;;  %v8000_v27 = vld [vmem:[%s8396_s20 + $0x10] sm:$0xff] }
 0x9d9   : > { %7167 = vmatmul.mubr.msk.bf16.vlgmr.msra.gmra.mxu0 %vm993_vm2, %v1627_v30 }
 0x9da   : > { %7179 = vmatpush3.bf16.msra.mxu0 %v8772_v23  ;;  %7182 = vmatprep.mubr.msk.bf16.mxu0 %vm843_vm1, %v1788_v12  ;;  %v8001_v12 = vld [vmem:[%s8396_s20] sm:$0xff] }
 0x9db   : > { %7180 = vmatprep.subr.bf16.mxu0 %v8779_v25 }
 0x9de   : > { %7181 = vmatpush3.bf16.msra.mxu0 %v8779_v25 }
 0x9df   : > { %7186 = vmatprep.subr.bf16.mxu0 %v7745_v18 }
 0x9e1   : > { %7183 = vmatmul.mubr.msk.bf16.vlgmr.msra.gmra.mxu0 %vm843_vm1, %v1789_v22 }
 0x9e2   : > { %7187 = vmatpush3.bf16.msra.mxu0 %v7745_v18 }
 0xa35   : > { %v1778_v59 = vpop.xlane.xlu0 %1777 }
 0xa36   : > { %v1781_v60 = vpop.xlane.xlu1 %1780  ;;  %7870 = vrcp.f32 %v1778_v59 }
 0xa39   : > { %v1784_v23 = vpop.xlane.xlu0 %1783 }
 0xa3a   : > { %v1787_v5 = vpop.xlane.xlu1 %1786 }
 0xa3b   : > { %7872 = vrcp.f32 %v1787_v5 }
 0xa3c   : > { %7874 = vrcp.f32 %v1781_v60 }
 0xa3d   : > { %7876 = vrcp.f32 %v1784_v23  ;;  %v8002_v23 = vld [vmem:[%s8396_s20 + $0x18] sm:$0xff] }
 0xa43   : > { %v7871_v41 = vpop.eup %7870 }
 0xa48   : > { %v7873_v43 = vpop.eup %7872 }
 0xa49   : > { %v7875_v56 = vpop.eup %7874 }
 0xa4a   : > { %v7877_v20 = vpop.eup %7876 }
 0xa99   : > { %v7168_v1 = vpop.f32.mrf.mxu0 }
 0xa9a   : > { %v1691_v31 = vadd.f32 %v7168_v1, %v8755_v33 }
 0xa9b   : > { %v1674_v25 = vpop.f32.mrf.mxu0 }
 0xa9c   : > { %v1689_v21 = vadd.f32 %v1674_v25, %v8759_v2  ;;  %v8003_v25 = vld [vmem:[%s8396_s20 + $0x8] sm:$0xff]  ;;  %s10347_s20 = smov 32  }
 0xa9d   : > { %v7169_v4 = vpop.f32.mrf.mxu0 }
 0xa9e   : > { %v1692_v32 = vadd.f32 %v7169_v4, %v8762_v35 }
 0xa9f   : > { %v1677_v34 = vpop.f32.mrf.mxu0 }
 0xaa0   : > { %v1690_v39 = vadd.f32 %v1677_v34, %v1439_v61 }
 0xaa1   : > { %v7184_v3 = vpop.f32.mrf.mxu0 }
 0xaa2   : > { %v1851_v19 = vmul.f32 %v7877_v20, %v7184_v3  ;;  %v7757_v20 = vld [vmem:[%s10279_s13 + $0x4] ss:$8 sps:$4 sm:$0xff]  }
 0xaa3   : > { %v1830_v40 = vpop.f32.mrf.mxu0 }
 0xaa4   : > { %v1849_v9 = vmul.f32 %v7871_v41, %v1830_v40  ;;  %v7748_v40 = vld [vmem:[%s10279_s13 + $0x34] ss:$8 sps:$4 sm:$0xff]   ;;  %v7746_v41 = vld [vmem:[%s10279_s13 + $0x30] ss:$8 sps:$4 sm:$0xff]  }
 0xaa5   : > { %v7185_v0 = vpop.f32.mrf.mxu0  ;;  %2047 = vmatprep.subr.bf16.mxu1 %v7748_v40 }
 0xaa6   : > { %v1852_v58 = vmul.f32 %v7873_v43, %v7185_v0  ;;  %2048 = vmatpush1.bf16.msra.mxu1 %v7746_v41  ;;  %v7751_v0 = vld [vmem:[%s10279_s13 + $0x24] ss:$8 sps:$4 sm:$0xff]   ;;  %v7749_v43 = vld [vmem:[%s10279_s13 + $0x20] ss:$8 sps:$4 sm:$0xff]  }
 0xaa7   : > { %v1833_v33 = vpop.f32.mrf.mxu0  ;;  %2049 = vmatprep.subr.bf16.mxu1 %v7751_v0 }
 0xaa8   : > { %v1850_v2 = vmul.f32 %v7875_v56, %v1833_v33  ;;  %v1854_v29 = vpack.c.bf16 %v1852_v58, %v1851_v19  ;;  %v7754_v56 = vld [vmem:[%s10279_s13 + $0x14] ss:$8 sps:$4 sm:$0xff]   ;;  %v7752_v58 = vld [vmem:[%s10279_s13 + $0x10] ss:$8 sps:$4 sm:$0xff]   ;;  %v7755_v33 = vld [vmem:[%s10279_s13] ss:$8 sps:$4 sm:$0xff]  }
 0xaaa   : > { %v1853_v14 = vpack.c.bf16 %v1850_v2, %v1849_v9  ;;  %2050 = vmatpush1.bf16.msra.mxu1 %v7749_v43  ;;  %v10304_v9 = vmov 0   ;;  %v7758_v43 = vld [vmem:[%s10280_s14 + $0x38] sm:$0xff]  }
 0xaab   : > { %2051 = vmatprep.subr.bf16.mxu1 %v7754_v56  ;;  %2071 = vmatprep.mubr.bf16.mxu1 %v10304_v9  ;;  %v7759_v56 = vld [vmem:[%s10280_s14 + $0x30] sm:$0xff]  }
 0xaac   : > { %7188 = vmatprep.mubr.msk.bf16.mxu0 %vm993_vm2, %v1853_v14  ;;  %7192 = vmatprep.subr.bf16.mxu0 %v7758_v43 }
 0xaad   : > { %7189 = vmatmul.mubr.msk.bf16.vlgmr.msra.gmra.mxu0 %vm993_vm2, %v1854_v29 }
 0xaae   : > { %2052 = vmatpush1.bf16.msra.mxu1 %v7752_v58  ;;  %7193 = vmatpush3.bf16.msra.mxu0 %v7758_v43  ;;  %v7760_v58 = vld [vmem:[%s10280_s14 + $0x28] sm:$0xff]  }
 0xaaf   : > { %2053 = vmatprep.subr.bf16.mxu1 %v7757_v20  ;;  %7194 = vmatprep.subr.bf16.mxu0 %v7759_v56  ;;  %v7762_v20 = vld [vmem:[%s10280_s14 + $0x18] sm:$0xff]  }
 0xab2   : > { %2054 = vmatpush1.bf16.msra.mxu1 %v7755_v33  ;;  %7195 = vmatpush3.bf16.msra.mxu0 %v7759_v56  ;;  %v7761_v33 = vld [vmem:[%s10280_s14 + $0x20] sm:$0xff]  }
 0xab3   : > { %7196 = vmatprep.subr.bf16.mxu0 %v7760_v58 }
 0xab6   : > { %7197 = vmatpush3.bf16.msra.mxu0 %v7760_v58 }
 0xab7   : > { %7198 = vmatprep.subr.bf16.mxu0 %v7761_v33 }
 0xaba   : > { %7199 = vmatpush3.bf16.msra.mxu0 %v7761_v33 }
 0xabb   : > { %7200 = vmatprep.subr.bf16.mxu0 %v7762_v20 }
 0xabe   : > { %7201 = vmatpush3.bf16.msra.mxu0 %v7762_v20 }
 0xb6d   : > { %v7190_v35 = vpop.f32.mrf.mxu0 }
 0xb6e   : > { %v1918_v36 = vadd.f32 %v7190_v35, %v1691_v31 }
 0xb6f   : > { %v1901_v52 = vpop.f32.mrf.mxu0 }
 0xb70   : > { %v1916_v54 = vadd.f32 %v1901_v52, %v1689_v21  ;;  %v8819_v30 = vadd.f32 %v8000_v27, %v1918_v36 }
 0xb71   : > { %v7191_v28 = vpop.f32.mrf.mxu0 }
 0xb72   : > { %v8822_v22 = vadd.f32 %v8001_v12, %v1916_v54  ;;  %v1919_v18 = vadd.f32 %v7191_v28, %v1692_v32  ;;  %v1951_v4 = vmul.f32 %v8819_v30, %v8819_v30 }
 0xb73   : > { %v1904_v60 = vpop.f32.mrf.mxu0 }
 0xb74   : > { %v1917_v59 = vadd.f32 %v1904_v60, %v1690_v39  ;;  %v1949_v5 = vmul.f32 %v8822_v22, %v8822_v22  ;;  %v8827_v1 = vadd.f32 %v8002_v23, %v1919_v18  ;;  %v1959_v32 = vsel %vm611_vm0, %v1951_v4, 0.0  ;;  %v6515_v23 = vld [vmem:[%s10278_s12] ss:$0 sm:$0xff] }
 0xb76   : > { %v8830_v31 = vadd.f32 %v8003_v25, %v1917_v59  ;;  %v1953_v21 = vsel %vm611_vm0, %v1949_v5, 0.0  ;;  %v1952_v39 = vmul.f32 %v8827_v1, %v8827_v1 }
 0xb77   : > { %1954 = vadd.xlane.f32.xlu0 %v1953_v21 }
 0xb78   : > { %v1950_v61 = vmul.f32 %v8830_v31, %v8830_v31  ;;  %v1962_v3 = vsel %vm611_vm0, %v1952_v39, 0.0 }
 0xb7a   : > { %v1956_v34 = vsel %vm611_vm0, %v1950_v61, 0.0 }
 0xb7b   : > { %1960 = vadd.xlane.f32.xlu0 %v1959_v32  ;;  %1957 = vadd.xlane.f32.xlu1 %v1956_v34 }
 0xb7f   : > { %1963 = vadd.xlane.f32.xlu1 %v1962_v3 }
 0xc00   : > { %v1955_v2 = vpop.xlane.xlu0 %1954 }
 0xc01   : > { %v1965_v19 = vmul.f32 0.015625, %v1955_v2  ;;  %v7763_v2 = vld [vmem:[%s10280_s14 + $0x10] sm:$0xff]  }
 0xc02   : > { %7202 = vmatprep.subr.bf16.mxu0 %v7763_v2 }
 0xc03   : > { %v1969_v14 = vadd.f32 1e-05, %v1965_v19  ;;  %7203 = vmatpush3.bf16.msra.mxu0 %v7763_v2  ;;  %v7764_v19 = vld [vmem:[%s10280_s14 + $0x8] sm:$0xff]  }
 0xc04   : > { %v1961_v29 = vpop.xlane.xlu0 %1960  ;;  %v1958_v35 = vpop.xlane.xlu1 %1957  ;;  %7204 = vmatprep.subr.bf16.mxu0 %v7764_v19 }
 0xc05   : > { %v1966_v36 = vmul.f32 0.015625, %v1958_v35  ;;  %7878 = vrsqrt.f32 %v1969_v14  ;;  %v1967_v52 = vmul.f32 0.015625, %v1961_v29  ;;  %v7765_v14 = vld [vmem:[%s10280_s14] sm:$0xff]   ;;  %v8004_v29 = vld [vmem:[%s10274_s8 + $0x8] sm:$0xff]  }
 0xc07   : > { %v1970_v54 = vadd.f32 1e-05, %v1966_v36  ;;  %v1971_v12 = vadd.f32 1e-05, %v1967_v52  ;;  %7205 = vmatpush3.bf16.msra.mxu0 %v7764_v19 }
 0xc08   : > { %v1964_v28 = vpop.xlane.xlu1 %1963  ;;  %7206 = vmatprep.subr.bf16.mxu0 %v7765_v14 }
 0xc09   : > { %v1968_v27 = vmul.f32 0.015625, %v1964_v28  ;;  %7880 = vrsqrt.f32 %v1970_v54 }
 0xc0b   : > { %v1972_v18 = vadd.f32 1e-05, %v1968_v27  ;;  %7207 = vmatpush3.bf16.msra.mxu0 %v7765_v14 }
 0xc0c   : > { %7236 = vmatprep.subr.bf16.mxu0 %v8004_v29 }
 0xc0d   : > { %7882 = vrsqrt.f32 %v1972_v18 }
 0xc0e   : > { %7884 = vrsqrt.f32 %v1971_v12 }
 0xc12   : > { %v7879_v60 = vpop.eup %7878 }
 0xc13   : > { %v1977_v59 = vmul.f32 %v7879_v60, %v8822_v22 }
 0xc15   : > { %v1987_v4 = vmul.f32 %v6515_v23, %v1977_v59 }
 0xc16   : > { %v7881_v5 = vpop.eup %7880 }
 0xc17   : > { %v1978_v25 = vmul.f32 %v7881_v5, %v8830_v31 }
 0xc19   : > { %v1988_v61 = vmul.f32 %v6515_v23, %v1978_v25 }
 0xc1a   : > { %v7883_v21 = vpop.eup %7882 }
 0xc1b   : > { %v7885_v32 = vpop.eup %7884  ;;  %v1991_v34 = vpack.c.bf16 %v1988_v61, %v1987_v4  ;;  %v1980_v39 = vmul.f32 %v7883_v21, %v8827_v1 }
 0xc1c   : > { %v1979_v3 = vmul.f32 %v7885_v32, %v8819_v30 }
 0xc1d   : > { %6524 = vmatmul.mubr.msk.bf16.vlgmr.msra.gmra.mxu1 %vm611_vm0, %v1991_v34  ;;  %v1990_v40 = vmul.f32 %v6515_v23, %v1980_v39 }
 0xc1e   : > { %2081 = vmatprep.mubr.bf16.mxu1 %v10304_v9  ;;  %v1989_v41 = vmul.f32 %v6515_v23, %v1979_v3 }
 0xc20   : > { %v1992_v0 = vpack.c.bf16 %v1990_v40, %v1989_v41 }
 0xc25   : > { %6525 = vmatmul.mubr.msk.bf16.gmra.mxu1 %vm611_vm0, %v1992_v0 }
 0xcdd   : > { %v2073_v35 = vpop.f32.mrf.mxu1 }
 0xcde   : > { %v2092_v36 = vsub.f32 0.0, %v2073_v35 }
 0xcdf   : > { %v2075_v52 = vpop.f32.mrf.mxu1 }
 0xce0   : > { %v2096_v54 = vmul.f32 1.442695, %v2092_v36 }
 0xce1   : > { %v2077_v28 = vpop.f32.mrf.mxu1 }
 0xce2   : > { %7886 = vpow2.f32 %v2096_v54  ;;  %v2093_v27 = vsub.f32 0.0, %v2077_v28 }
 0xce3   : > { %v2079_v12 = vpop.f32.mrf.mxu1 }
 0xce4   : > { %v2098_v18 = vmul.f32 1.442695, %v2093_v27 }
 0xce5   : > { %v2083_v60 = vpop.f32.mrf.mxu1 }
 0xce6   : > { %7888 = vpow2.f32 %v2098_v18  ;;  %v2094_v59 = vsub.f32 0.0, %v2083_v60 }
 0xce7   : > { %v2085_v5 = vpop.f32.mrf.mxu1 }
 0xce8   : > { %v2100_v23 = vmul.f32 1.442695, %v2094_v59 }
 0xce9   : > { %v2087_v25 = vpop.f32.mrf.mxu1 }
 0xcea   : > { %7890 = vpow2.f32 %v2100_v23  ;;  %v2095_v21 = vsub.f32 0.0, %v2087_v25 }
 0xceb   : > { %v2089_v18 = vpop.f32.mrf.mxu1 }
 0xcec   : > { %v2102_v4 = vmul.f32 1.442695, %v2095_v21 }
 0xcee   : > { %7892 = vpow2.f32 %v2102_v4 }
 0xcef   : > { %v7887_v61 = vpop.eup %7886 }
 0xcf0   : > { %v2104_v32 = vadd.f32 1.0, %v7887_v61 }
 0xcf2   : > { %7894 = vrcp.f32 %v2104_v32 }
 0xcf3   : > { %v7889_v34 = vpop.eup %7888 }
 0xcf4   : > { %v2105_v39 = vadd.f32 1.0, %v7889_v34 }
 0xcf6   : > { %7896 = vrcp.f32 %v2105_v39 }
 0xcf7   : > { %v7891_v3 = vpop.eup %7890 }
 0xcf8   : > { %v2106_v40 = vadd.f32 1.0, %v7891_v3  ;;  %v7766_v3 = vld [vmem:[%s10276_s10 + $0x38] sm:$0xff]  }
 0xcf9   : > { %7212 = vmatprep.subr.bf16.mxu1 %v7766_v3 }
 0xcfa   : > { %7898 = vrcp.f32 %v2106_v40  ;;  %7213 = vmatpush3.bf16.msra.mxu1 %v7766_v3  ;;  %v7767_v40 = vld [vmem:[%s10276_s10 + $0x30] sm:$0xff]  }
 0xcfb   : > { %v7893_v41 = vpop.eup %7892  ;;  %7214 = vmatprep.subr.bf16.mxu1 %v7767_v40  ;;  %v8007_v3 = vld [vmem:[%s10339_s7 + $0x10] sm:$0xff]  }
 0xcfc   : > { %v2107_v0 = vadd.f32 1.0, %v7893_v41  ;;  %v7768_v41 = vld [vmem:[%s10276_s10 + $0x28] sm:$0xff]  }
 0xcfe   : > { %7900 = vrcp.f32 %v2107_v0  ;;  %7215 = vmatpush3.bf16.msra.mxu1 %v7767_v40  ;;  %v7769_v0 = vld [vmem:[%s10276_s10 + $0x20] sm:$0xff]   ;;  %v8008_v40 = vld [vmem:[%s10339_s7 + $0x8] sm:$0xff]  }
 0xcff   : > { %v7895_v43 = vpop.eup %7894  ;;  %7216 = vmatprep.subr.bf16.mxu1 %v7768_v41 }
 0xd00   : > { %v2112_v56 = vmul.f32 %v7895_v43, %v2073_v35  ;;  %v8005_v35 = vld [vmem:[%s10274_s8] sm:$0xff]   ;;  %v8006_v43 = vld [vmem:[%s10339_s7 + $0x18] sm:$0xff]  }
 0xd02   : > { %v2116_v20 = vmul.f32 %v2112_v56, %v2075_v52  ;;  %7217 = vmatpush3.bf16.msra.mxu1 %v7768_v41  ;;  %v8009_v41 = vld [vmem:[%s10339_s7] sm:$0xff]  }
 0xd03   : > { %v7897_v58 = vpop.eup %7896  ;;  %7218 = vmatprep.subr.bf16.mxu1 %v7769_v0 }
 0xd04   : > { %v2113_v33 = vmul.f32 %v7897_v58, %v2077_v28 }
 0xd06   : > { %v2117_v2 = vmul.f32 %v2113_v33, %v2079_v12  ;;  %7219 = vmatpush3.bf16.msra.mxu1 %v7769_v0 }
 0xd07   : > { %v7899_v19 = vpop.eup %7898  ;;  %7224 = vmatprep.subr.bf16.mxu1 %v8006_v43 }
 0xd08   : > { %v2120_v14 = vpack.c.bf16 %v2117_v2, %v2116_v20  ;;  %v2114_v36 = vmul.f32 %v7899_v19, %v2083_v60 }
 0xd0a   : > { %7208 = vmatprep.mubr.bf16.mxu0 %v2120_v14  ;;  %v2118_v59 = vmul.f32 %v2114_v36, %v2085_v5 }
 0xd0b   : > { %v7901_v54 = vpop.eup %7900 }
 0xd0c   : > { %v2115_v27 = vmul.f32 %v7901_v54, %v2087_v25 }
 0xd0e   : > { %v2119_v23 = vmul.f32 %v2115_v27, %v2089_v18 }
 0xd10   : > { %v2121_v21 = vpack.c.bf16 %v2119_v23, %v2118_v59 }
 0xd12   : > { %7209 = vmatmul.mubr.bf16.vlgmr.msra.gmra.mxu0 %v2121_v21 }
 0xd13   : > { %7237 = vmatpush3.bf16.msra.mxu0 %v8004_v29 }
 0xd14   : > { %7238 = vmatprep.subr.bf16.mxu0 %v8005_v35 }
 0xd17   : > { %7239 = vmatpush3.bf16.msra.mxu0 %v8005_v35 }
 0xdd2   : > { %v7210_v52 = vpop.f32.mrf.mxu0 }
 0xdd3   : > { %v8908_v12 = vadd.f32 %v7210_v52, %v8819_v30 }
 0xdd4   : > { %v2204_v28 = vpop.f32.mrf.mxu0 }
 0xdd5   : > { %v8911_v60 = vadd.f32 %v2204_v28, %v8822_v22  ;;  %v2245_v30 = vmul.f32 %v8908_v12, %v8908_v12  ;;  %v6551_v28 = vld [vmem:[%s10275_s9 + $0x1] ss:$0 sm:$0xff] }
 0xdd6   : > { %v7211_v25 = vpop.f32.mrf.mxu0 }
 0xdd7   : > { %v2243_v5 = vmul.f32 %v8911_v60, %v8911_v60  ;;  %v8916_v29 = vadd.f32 %v7211_v25, %v8827_v1  ;;  %v2253_v34 = vsel %vm611_vm0, %v2245_v30, 0.0 }
 0xdd8   : > { %v2207_v4 = vpop.f32.mrf.mxu0 }
 0xdd9   : > { %v8919_v61 = vadd.f32 %v2207_v4, %v8830_v31  ;;  %v2247_v32 = vsel %vm611_vm0, %v2243_v5, 0.0  ;;  %v2246_v1 = vmul.f32 %v8916_v29, %v8916_v29 }
 0xdda   : > { %2248 = vadd.xlane.f32.xlu0 %v2247_v32 }
 0xddb   : > { %v2244_v22 = vmul.f32 %v8919_v61, %v8919_v61  ;;  %v2256_v31 = vsel %vm611_vm0, %v2246_v1, 0.0 }
 0xddd   : > { %v2250_v39 = vsel %vm611_vm0, %v2244_v22, 0.0 }
 0xdde   : > { %2254 = vadd.xlane.f32.xlu0 %v2253_v34  ;;  %2251 = vadd.xlane.f32.xlu1 %v2250_v39 }
 0xde2   : > { %2257 = vadd.xlane.f32.xlu1 %v2256_v31 }
 0xe63   : > { %v2249_v56 = vpop.xlane.xlu0 %2248 }
 0xe64   : > { %v2259_v58 = vmul.f32 0.015625, %v2249_v56 }
 0xe66   : > { %v2263_v33 = vadd.f32 1e-05, %v2259_v58 }
 0xe67   : > { %v2255_v20 = vpop.xlane.xlu0 %2254  ;;  %v2252_v2 = vpop.xlane.xlu1 %2251 }
 0xe68   : > { %v2261_v19 = vmul.f32 0.015625, %v2255_v20  ;;  %v2260_v14 = vmul.f32 0.015625, %v2252_v2  ;;  %7902 = vrsqrt.f32 %v2263_v33 }
 0xe6a   : > { %v2265_v36 = vadd.f32 1e-05, %v2261_v19  ;;  %v2264_v54 = vadd.f32 1e-05, %v2260_v14 }
 0xe6b   : > { %v2258_v27 = vpop.xlane.xlu1 %2257 }
 0xe6c   : > { %7904 = vrsqrt.f32 %v2265_v36  ;;  %v2262_v18 = vmul.f32 0.015625, %v2258_v27 }
 0xe6d   : > { %7906 = vrsqrt.f32 %v2264_v54  ;;  %v8010_v54 = vld [vmem:[%s10270_s4 + $0x10] sm:$0xff] }
 0xe6e   : > { %v2266_v59 = vadd.f32 1e-05, %v2262_v18 }
 0xe70   : > { %7908 = vrsqrt.f32 %v2266_v59  ;;  %v8011_v59 = vld [vmem:[%s10345_s3 + $0x10] sm:$0xff] }
 0xe75   : > { %v7903_v23 = vpop.eup %7902 }
 0xe76   : > { %v2271_v35 = vmul.f32 %v7903_v23, %v8911_v60 }
 0xe78   : > { %v2281_v32 = vmul.f32 %v6551_v28, %v2271_v35 }
 0xe79   : > { %v7905_v21 = vpop.eup %7904 }
 0xe7a   : > { %v7907_v52 = vpop.eup %7906  ;;  %v2273_v5 = vmul.f32 %v7905_v21, %v8908_v12  ;;  %v8012_v21 = vld [vmem:[%s10270_s4] sm:$0xff] }
 0xe7b   : > { %v2272_v25 = vmul.f32 %v7907_v52, %v8919_v61  ;;  %v8013_v52 = vld [vmem:[%s10345_s3 + $0x18] sm:$0xff] }
 0xe7c   : > { %v2283_v39 = vmul.f32 %v6551_v28, %v2273_v5 }
 0xe7d   : > { %v7909_v4 = vpop.eup %7908  ;;  %v2282_v30 = vmul.f32 %v6551_v28, %v2272_v25  ;;  %v8014_v25 = vld [vmem:[%s10270_s4 + $0x18] sm:$0xff] }
 0xe7e   : > { %v2274_v22 = vmul.f32 %v7909_v4, %v8916_v29  ;;  %v8015_v4 = vld [vmem:[%s10345_s3] sm:$0xff] }
 0xe7f   : > { %v2285_v34 = vpack.c.bf16 %v2282_v30, %v2281_v32 }
 0xe80   : > { %v2284_v1 = vmul.f32 %v6551_v28, %v2274_v22 }
 0xe81   : > { %7220 = vmatprep.mubr.msk.bf16.mxu1 %vm611_vm0, %v2285_v34 }
 0xe82   : > { %v2286_v31 = vpack.c.bf16 %v2284_v1, %v2283_v39  ;;  %v8016_v39 = vld [vmem:[%s10345_s3 + $0x8] sm:$0xff] }
 0xe84   : > { %7221 = vmatmul.mubr.msk.bf16.vlgmr.msra.gmra.mxu1 %vm611_vm0, %v2286_v31  ;;  %v8017_v31 = vld [vmem:[%s10270_s4 + $0x8] sm:$0xff] }
 0xe85   : > { %7225 = vmatpush3.bf16.msra.mxu1 %v8006_v43 }
 0xe86   : > { %7226 = vmatprep.subr.bf16.mxu1 %v8007_v3 }
 0xe89   : > { %7227 = vmatpush3.bf16.msra.mxu1 %v8007_v3 }
 0xe8a   : > { %7228 = vmatprep.subr.bf16.mxu1 %v8008_v40 }
 0xe8d   : > { %7229 = vmatpush3.bf16.msra.mxu1 %v8008_v40 }
 0xe8e   : > { %7230 = vmatprep.subr.bf16.mxu1 %v8009_v41 }
 0xe91   : > { %7231 = vmatpush3.bf16.msra.mxu1 %v8009_v41 }
 0xf44   : > { %v8964_v0 = vpop.f32.mrf.mxu1 }
 0xf45   : > { %v2425_v23 = vmul.f32 %v8011_v59, %v8964_v0 }
 0xf46   : > { %v8966_v43 = vpop.f32.mrf.mxu1 }
 0xf47   : > { %v2423_v32 = vmul.f32 %v8015_v4, %v8966_v43  ;;  %v2498_v4 = vmul.f32 %v8964_v0, %v8558_v37 }
 0xf48   : > { %v8968_v56 = vpop.f32.mrf.mxu1 }
 0xf49   : > { %v8972_v58 = vpack.c.bf16 %v8968_v56, %v8964_v0  ;;  %v2426_v28 = vmul.f32 %v8013_v52, %v8968_v56 }
 0xf4a   : > { %v8974_v33 = vpop.f32.mrf.mxu1 }
 0xf4b   : > { %v8978_v20 = vpack.c.bf16 %v8974_v33, %v8966_v43  ;;  %2439 = vrot.lane.b32.xlu1 %v8972_v58, %s10346_s28  ;;  %v2424_v1 = vmul.f32 %v8016_v39, %v8974_v33 }
 0xf4d   : > { %2437 = vrot.lane.b32.xlu0 %v8978_v20, %s10346_s28  ;;  %7232 = vmatprep.mubr.msk.bf16.mxu1 %vm611_vm0, %v8978_v20 }
 0xf4e   : > { %7233 = vmatmul.mubr.msk.bf16.vlgmr.msra.gmra.mxu1 %vm611_vm0, %v8972_v58 }
 0xfbd   : > { %v2440_v19 = vpop.permute.xlu1 %2439 }
 0xfbf   : > { %v2438_v2 = vpop.permute.xlu0 %2437 }
 0xfc0   : > { %7240 = vmatprep.mubr.msk.bf16.mxu0 %vm843_vm1, %v2438_v2 }
 0xfc1   : > { %7241 = vmatmul.mubr.msk.bf16.vlgmr.msra.gmra.mxu0 %vm843_vm1, %v2440_v19 }
0x100e   : > { %v7234_v14 = vpop.f32.mrf.mxu1 }
0x100f   : > { %v2429_v27 = vmul.f32 %v8010_v54, %v7234_v14 }
0x1010   : > { %v2408_v36 = vpop.f32.mrf.mxu1 }
0x1011   : > { %v2427_v35 = vmul.f32 %v8012_v21, %v2408_v36  ;;  %v2433_v22 = vadd.f32 %v2429_v27, %v2425_v23  ;;  %v8018_v36 = vld [vmem:[%s10272_s6 + $0x10] sm:$0xff]  ;;  %v8020_v21 = vld [vmem:[%s10272_s6 + $0x18] sm:$0xff] }
0x1012   : > { %v7235_v18 = vpop.f32.mrf.mxu1 }
0x1013   : > { %v2430_v5 = vmul.f32 %v8014_v25, %v7235_v18  ;;  %v2431_v40 = vadd.f32 %v2427_v35, %v2423_v32  ;;  %v8019_v18 = vld [vmem:[%s10272_s6] sm:$0xff]  ;;  %v2499_v32 = vmul.f32 %v8968_v56, %v8560_v38 }
0x1014   : > { %v2411_v30 = vpop.f32.mrf.mxu1 }
0x1015   : > { %v2434_v34 = vadd.f32 %v2430_v5, %v2426_v28  ;;  %v2428_v3 = vmul.f32 %v8017_v31, %v2411_v30  ;;  %v8021_v28 = vld [vmem:[%s10272_s6 + $0x8] sm:$0xff] }
0x1017   : > { %v9018_v41 = vpack.c.bf16 %v2434_v34, %v2433_v22  ;;  %v2432_v2 = vadd.f32 %v2428_v3, %v2424_v1  ;;  %v2496_v1 = vmul.f32 %v8966_v43, %v8566_v42  ;;  %v2497_v3 = vmul.f32 %v8974_v33, %v8576_v57 }
0x1019   : > { %v9020_v19 = vpack.c.bf16 %v2432_v2, %v2431_v40 }
0x101b   : > { %7248 = vmatprep.mubr.msk.bf16.mxu0 %vm993_vm2, %v9020_v19 }
0x1081   : > { %v7242_v14 = vpop.f32.mrf.mxu0 }
0x1082   : > { %v2502_v54 = vmul.f32 %v8018_v36, %v7242_v14 }
0x1083   : > { %v2481_v27 = vpop.f32.mrf.mxu0 }
0x1084   : > { %v2500_v59 = vmul.f32 %v8019_v18, %v2481_v27  ;;  %2512 = vrot.lane.b32.xlu1 %v2502_v54, %s10346_s28 }
0x1085   : > { %v7243_v23 = vpop.f32.mrf.mxu0 }
0x1086   : > { %v2503_v35 = vmul.f32 %v8020_v21, %v7243_v23  ;;  %2508 = vrot.lane.b32.xlu0 %v2500_v59, %s10346_s28 }
0x1087   : > { %v2484_v52 = vpop.f32.mrf.mxu0 }
0x1088   : > { %2514 = vrot.lane.b32.xlu1 %v2503_v35, %s10346_s28  ;;  %v2501_v25 = vmul.f32 %v8021_v28, %v2484_v52 }
0x108c   : > { %2510 = vrot.lane.b32.xlu1 %v2501_v25, %s10346_s28 }
0x10f6   : > { %v2513_v5 = vpop.permute.xlu1 %2512 }
0x10f7   : > { %v9044_v22 = vadd.f32 %v2513_v5, %v2498_v4 }
0x10f8   : > { %v2509_v39 = vpop.permute.xlu0 %2508 }
0x10f9   : > { %v9056_v40 = vadd.f32 %v2509_v39, %v2496_v1 }
0x10fa   : > { %v2515_v30 = vpop.permute.xlu1 %2514 }
0x10fb   : > { %v9046_v34 = vadd.f32 %v2515_v30, %v2499_v32 }
0x10fd   : > { %v9052_v31 = vpack.c.bf16 %v9046_v34, %v9044_v22 }
0x10fe   : > { %v2511_v37 = vpop.permute.xlu1 %2510 }
0x10ff   : > { %v9058_v38 = vadd.f32 %v2511_v37, %v2497_v3  ;;  %2572 = vrot.lane.b32.xlu0 %v9052_v31, %s10346_s28 }
0x1101   : > { %v9064_v2 = vpack.c.bf16 %v9058_v38, %v9056_v40 }
0x1103   : > { %2570 = vrot.lane.b32.xlu1 %v9064_v2, %s10346_s28 }
0x1171   : > { %v2573_v42 = vpop.permute.xlu0 %2572 }
0x1172   : > { %7640 = vmatprep.subr.msk.bf16.mxu0 %vm993_vm2, %v2573_v42  ;;  %v9070_v57 = vsel %vm993_vm2, %v2573_v42, 0 }
0x1173   : > { %7245 = vmatpush3.bf16.xpose.msra.mxu0 %v9070_v57 }
0x1175   : > { %v9073_v14 = vpop.permute.xlu1 %2570 }
0x1176   : > { %7641 = vmatprep.subr.msk.bf16.mxu0 %vm993_vm2, %v9073_v14  ;;  %v2581_v36 = vsel %vm993_vm2, %v9073_v14, 0 }
0x117b   : > { %7247 = vmatpush3.bf16.xpose.msra.mxu0 %v2581_v36 }
0x1182   : > { %7249 = vmatmul.mubr.msk.bf16.vlgmr.msra.gmra.mxu0 %vm993_vm2, %v9018_v41 }
0x1242   : > { %v7250_v54 = vpop.f32.mrf.mxu0 }
0x1243   : > { %v2629_v27 = vadd.f32 %v7250_v54, %v8638_v13 }
0x1244   : > { %v2620_v18 = vpop.f32.mrf.mxu0 }
0x1245   : > { %v2621_v59 = vadd.f32 %v2620_v18, %v8642_v15  ;;  %v2641_v23 = vsel %vm843_vm1, %v2629_v27, -inf }
0x1246   : > { %2642 = vmax.xlane.f32.xlu0 %v2641_v23  ;;  %v7251_v21 = vpop.f32.mrf.mxu0 }
0x1247   : > { %v2632_v52 = vadd.f32 %v7251_v21, %v8647_v24  ;;  %v2635_v25 = vsel %vm843_vm1, %v2621_v59, -inf }
0x1248   : > { %v2623_v35 = vpop.f32.mrf.mxu0 }
0x1249   : > { %v2624_v28 = vadd.f32 %v2623_v35, %v8649_v26  ;;  %v2644_v4 = vsel %vm843_vm1, %v2632_v52, -inf }
0x124a   : > { %2636 = vmax.xlane.f32.xlu0 %v2635_v25 }
0x124b   : > { %v2638_v5 = vsel %vm843_vm1, %v2624_v28, -inf }
0x124c   : > { %2639 = vmax.xlane.f32.xlu1 %v2638_v5 }
0x124e   : > { %2645 = vmax.xlane.f32.xlu0 %v2644_v4 }
0x125d   : > { %2673 = vrot.lane.b32.xlu1 %v8978_v20, %s10347_s20 }
0x1261   : > { %2746 = vrot.lane.b32.xlu1 %v9020_v19, %s10348_s22 }
0x1264   : > { %2675 = vrot.lane.b32.xlu0 %v8972_v58, %s10347_s20 }
0x1265   : > { %2748 = vrot.lane.b32.xlu1 %v9018_v41, %s10348_s22  ;;  %s9628_s22 = smov 1  }
0x12cf   : > { %v2643_v32 = vpop.xlane.xlu0 %2642 }
0x12d0   : > { %v2649_v30 = vsub.f32 %v2629_v27, %v2643_v32 }
0x12d2   : > { %v2655_v18 = vmul.f32 1.442695, %v2649_v30 }
0x12d3   : > { %v2637_v39 = vpop.xlane.xlu0 %2636 }
0x12d4   : > { %v2647_v1 = vsub.f32 %v2621_v59, %v2637_v39 }
0x12d5   : > { %v2640_v3 = vpop.xlane.xlu1 %2639 }
0x12d6   : > { %v2651_v37 = vmul.f32 1.442695, %v2647_v1  ;;  %v2648_v54 = vsub.f32 %v2624_v28, %v2640_v3 }
0x12d7   : > { %v2646_v23 = vpop.xlane.xlu0 %2645 }
0x12d8   : > { %v2653_v21 = vmul.f32 1.442695, %v2648_v54  ;;  %v2650_v35 = vsub.f32 %v2632_v52, %v2646_v23  ;;  %7910 = vpow2.f32 %v2651_v37 }
0x12d9   : > { %v2674_v4 = vpop.permute.xlu1 %2673 }
0x12da   : > { %7912 = vpow2.f32 %v2653_v21  ;;  %v2657_v25 = vmul.f32 1.442695, %v2650_v35 }
0x12db   : > { %7914 = vpow2.f32 %v2655_v18  ;;  %v2676_v5 = vpop.permute.xlu0 %2675 }
0x12dc   : > { %7916 = vpow2.f32 %v2657_v25  ;;  %7252 = vmatprep.subr.bf16.mxu1 %v2676_v5  ;;  %7268 = vmatprep.subr.bf16.mxu0 %v2676_v5 }
0x12dd   : > { %7253 = vmatpush3.bf16.msra.mxu1 %v2676_v5  ;;  %7269 = vmatpush3.bf16.msra.mxu0 %v2676_v5  ;;  %v2747_v39 = vpop.permute.xlu1 %2746 }
0x12de   : > { %7254 = vmatprep.subr.bf16.mxu1 %v2674_v4  ;;  %7270 = vmatprep.subr.bf16.mxu0 %v2674_v4 }
0x12e1   : > { %7255 = vmatpush3.bf16.msra.mxu1 %v2674_v4  ;;  %7271 = vmatpush3.bf16.msra.mxu0 %v2674_v4 }
0x12e2   : > { %7642 = vmatprep.subr.msk.bf16.mxu1 %vm993_vm2, %v2573_v42  ;;  %v2749_v42 = vpop.permute.xlu1 %2748 }
0x12e5   : > { %v9098_v27 = vpop.eup %7910 }
0x12e7   : > { %v9100_v59 = vpop.eup %7912 }
0x12e8   : > { %v9102_v52 = vpop.eup %7914  ;;  %v2671_v28 = vpack.c.bf16 %v9100_v59, %v9098_v27 }
0x12e9   : > { %v9106_v32 = vpop.eup %7916 }
0x12ea   : > { %7256 = vmatprep.mubr.msk.bf16.mxu1 %vm843_vm1, %v2671_v28  ;;  %v2672_v30 = vpack.c.bf16 %v9106_v32, %v9102_v52 }
0x12ec   : > { %7257 = vmatmul.mubr.msk.bf16.vlgmr.msra.gmra.mxu1 %vm843_vm1, %v2672_v30 }
0x12ed   : > { %7261 = vmatpush3.bf16.xpose.msra.mxu1 %v9070_v57  ;;  %7264 = vmatprep.mubr.msk.bf16.mxu1 %vm993_vm2, %v2747_v39 }
0x12ee   : > { %7643 = vmatprep.subr.msk.bf16.mxu1 %vm993_vm2, %v9073_v14 }
0x12f5   : > { %7263 = vmatpush3.bf16.xpose.msra.mxu1 %v2581_v36 }
0x12fc   : > { %7265 = vmatmul.mubr.msk.bf16.vlgmr.msra.gmra.mxu1 %vm993_vm2, %v2749_v42 }
0x13ac   : > { %v9117_v1 = vpop.f32.mrf.mxu1 }
0x13ae   : > { %v9119_v3 = vpop.f32.mrf.mxu1 }
0x13b0   : > { %v9121_v37 = vpop.f32.mrf.mxu1 }
0x13b2   : > { %v9123_v54 = vpop.f32.mrf.mxu1 }
0x13bc   : > { %v7266_v18 = vpop.f32.mrf.mxu1 }
0x13bd   : > { %v2799_v35 = vadd.f32 %v7266_v18, %v8638_v13 }
0x13be   : > { %v2790_v23 = vpop.f32.mrf.mxu1 }
0x13bf   : > { %v2791_v57 = vadd.f32 %v2790_v23, %v8642_v15  ;;  %v2811_v28 = vsel %vm843_vm1, %v2799_v35, -inf }
0x13c0   : > { %v7267_v21 = vpop.f32.mrf.mxu1 }
0x13c1   : > { %v2805_v14 = vsel %vm843_vm1, %v2791_v57, -inf  ;;  %v2802_v5 = vadd.f32 %v7267_v21, %v8647_v24 }
0x13c2   : > { %v2793_v36 = vpop.f32.mrf.mxu1  ;;  %2806 = vmax.xlane.f32.xlu0 %v2805_v14 }
0x13c3   : > { %v2794_v25 = vadd.f32 %v2793_v36, %v8649_v26  ;;  %v2814_v30 = vsel %vm843_vm1, %v2802_v5, -inf }
0x13c5   : > { %v2808_v4 = vsel %vm843_vm1, %v2794_v25, -inf }
0x13c6   : > { %2809 = vmax.xlane.f32.xlu1 %v2808_v4  ;;  %2812 = vmax.xlane.f32.xlu0 %v2811_v28 }
0x13ca   : > { %2815 = vmax.xlane.f32.xlu0 %v2814_v30 }
0x144b   : > { %v2807_v39 = vpop.xlane.xlu0 %2806 }
0x144c   : > { %v2817_v42 = vsub.f32 %v2791_v57, %v2807_v39 }
0x144e   : > { %v2821_v18 = vmul.f32 1.442695, %v2817_v42 }
0x144f   : > { %v2810_v23 = vpop.xlane.xlu1 %2809  ;;  %v2813_v9 = vpop.xlane.xlu0 %2812 }
0x1450   : > { %v2818_v46 = vsub.f32 %v2794_v25, %v2810_v23  ;;  %v2819_v14 = vsub.f32 %v2799_v35, %v2813_v9  ;;  %7918 = vpow2.f32 %v2821_v18 }
0x1452   : > { %v2823_v45 = vmul.f32 1.442695, %v2818_v46  ;;  %v2825_v36 = vmul.f32 1.442695, %v2819_v14 }
0x1453   : > { %v2816_v21 = vpop.xlane.xlu0 %2815 }
0x1454   : > { %7920 = vpow2.f32 %v2823_v45  ;;  %v2820_v17 = vsub.f32 %v2802_v5, %v2816_v21 }
0x1455   : > { %7922 = vpow2.f32 %v2825_v36 }
0x1456   : > { %v2827_v16 = vmul.f32 1.442695, %v2820_v17  ;;  %v2659_v17 = vsel %vm843_vm1, %v9098_v27, 0.0 }
0x1458   : > { %7924 = vpow2.f32 %v2827_v16  ;;  %v7770_v16 = vld [vmem:[%s10277_s11 + $0x28] sm:$0xff]  }
0x1459   : > { %7276 = vmatprep.subr.bf16.mxu0 %v7770_v16 }
0x145d   : > { %v7919_v4 = vpop.eup %7918 }
0x145e   : > { %v2829_v35 = vsel %vm843_vm1, %v7919_v4, 0.0 }
0x1461   : > { %v7921_v28 = vpop.eup %7920 }
0x1462   : > { %v7923_v48 = vpop.eup %7922  ;;  %v2832_v30 = vsel %vm843_vm1, %v7921_v28, 0.0  ;;  %v2841_v57 = vpack.c.bf16 %v7921_v28, %v7919_v4 }
0x1463   : > { %2833 = vadd.xlane.f32.xlu1 %v2832_v30  ;;  %v2835_v39 = vsel %vm843_vm1, %v7923_v48, 0.0 }
0x1464   : > { %2836 = vadd.xlane.f32.xlu0 %v2835_v39  ;;  %7272 = vmatprep.mubr.msk.bf16.mxu0 %vm843_vm1, %v2841_v57 }
0x1465   : > { %v7925_v46 = vpop.eup %7924 }
0x1466   : > { %v2838_v9 = vsel %vm843_vm1, %v7925_v46, 0.0  ;;  %v2842_v45 = vpack.c.bf16 %v7925_v46, %v7923_v48  ;;  %v2665_v48 = vsel %vm843_vm1, %v9102_v52, 0.0 }
0x1467   : > { %2839 = vadd.xlane.f32.xlu1 %v2838_v9 }
0x1468   : > { %2830 = vadd.xlane.f32.xlu0 %v2829_v35  ;;  %7273 = vmatmul.mubr.msk.bf16.vlgmr.msra.gmra.mxu0 %vm843_vm1, %v2842_v45 }
0x1469   : > { %7277 = vmatpush3.bf16.msra.mxu0 %v7770_v16 }
0x1478   : > { %3034 = vrot.lane.b32.xlu1 %v9064_v2, %s10349_s24  ;;  %v2668_v2 = vsel %vm843_vm1, %v9106_v32, 0.0 }
0x147c   : > { %3030 = vrot.lane.b32.xlu1 %v9020_v19, %s10350_s21 }
0x147e   : > { %3036 = vrot.lane.b32.xlu0 %v9052_v31, %s10349_s24  ;;  %v2662_v31 = vsel %vm843_vm1, %v9100_v59, 0.0 }
0x1480   : > { %3032 = vrot.lane.b32.xlu1 %v9018_v41, %s10350_s21 }
0x1482   : > { %3273 = vrot.lane.b32.xlu0 %v9020_v19, %s10351_s29 }
0x1484   : > { %3275 = vrot.lane.b32.xlu1 %v9018_v41, %s10351_s29  ;;  %v7771_v41 = vld [vmem:[%s10277_s11 + $0x20] sm:$0xff]  }
0x1485   : > { %7282 = vmatprep.subr.bf16.mxu1 %v7771_v41 }
0x1486   : > { %7283 = vmatpush3.bf16.msra.mxu1 %v7771_v41 }
0x14a1   : > { %2660 = vadd.xlane.f32.xlu0 %v2659_v17 }
0x14a5   : > { %2666 = vadd.xlane.f32.xlu0 %v2665_v48 }
0x14a8   : > { %2663 = vadd.xlane.f32.xlu1 %v2662_v31 }
0x14a9   : > { %2669 = vadd.xlane.f32.xlu0 %v2668_v2 }
0x14ec   : > { %v2834_v52 = vpop.xlane.xlu1 %2833 }
0x14ed   : > { %v2837_v19 = vpop.xlane.xlu0 %2836  ;;  %7926 = vrcp.f32 %v2834_v52 }
0x14f0   : > { %v2840_v5 = vpop.xlane.xlu1 %2839 }
0x14f1   : > { %v2831_v27 = vpop.xlane.xlu0 %2830  ;;  %7928 = vrcp.f32 %v2840_v5 }
0x14f2   : > { %7930 = vrcp.f32 %v2831_v27 }
0x14f3   : > { %7932 = vrcp.f32 %v2837_v19 }
0x14f4   : > { %v3035_v42 = vpop.permute.xlu1 %3034 }
0x14f5   : > { %v3037_v25 = vpop.permute.xlu0 %3036  ;;  %v3045_v27 = vsel %vm993_vm2, %v3035_v42, 0 }
0x14f6   : > { %7644 = vmatprep.subr.msk.bf16.mxu0 %vm993_vm2, %v3037_v25  ;;  %v3048_v19 = vsel %vm993_vm2, %v3037_v25, 0 }
0x14f8   : > { %v3031_v59 = vpop.permute.xlu1 %3030 }
0x14f9   : > { %v3274_v32 = vpop.permute.xlu0 %3273 }
0x14fa   : > { %v7927_v21 = vpop.eup %7926 }
0x14fc   : > { %v3033_v18 = vpop.permute.xlu1 %3032 }
0x14fe   : > { %v7929_v28 = vpop.eup %7928 }
0x14ff   : > { %v7931_v57 = vpop.eup %7930 }
0x1500   : > { %v3276_v30 = vpop.permute.xlu1 %3275  ;;  %v7933_v45 = vpop.eup %7932 }
0x1528   : > { %v7274_v23 = vpop.f32.mrf.mxu0 }
0x1529   : > { %v2904_v17 = vmul.f32 %v7933_v45, %v7274_v23 }
0x152a   : > { %v2661_v14 = vpop.xlane.xlu0 %2660  ;;  %v2883_v36 = vpop.f32.mrf.mxu0 }
0x152b   : > { %v2902_v35 = vmul.f32 %v7931_v57, %v2883_v36  ;;  %7934 = vrcp.f32 %v2661_v14 }
0x152c   : > { %v7275_v4 = vpop.f32.mrf.mxu0 }
0x152d   : > { %v2905_v39 = vmul.f32 %v7929_v28, %v7275_v4 }
0x152e   : > { %v2667_v46 = vpop.xlane.xlu0 %2666  ;;  %v2886_v9 = vpop.f32.mrf.mxu0 }
0x152f   : > { %v2903_v16 = vmul.f32 %v7927_v21, %v2886_v9  ;;  %7936 = vrcp.f32 %v2667_v46  ;;  %v2907_v2 = vpack.c.bf16 %v2905_v39, %v2904_v17 }
0x1531   : > { %v2906_v48 = vpack.c.bf16 %v2903_v16, %v2902_v35  ;;  %v2664_v31 = vpop.xlane.xlu1 %2663 }
0x1532   : > { %7938 = vrcp.f32 %v2664_v31  ;;  %v2670_v41 = vpop.xlane.xlu0 %2669 }
0x1533   : > { %7940 = vrcp.f32 %v2670_v41  ;;  %7278 = vmatprep.mubr.msk.bf16.mxu0 %vm993_vm2, %v2906_v48 }
0x1534   : > { %7279 = vmatmul.mubr.msk.bf16.vlgmr.msra.gmra.mxu0 %vm993_vm2, %v2907_v2 }
0x1535   : > { %7289 = vmatpush3.bf16.xpose.msra.mxu0 %v3048_v19  ;;  %7292 = vmatprep.mubr.msk.bf16.mxu0 %vm993_vm2, %v3031_v59 }
0x1536   : > { %7645 = vmatprep.subr.msk.bf16.mxu0 %vm993_vm2, %v3035_v42 }
0x1538   : > { %v7935_v52 = vpop.eup %7934 }
0x1539   : > { %v2738_v36 = vmul.f32 %v7935_v52, %v9119_v3  ;;  %v10352_v3 = vmov 0  }
0x153c   : > { %v7937_v5 = vpop.eup %7936 }
0x153d   : > { %7291 = vmatpush3.bf16.xpose.msra.mxu0 %v3045_v27  ;;  %v2740_v4 = vmul.f32 %v7937_v5, %v9117_v1 }
0x153e   : > { %7646 = vmatprep.subr.msk.bf16.mxu0 %vm993_vm2, %v3037_v25 }
0x153f   : > { %v7939_v23 = vpop.eup %7938 }
0x1540   : > { %v7941_v14 = vpop.eup %7940  ;;  %v2739_v21 = vmul.f32 %v7939_v23, %v9123_v54 }
0x1541   : > { %v2741_v28 = vmul.f32 %v7941_v14, %v9121_v37 }
0x1542   : > { %v2742_v59 = vpack.c.bf16 %v2739_v21, %v2738_v36 }
0x1543   : > { %v2743_v57 = vpack.c.bf16 %v2741_v28, %v2740_v4 }
0x1544   : > { %7293 = vmatmul.mubr.msk.bf16.vlgmr.msra.gmra.mxu0 %vm993_vm2, %v3033_v18  ;;  %7284 = vmatprep.mubr.msk.bf16.mxu1 %vm993_vm2, %v2742_v59 }
0x1545   : > { %7311 = vmatpush3.bf16.xpose.msra.mxu0 %v3048_v19  ;;  %7314 = vmatprep.mubr.msk.bf16.mxu0 %vm993_vm2, %v3274_v32 }
0x1546   : > { %7285 = vmatmul.mubr.msk.bf16.vlgmr.msra.gmra.mxu1 %vm993_vm2, %v2743_v57  ;;  %7647 = vmatprep.subr.msk.bf16.mxu0 %vm993_vm2, %v3035_v42 }
0x154d   : > { %7313 = vmatpush3.bf16.xpose.msra.mxu0 %v3045_v27 }
0x1554   : > { %7315 = vmatmul.mubr.msk.bf16.vlgmr.msra.gmra.mxu0 %vm993_vm2, %v3276_v30 }
0x1555   : > { %3654 = vmatprep.mubr.bf16.mxu0 %v10352_v3 }
0x15f4   : > { %v7280_v1 = vpop.f32.mrf.mxu0 }
0x15f6   : > { %v2954_v37 = vpop.f32.mrf.mxu0 }
0x15f8   : > { %v7281_v54 = vpop.f32.mrf.mxu0 }
0x15fa   : > { %v9184_v25 = vpop.f32.mrf.mxu0 }
0x1604   : > { %v7294_v18 = vpop.f32.mrf.mxu0 }
0x1605   : > { %v3093_v39 = vadd.f32 %v7294_v18, %v8638_v13 }
0x1606   : > { %v7286_v46 = vpop.f32.mrf.mxu1  ;;  %v3084_v9 = vpop.f32.mrf.mxu0 }
0x1607   : > { %v9187_v32 = vadd.f32 %v7286_v46, %v7280_v1  ;;  %v3085_v45 = vadd.f32 %v3084_v9, %v8642_v15  ;;  %v3105_v42 = vsel %vm843_vm1, %v3093_v39, -inf }
0x1608   : > { %3106 = vmax.xlane.f32.xlu0 %v3105_v42  ;;  %v3015_v30 = vpop.f32.mrf.mxu1  ;;  %v7295_v35 = vpop.f32.mrf.mxu0 }
0x1609   : > { %v9191_v16 = vadd.f32 %v3015_v30, %v2954_v37  ;;  %v3096_v17 = vadd.f32 %v7295_v35, %v8647_v24  ;;  %v3099_v27 = vsel %vm843_vm1, %v3085_v45, -inf }
0x160a   : > { %v7287_v48 = vpop.f32.mrf.mxu1  ;;  %v3087_v31 = vpop.f32.mrf.mxu0 }
0x160b   : > { %v9194_v2 = vadd.f32 %v7287_v48, %v7281_v54  ;;  %v3088_v41 = vadd.f32 %v3087_v31, %v8649_v26  ;;  %v3108_v19 = vsel %vm843_vm1, %v3096_v17, -inf }
0x160c   : > { %3109 = vmax.xlane.f32.xlu1 %v3108_v19  ;;  %3100 = vmax.xlane.f32.xlu0 %v3099_v27 }
0x160d   : > { %v3102_v52 = vsel %vm843_vm1, %v3088_v41, -inf }
0x1610   : > { %3103 = vmax.xlane.f32.xlu1 %v3102_v52 }
0x1621   : > { %3137 = vrot.lane.b32.xlu1 %v8978_v20, %s10353_s26  ;;  %v7772_v20 = vld [vmem:[%s10277_s11 + $0x30] sm:$0xff]  }
0x1622   : > { %3139 = vrot.lane.b32.xlu0 %v8972_v58, %s10353_s26  ;;  %s6634_s26 = sadd.s32 4294967295, %s8615_s27 }
0x1691   : > { %v3107_v5 = vpop.xlane.xlu0 %3106 }
0x1692   : > { %v3113_v23 = vsub.f32 %v3093_v39, %v3107_v5  ;;  %v7316_v39 = vpop.f32.mrf.mxu0 }
0x1694   : > { %v3119_v14 = vmul.f32 1.442695, %v3113_v23  ;;  %v3317_v46 = vpop.f32.mrf.mxu0 }
0x1695   : > { %v3110_v36 = vpop.xlane.xlu1 %3109  ;;  %v3101_v21 = vpop.xlane.xlu0 %3100 }
0x1696   : > { %7942 = vpow2.f32 %v3119_v14  ;;  %v3114_v4 = vsub.f32 %v3096_v17, %v3110_v36  ;;  %v3111_v28 = vsub.f32 %v3085_v45, %v3101_v21  ;;  %v7317_v42 = vpop.f32.mrf.mxu0  ;;  %v3326_v14 = vadd.f32 %v7316_v39, %v8638_v13 }
0x1698   : > { %v3115_v59 = vmul.f32 1.442695, %v3111_v28  ;;  %v3121_v57 = vmul.f32 1.442695, %v3114_v4  ;;  %v3320_v48 = vpop.f32.mrf.mxu0  ;;  %v3338_v21 = vsel %vm843_vm1, %v3326_v14, -inf }
0x1699   : > { %v3104_v1 = vpop.xlane.xlu1 %3103  ;;  %v9204_v37 = vpop.permute.xlu0 %3139  ;;  %v3321_v52 = vadd.f32 %v3320_v48, %v8649_v26 }
0x169a   : > { %v3112_v54 = vsub.f32 %v3088_v41, %v3104_v1  ;;  %7296 = vmatprep.subr.bf16.mxu1 %v9204_v37  ;;  %7944 = vpow2.f32 %v3115_v59  ;;  %v3318_v41 = vadd.f32 %v3317_v46, %v8642_v15  ;;  %v3329_v15 = vadd.f32 %v7317_v42, %v8647_v24 }
0x169b   : > { %7297 = vmatpush3.bf16.msra.mxu1 %v9204_v37  ;;  %7946 = vpow2.f32 %v3121_v57  ;;  %v3335_v26 = vsel %vm843_vm1, %v3321_v52, -inf }
0x169c   : > { %v3117_v58 = vmul.f32 1.442695, %v3112_v54  ;;  %v3332_v36 = vsel %vm843_vm1, %v3318_v41, -inf  ;;  %v3341_v4 = vsel %vm843_vm1, %v3329_v15, -inf }
0x169d   : > { %v9211_v18 = vpop.permute.xlu1 %3137 }
0x169e   : > { %7948 = vpow2.f32 %v3117_v58  ;;  %7298 = vmatprep.subr.bf16.mxu1 %v9211_v18 }
0x169f   : > { %7299 = vmatpush3.bf16.msra.mxu1 %v9211_v18 }
0x16a0   : > { %7304 = vmatprep.subr.bf16.mxu1 %v7772_v20 }
0x16a3   : > { %v7943_v9 = vpop.eup %7942 }
0x16a4   : > { %v3129_v45 = vsel %vm843_vm1, %v7943_v9, 0.0 }
0x16a5   : > { %3130 = vadd.xlane.f32.xlu0 %v3129_v45 }
0x16a7   : > { %v7945_v30 = vpop.eup %7944 }
0x16a8   : > { %v3123_v35 = vsel %vm843_vm1, %v7945_v30, 0.0  ;;  %v7947_v17 = vpop.eup %7946 }
0x16a9   : > { %3124 = vadd.xlane.f32.xlu1 %v3123_v35  ;;  %v3132_v5 = vsel %vm843_vm1, %v7947_v17, 0.0  ;;  %v3136_v23 = vpack.c.bf16 %v7947_v17, %v7943_v9 }
0x16ab   : > { %v7949_v31 = vpop.eup %7948 }
0x16ac   : > { %v3126_v19 = vsel %vm843_vm1, %v7949_v31, 0.0  ;;  %v3135_v27 = vpack.c.bf16 %v7949_v31, %v7945_v30 }
0x16ad   : > { %3127 = vadd.xlane.f32.xlu0 %v3126_v19  ;;  %3133 = vadd.xlane.f32.xlu1 %v3132_v5 }
0x16ae   : > { %7300 = vmatprep.mubr.msk.bf16.mxu1 %vm843_vm1, %v3135_v27 }
0x16af   : > { %7301 = vmatmul.mubr.msk.bf16.vlgmr.msra.gmra.mxu1 %vm843_vm1, %v3136_v23  ;;  %v3018_v23 = vpop.f32.mrf.mxu1 }
0x16b0   : > { %7305 = vmatpush3.bf16.msra.mxu1 %v7772_v20 }
0x16b1   : > { %7318 = vmatprep.subr.bf16.mxu1 %v9204_v37  ;;  %3333 = vmax.xlane.f32.xlu0 %v3332_v36 }
0x16b2   : > { %3336 = vmax.xlane.f32.xlu1 %v3335_v26 }
0x16b5   : > { %3339 = vmax.xlane.f32.xlu0 %v3338_v21 }
0x16b6   : > { %3342 = vmax.xlane.f32.xlu1 %v3341_v4 }
0x172e   : > { %v3131_v28 = vpop.xlane.xlu0 %3130 }
0x1732   : > { %v3125_v59 = vpop.xlane.xlu1 %3124 }
0x1736   : > { %v3128_v13 = vpop.xlane.xlu0 %3127  ;;  %v3134_v57 = vpop.xlane.xlu1 %3133 }
0x173a   : > { %v3334_v1 = vpop.xlane.xlu0 %3333 }
0x173b   : > { %v3337_v54 = vpop.xlane.xlu1 %3336  ;;  %v3344_v58 = vsub.f32 %v3318_v41, %v3334_v1 }
0x173c   : > { %v3345_v24 = vsub.f32 %v3321_v52, %v3337_v54 }
0x173d   : > { %v3348_v20 = vmul.f32 1.442695, %v3344_v58 }
0x173e   : > { %v3350_v39 = vmul.f32 1.442695, %v3345_v24  ;;  %v3340_v46 = vpop.xlane.xlu0 %3339 }
0x173f   : > { %7950 = vpow2.f32 %v3348_v20  ;;  %v3343_v9 = vpop.xlane.xlu1 %3342  ;;  %v3346_v45 = vsub.f32 %v3326_v14, %v3340_v46 }
0x1740   : > { %7952 = vpow2.f32 %v3350_v39  ;;  %v3347_v42 = vsub.f32 %v3329_v15, %v3343_v9 }
0x1741   : > { %v3352_v30 = vmul.f32 1.442695, %v3346_v45 }
0x1742   : > { %v3354_v35 = vmul.f32 1.442695, %v3347_v42 }
0x1743   : > { %7954 = vpow2.f32 %v3352_v30 }
0x1744   : > { %7956 = vpow2.f32 %v3354_v35 }
0x1745   : > { %7958 = vrcp.f32 %v3125_v59 }
0x1746   : > { %7960 = vrcp.f32 %v3134_v57 }
0x1747   : > { %7962 = vrcp.f32 %v3128_v13  ;;  %v7773_v13 = vld [vmem:[%s10277_s11 + $0x38] sm:$0xff]  }
0x1748   : > { %7964 = vrcp.f32 %v3131_v28 }
0x174c   : > { %v7951_v17 = vpop.eup %7950 }
0x174d   : > { %v7953_v48 = vpop.eup %7952  ;;  %v3356_v31 = vsel %vm843_vm1, %v7951_v17, 0.0 }
0x174e   : > { %v3359_v19 = vsel %vm843_vm1, %v7953_v48, 0.0  ;;  %3357 = vadd.xlane.f32.xlu0 %v3356_v31  ;;  %v3368_v59 = vpack.c.bf16 %v7953_v48, %v7951_v17  ;;  %v3019_v31 = vadd.f32 %v3018_v23, %v9184_v25 }
0x174f   : > { %3360 = vadd.xlane.f32.xlu1 %v3359_v19 }
0x1750   : > { %v7955_v41 = vpop.eup %7954 }
0x1751   : > { %v7957_v27 = vpop.eup %7956  ;;  %v3362_v52 = vsel %vm843_vm1, %v7955_v41, 0.0 }
0x1752   : > { %v3365_v5 = vsel %vm843_vm1, %v7957_v27, 0.0  ;;  %3363 = vadd.xlane.f32.xlu0 %v3362_v52  ;;  %v7959_v15 = vpop.eup %7958  ;;  %v3369_v28 = vpack.c.bf16 %v7957_v27, %v7955_v41 }
0x1753   : > { %3366 = vadd.xlane.f32.xlu1 %v3365_v5  ;;  %v7961_v21 = vpop.eup %7960 }
0x1754   : > { %v7963_v4 = vpop.eup %7962 }
0x1755   : > { %v7965_v58 = vpop.eup %7964 }
0x176f   : > { %v7302_v14 = vpop.f32.mrf.mxu1 }
0x1770   : > { %v3204_v39 = vmul.f32 %v7965_v58, %v7302_v14 }
0x1771   : > { %v3183_v36 = vpop.f32.mrf.mxu1 }
0x1772   : > { %v3202_v24 = vmul.f32 %v7959_v15, %v3183_v36 }
0x1773   : > { %v7303_v26 = vpop.f32.mrf.mxu1 }
0x1774   : > { %v3205_v1 = vmul.f32 %v7961_v21, %v7303_v26 }
0x1775   : > { %v3186_v54 = vpop.f32.mrf.mxu1 }
0x1776   : > { %v3203_v20 = vmul.f32 %v7963_v4, %v3186_v54  ;;  %v3207_v9 = vpack.c.bf16 %v3205_v1, %v3204_v39 }
0x1778   : > { %v3206_v46 = vpack.c.bf16 %v3203_v20, %v3202_v24 }
0x177a   : > { %7306 = vmatprep.mubr.msk.bf16.mxu1 %vm993_vm2, %v3206_v46 }
0x177b   : > { %7307 = vmatmul.mubr.msk.bf16.vlgmr.msra.gmra.mxu1 %vm993_vm2, %v3207_v9 }
0x177c   : > { %7319 = vmatpush3.bf16.msra.mxu1 %v9204_v37  ;;  %7322 = vmatprep.mubr.msk.bf16.mxu1 %vm843_vm1, %v3368_v59 }
0x177d   : > { %7320 = vmatprep.subr.bf16.mxu1 %v9211_v18 }
0x1780   : > { %7321 = vmatpush3.bf16.msra.mxu1 %v9211_v18 }
0x1781   : > { %7326 = vmatprep.subr.bf16.mxu1 %v7773_v13 }
0x1783   : > { %7323 = vmatmul.mubr.msk.bf16.vlgmr.msra.gmra.mxu1 %vm843_vm1, %v3369_v28 }
0x1784   : > { %7327 = vmatpush3.bf16.msra.mxu1 %v7773_v13 }
0x17d7   : > { %v3358_v45 = vpop.xlane.xlu0 %3357 }
0x17d8   : > { %v3361_v57 = vpop.xlane.xlu1 %3360  ;;  %7966 = vrcp.f32 %v3358_v45 }
0x17db   : > { %v3364_v37 = vpop.xlane.xlu0 %3363 }
0x17dc   : > { %v3367_v42 = vpop.xlane.xlu1 %3366 }
0x17dd   : > { %7968 = vrcp.f32 %v3367_v42 }
0x17de   : > { %7970 = vrcp.f32 %v3361_v57 }
0x17df   : > { %7972 = vrcp.f32 %v3364_v37 }
0x17e5   : > { %v7967_v14 = vpop.eup %7966 }
0x17ea   : > { %v7969_v15 = vpop.eup %7968 }
0x17eb   : > { %v7971_v26 = vpop.eup %7970 }
0x183b   : > { %v7308_v30 = vpop.f32.mrf.mxu1 }
0x183c   : > { %v3271_v35 = vadd.f32 %v7308_v30, %v9187_v32  ;;  %v7973_v32 = vpop.eup %7972 }
0x183d   : > { %v3254_v18 = vpop.f32.mrf.mxu1 }
0x183e   : > { %v3269_v17 = vadd.f32 %v3254_v18, %v9191_v16  ;;  %v7776_v18 = vld [vmem:[%s10279_s13 + $0x74] ss:$8 sps:$4 sm:$0xff]  }
0x183f   : > { %v7309_v48 = vpop.f32.mrf.mxu1  ;;  %3630 = vmatprep.subr.bf16.mxu0 %v7776_v18  ;;  %v7788_v18 = vld [vmem:[%s10280_s14 + $0x68] sm:$0xff]  }
0x1840   : > { %v3272_v19 = vadd.f32 %v7309_v48, %v9194_v2  ;;  %v7779_v48 = vld [vmem:[%s10279_s13 + $0x64] ss:$8 sps:$4 sm:$0xff]  }
0x1841   : > { %v3257_v41 = vpop.f32.mrf.mxu1 }
0x1842   : > { %v3270_v27 = vadd.f32 %v3257_v41, %v3019_v31  ;;  %v7777_v31 = vld [vmem:[%s10279_s13 + $0x60] ss:$8 sps:$4 sm:$0xff]   ;;  %v7780_v41 = vld [vmem:[%s10279_s13 + $0x50] ss:$8 sps:$4 sm:$0xff]  }
0x1843   : > { %v7324_v52 = vpop.f32.mrf.mxu1 }
0x1844   : > { %v3431_v58 = vmul.f32 %v7973_v32, %v7324_v52  ;;  %v7785_v52 = vld [vmem:[%s10279_s13 + $0x44] ss:$8 sps:$4 sm:$0xff]  }
0x1845   : > { %v3410_v5 = vpop.f32.mrf.mxu1 }
0x1846   : > { %v3429_v1 = vmul.f32 %v7967_v14, %v3410_v5 }
0x1847   : > { %v7325_v36 = vpop.f32.mrf.mxu1 }
0x1848   : > { %v3432_v21 = vmul.f32 %v7969_v15, %v7325_v36 }
0x1849   : > { %v3413_v4 = vpop.f32.mrf.mxu1 }
0x184a   : > { %v3430_v54 = vmul.f32 %v7971_v26, %v3413_v4  ;;  %v3434_v24 = vpack.c.bf16 %v3432_v21, %v3431_v58 }
0x184c   : > { %v3433_v16 = vpack.c.bf16 %v3430_v54, %v3429_v1 }
0x184e   : > { %7328 = vmatprep.mubr.msk.bf16.mxu1 %vm993_vm2, %v3433_v16 }
0x184f   : > { %7329 = vmatmul.mubr.msk.bf16.vlgmr.msra.gmra.mxu1 %vm993_vm2, %v3434_v24 }
0x190f   : > { %v7330_v25 = vpop.f32.mrf.mxu1 }
0x1910   : > { %v3498_v2 = vadd.f32 %v7330_v25, %v3271_v35 }
0x1911   : > { %v3481_v23 = vpop.f32.mrf.mxu1 }
0x1912   : > { %v3496_v20 = vadd.f32 %v3481_v23, %v3269_v17  ;;  %v9251_v46 = vadd.f32 %v3498_v2, %v8908_v12  ;;  %v7774_v17 = vld [vmem:[%s10279_s13 + $0x70] ss:$8 sps:$4 sm:$0xff]   ;;  %v6615_v23 = vld [vmem:[%s10278_s12 + $0x1] ss:$0 sm:$0xff] }
0x1913   : > { %v7331_v39 = vpop.f32.mrf.mxu1  ;;  %3631 = vmatpush1.bf16.msra.mxu0 %v7774_v17  ;;  %v7790_v17 = vld [vmem:[%s10280_s14 + $0x58] sm:$0xff]  }
0x1914   : > { %v9254_v9 = vadd.f32 %v3496_v20, %v8911_v60  ;;  %v3499_v59 = vadd.f32 %v7331_v39, %v3272_v19  ;;  %v3534_v12 = vmul.f32 %v9251_v46, %v9251_v46  ;;  %3632 = vmatprep.subr.bf16.mxu0 %v7779_v48  ;;  %v7782_v19 = vld [vmem:[%s10279_s13 + $0x54] ss:$8 sps:$4 sm:$0xff]  }
0x1915   : > { %v3484_v28 = vpop.f32.mrf.mxu1  ;;  %v7791_v48 = vld [vmem:[%s10280_s14 + $0x50] sm:$0xff]  }
0x1916   : > { %v3497_v13 = vadd.f32 %v3484_v28, %v3270_v27  ;;  %v3532_v57 = vmul.f32 %v9254_v9, %v9254_v9  ;;  %v9259_v45 = vadd.f32 %v3499_v59, %v8916_v29  ;;  %v3542_v30 = vsel %vm611_vm0, %v3534_v12, 0.0  ;;  %v7783_v27 = vld [vmem:[%s10279_s13 + $0x40] ss:$8 sps:$4 sm:$0xff]  }
0x1917   : > { %3633 = vmatpush1.bf16.msra.mxu0 %v7777_v31  ;;  %v7792_v31 = vld [vmem:[%s10280_s14 + $0x48] sm:$0xff]  }
0x1918   : > { %v9262_v42 = vadd.f32 %v3497_v13, %v8919_v61  ;;  %v3536_v37 = vsel %vm611_vm0, %v3532_v57, 0.0  ;;  %v3535_v29 = vmul.f32 %v9259_v45, %v9259_v45  ;;  %3634 = vmatprep.subr.bf16.mxu0 %v7782_v19  ;;  %v7793_v19 = vld [vmem:[%s10280_s14 + $0x40] sm:$0xff]  }
0x1919   : > { %3537 = vadd.xlane.f32.xlu0 %v3536_v37 }
0x191a   : > { %v3533_v60 = vmul.f32 %v9262_v42, %v9262_v42  ;;  %v3545_v61 = vsel %vm611_vm0, %v3535_v29, 0.0  ;;  %v7786_v29 = vld [vmem:[%s10280_s14 + $0x78] sm:$0xff]  }
0x191b   : > { %3635 = vmatpush1.bf16.msra.mxu0 %v7780_v41  ;;  %7332 = vmatprep.subr.bf16.mxu1 %v7786_v29 }
0x191c   : > { %v3539_v35 = vsel %vm611_vm0, %v3533_v60, 0.0  ;;  %3636 = vmatprep.subr.bf16.mxu0 %v7785_v52  ;;  %7333 = vmatpush3.bf16.msra.mxu1 %v7786_v29 }
0x191d   : > { %3543 = vadd.xlane.f32.xlu0 %v3542_v30  ;;  %3540 = vadd.xlane.f32.xlu1 %v3539_v35 }
0x191f   : > { %3637 = vmatpush1.bf16.msra.mxu0 %v7783_v27 }
0x1921   : > { %3546 = vadd.xlane.f32.xlu1 %v3545_v61  ;;  %v7787_v61 = vld [vmem:[%s10280_s14 + $0x70] sm:$0xff]  }
0x1922   : > { %7334 = vmatprep.subr.bf16.mxu1 %v7787_v61 }
0x1923   : > { %7335 = vmatpush3.bf16.msra.mxu1 %v7787_v61 }
0x1924   : > { %7336 = vmatprep.subr.bf16.mxu1 %v7788_v18 }
0x1927   : > { %7337 = vmatpush3.bf16.msra.mxu1 %v7788_v18 }
0x19a2   : > { %v3538_v5 = vpop.xlane.xlu0 %3537 }
0x19a3   : > { %v3548_v14 = vmul.f32 0.015625, %v3538_v5 }
0x19a5   : > { %v3552_v36 = vadd.f32 1e-05, %v3548_v14 }
0x19a6   : > { %v3544_v15 = vpop.xlane.xlu0 %3543  ;;  %v3541_v26 = vpop.xlane.xlu1 %3540 }
0x19a7   : > { %v3549_v21 = vmul.f32 0.015625, %v3541_v26  ;;  %7974 = vrsqrt.f32 %v3552_v36  ;;  %v3550_v4 = vmul.f32 0.015625, %v3544_v15 }
0x19a9   : > { %v3553_v32 = vadd.f32 1e-05, %v3549_v21  ;;  %v3554_v58 = vadd.f32 1e-05, %v3550_v4 }
0x19aa   : > { %v3547_v1 = vpop.xlane.xlu1 %3546 }
0x19ab   : > { %v3551_v54 = vmul.f32 0.015625, %v3547_v1  ;;  %7976 = vrsqrt.f32 %v3553_v32 }
0x19ad   : > { %v3555_v16 = vadd.f32 1e-05, %v3551_v54 }
0x19af   : > { %7978 = vrsqrt.f32 %v3555_v16 }
0x19b0   : > { %7980 = vrsqrt.f32 %v3554_v58 }
0x19b4   : > { %v7975_v24 = vpop.eup %7974 }
0x19b5   : > { %v3560_v25 = vmul.f32 %v7975_v24, %v9254_v9 }
0x19b7   : > { %v3570_v59 = vmul.f32 %v6615_v23, %v3560_v25 }
0x19b8   : > { %v7977_v2 = vpop.eup %7976 }
0x19b9   : > { %v3561_v20 = vmul.f32 %v7977_v2, %v9262_v42 }
0x19bb   : > { %v3571_v28 = vmul.f32 %v6615_v23, %v3561_v20 }
0x19bc   : > { %v7979_v39 = vpop.eup %7978 }
0x19bd   : > { %v7981_v13 = vpop.eup %7980  ;;  %v3574_v57 = vpack.c.bf16 %v3571_v28, %v3570_v59  ;;  %v3563_v37 = vmul.f32 %v7979_v39, %v9259_v45 }
0x19be   : > { %v3562_v12 = vmul.f32 %v7981_v13, %v9251_v46 }
0x19bf   : > { %6624 = vmatmul.mubr.msk.bf16.vlgmr.msra.gmra.mxu0 %vm611_vm0, %v3574_v57  ;;  %v3573_v60 = vmul.f32 %v6615_v23, %v3563_v37 }
0x19c0   : > { %3664 = vmatprep.mubr.bf16.mxu0 %v10352_v3  ;;  %v3572_v30 = vmul.f32 %v6615_v23, %v3562_v12 }
0x19c2   : > { %v3575_v35 = vpack.c.bf16 %v3573_v60, %v3572_v30 }
0x19c7   : > { %6625 = vmatmul.mubr.msk.bf16.gmra.mxu0 %vm611_vm0, %v3575_v35 }
0x19c8   : > { %3922 = vmatprep.mubr.bf16.mxu0 %v10352_v3  ;;  %v7789_v3 = vld [vmem:[%s10280_s14 + $0x60] sm:$0xff]  }
0x19c9   : > { %7338 = vmatprep.subr.bf16.mxu1 %v7789_v3 }
0x19ca   : > { %7339 = vmatpush3.bf16.msra.mxu1 %v7789_v3 }
0x19cb   : > { %7340 = vmatprep.subr.bf16.mxu1 %v7790_v17 }
0x19ce   : > { %7341 = vmatpush3.bf16.msra.mxu1 %v7790_v17 }
0x19cf   : > { %7342 = vmatprep.subr.bf16.mxu1 %v7791_v48 }
0x19d2   : > { %7343 = vmatpush3.bf16.msra.mxu1 %v7791_v48 }
0x19d3   : > { %7344 = vmatprep.subr.bf16.mxu1 %v7792_v31 }
0x19d6   : > { %7345 = vmatpush3.bf16.msra.mxu1 %v7792_v31 }
0x19d7   : > { %7346 = vmatprep.subr.bf16.mxu1 %v7793_v19 }
0x19da   : > { %7347 = vmatpush3.bf16.msra.mxu1 %v7793_v19 }
0x1a7f   : > { %v3656_v41 = vpop.f32.mrf.mxu0 }
0x1a80   : > { %v3675_v27 = vsub.f32 0.0, %v3656_v41 }
0x1a81   : > { %v3658_v52 = vpop.f32.mrf.mxu0 }
0x1a82   : > { %v3679_v5 = vmul.f32 1.442695, %v3675_v27 }
0x1a83   : > { %v3660_v14 = vpop.f32.mrf.mxu0 }
0x1a84   : > { %7982 = vpow2.f32 %v3679_v5  ;;  %v3676_v36 = vsub.f32 0.0, %v3660_v14  ;;  %v3807_v5 = vstv %s6634_s26  ;;  %s10354_s26 = sld [smem:[#allocation37_spill]] }
0x1a85   : > { %v3662_v15 = vpop.f32.mrf.mxu0  ;;  %vm3808_vm12 = vcmp.eq.s32.totalorder %v8617_v6, %v3807_v5  ;;  %vm3810_vm13 = vcmp.eq.s32.totalorder %v8620_v7, %v3807_v5  ;;  %vm3809_vm14 = vcmp.eq.s32.totalorder %v8634_v11, %v3807_v5  ;;  %vm3811_vm15 = vcmp.eq.s32.totalorder %v8629_v10, %v3807_v5 }
0x1a86   : > { %v3681_v26 = vmul.f32 1.442695, %v3676_v36 }
0x1a87   : > { %v3666_v21 = vpop.f32.mrf.mxu0 }
0x1a88   : > { %7984 = vpow2.f32 %v3681_v26  ;;  %v3677_v4 = vsub.f32 0.0, %v3666_v21 }
0x1a89   : > { %v3668_v32 = vpop.f32.mrf.mxu0 }
0x1a8a   : > { %v3683_v1 = vmul.f32 1.442695, %v3677_v4 }
0x1a8b   : > { %v3670_v54 = vpop.f32.mrf.mxu0 }
0x1a8c   : > { %7986 = vpow2.f32 %v3683_v1  ;;  %v3678_v58 = vsub.f32 0.0, %v3670_v54 }
0x1a8d   : > { %v3672_v17 = vpop.f32.mrf.mxu0 }
0x1a8e   : > { %v3685_v16 = vmul.f32 1.442695, %v3678_v58 }
0x1a90   : > { %7988 = vpow2.f32 %v3685_v16 }
0x1a91   : > { %v7983_v24 = vpop.eup %7982 }
0x1a92   : > { %v3687_v25 = vadd.f32 1.0, %v7983_v24 }
0x1a94   : > { %7990 = vrcp.f32 %v3687_v25 }
0x1a95   : > { %v7985_v2 = vpop.eup %7984 }
0x1a96   : > { %v3688_v23 = vadd.f32 1.0, %v7985_v2 }
0x1a98   : > { %7992 = vrcp.f32 %v3688_v23 }
0x1a99   : > { %v7987_v20 = vpop.eup %7986 }
0x1a9a   : > { %v3689_v39 = vadd.f32 1.0, %v7987_v20 }
0x1a9c   : > { %7994 = vrcp.f32 %v3689_v39 }
0x1a9d   : > { %v7989_v59 = vpop.eup %7988 }
0x1a9e   : > { %v3690_v28 = vadd.f32 1.0, %v7989_v59 }
0x1aa0   : > { %7996 = vrcp.f32 %v3690_v28 }
0x1aa1   : > { %v7991_v13 = vpop.eup %7990 }
0x1aa2   : > { %v3695_v57 = vmul.f32 %v7991_v13, %v3656_v41 }
0x1aa4   : > { %v3699_v60 = vmul.f32 %v3695_v57, %v3658_v52 }
0x1aa5   : > { %v7993_v37 = vpop.eup %7992 }
0x1aa6   : > { %v3696_v12 = vmul.f32 %v7993_v37, %v3660_v14  ;;  %v8238_v14 = vmov 0.0   ;;  %v9350_v37 = vld [vmem:[%s10282_s16 + $0x34] ss:$8 sps:$4 sm:$0xff]  }
0x1aa7   : > { %v6635_v36 = vsel %vm3808_vm12, 1.0, %v8238_v14  ;;  %v6638_v7 = vsel %vm3811_vm15, 1.0, %v8238_v14  ;;  %3898 = vmatprep.subr.bf16.mxu0 %v9350_v37 }
0x1aa8   : > { %v3700_v30 = vmul.f32 %v3696_v12, %v3662_v15  ;;  %v9355_v12 = vld [vmem:[%s10282_s16 + $0x30] ss:$8 sps:$4 sm:$0xff]  }
0x1aa9   : > { %v7995_v35 = vpop.eup %7994  ;;  %3899 = vmatpush1.bf16.msra.mxu0 %v9355_v12 }
0x1aaa   : > { %v3703_v29 = vpack.c.bf16 %v3700_v30, %v3699_v60  ;;  %v3697_v61 = vmul.f32 %v7995_v35, %v3666_v21  ;;  %v6637_v21 = vsel %vm3810_vm13, 1.0, %v8238_v14  ;;  %v9362_v60 = vld [vmem:[%s10282_s16 + $0x24] ss:$8 sps:$4 sm:$0xff]   ;;  %v9367_v30 = vld [vmem:[%s10282_s16 + $0x20] ss:$8 sps:$4 sm:$0xff]  }
0x1aab   : > { %3900 = vmatprep.subr.bf16.mxu0 %v9362_v60  ;;  %v9374_v35 = vld [vmem:[%s10282_s16 + $0x14] ss:$8 sps:$4 sm:$0xff]  }
0x1aac   : > { %7348 = vmatprep.mubr.bf16.mxu1 %v3703_v29  ;;  %v3701_v48 = vmul.f32 %v3697_v61, %v3668_v32  ;;  %v6636_v32 = vsel %vm3809_vm14, 1.0, %v8238_v14  ;;  %v9379_v29 = vld [vmem:[%s10282_s16 + $0x10] ss:$8 sps:$4 sm:$0xff]   ;;  %v9386_v61 = vld [vmem:[%s10282_s16 + $0x4] ss:$8 sps:$4 sm:$0xff]  }
0x1aad   : > { %v7997_v18 = vpop.eup %7996  ;;  %3901 = vmatpush1.bf16.msra.mxu0 %v9367_v30 }
0x1aae   : > { %v3698_v3 = vmul.f32 %v7997_v18, %v3670_v54  ;;  %3902 = vmatprep.subr.bf16.mxu0 %v9374_v35  ;;  %v9391_v18 = vld [vmem:[%s10282_s16] ss:$8 sps:$4 sm:$0xff]  }
0x1ab0   : > { %v3702_v31 = vmul.f32 %v3698_v3, %v3672_v17 }
0x1ab1   : > { %3903 = vmatpush1.bf16.msra.mxu0 %v9379_v29 }
0x1ab2   : > { %v3704_v19 = vpack.c.bf16 %v3702_v31, %v3701_v48  ;;  %3904 = vmatprep.subr.bf16.mxu0 %v9386_v61 }
0x1ab4   : > { %7349 = vmatmul.mubr.bf16.vlgmr.msra.gmra.mxu1 %v3704_v19  ;;  %v9398_v19 = vld [vmem:[%s10281_s15] sm:$0x1] }
0x1ab5   : > { %3905 = vmatpush1.bf16.msra.mxu0 %v9391_v18 }
0x1b74   : > { %v7350_v27 = vpop.f32.mrf.mxu1 }
0x1b75   : > { %v3804_v26 = vadd.f32 %v7350_v27, %v9251_v46 }
0x1b76   : > { %v3787_v41 = vpop.f32.mrf.mxu1 }
0x1b77   : > { %v3802_v52 = vadd.f32 %v3787_v41, %v9254_v9  ;;  %v3822_v58 = vmul.f32 %v6637_v21, %v3804_v26 }
0x1b78   : > { %v7351_v15 = vpop.f32.mrf.mxu1 }
0x1b79   : > { %v3820_v1 = vmul.f32 %v6635_v36, %v3802_v52  ;;  %v3805_v6 = vadd.f32 %v7351_v15, %v9259_v45  ;;  %v3827_v46 = vsel %vm611_vm0, %v3822_v58, 0.0 }
0x1b7a   : > { %v3790_v4 = vpop.f32.mrf.mxu1 }
0x1b7b   : > { %v3803_v54 = vadd.f32 %v3790_v4, %v9262_v42  ;;  %v3824_v11 = vsel %vm611_vm0, %v3820_v1, 0.0  ;;  %v3823_v16 = vmul.f32 %v6638_v7, %v3805_v6 }
0x1b7d   : > { %v3821_v9 = vmul.f32 %v6636_v32, %v3803_v54  ;;  %v3829_v2 = vsel %vm611_vm0, %v3823_v16, 0.0 }
0x1b7f   : > { %v3825_v24 = vsel %vm611_vm0, %v3821_v9, 0.0 }
0x1b80   : > { %v3826_v25 = vadd.f32 %v3825_v24, %v3824_v11 }
0x1b82   : > { %v3828_v10 = vadd.f32 %v3827_v46, %v3826_v25 }
0x1b84   : > { %v3830_v23 = vadd.f32 %v3829_v2, %v3828_v10  ;;  %v9466_v10 = vld [vmem:[%s10354_s26 + $0x8] sm:$0xf]  ;;  %v9471_v2 = vld [vmem:[%s10354_s26 + $0xc] sm:$0xf] }
0x1b85   : > { %10356 = vst [vmem:[#allocation23_spill] sm:$0xff] %v9466_v10  ;;  %10357 = vst [vmem:[#allocation24_spill] sm:$0xff] %v9471_v2 }
0x1b86   : > { %v3831_v20 = vrot.slane %v3830_v23, 4 }
0x1b88   : > { %v3832_v39 = vadd.f32 %v3831_v20, %v3830_v23  ;;  %v9476_v23 = vld [vmem:[%s10354_s26 + $0x10] sm:$0xf]  ;;  %v9481_v20 = vld [vmem:[%s10354_s26 + $0x14] sm:$0xf] }
0x1b89   : > { %10358 = vst [vmem:[#allocation25_spill] sm:$0xff] %v9476_v23  ;;  %10359 = vst [vmem:[#allocation26_spill] sm:$0xff] %v9481_v20 }
0x1b8a   : > { %v3833_v45 = vrot.slane %v3832_v39, 2 }
0x1b8c   : > { %v3834_v59 = vadd.f32 %v3833_v45, %v3832_v39  ;;  %v9486_v39 = vld [vmem:[%s10354_s26 + $0x18] sm:$0xf]  ;;  %v9491_v45 = vld [vmem:[%s10354_s26 + $0x1c] sm:$0xf] }
0x1b8e   : > { %v3835_v42 = vrot.slane %v3834_v59, 1 }
0x1b90   : > { %v3836_v28 = vadd.f32 %v3835_v42, %v3834_v59  ;;  %v9496_v59 = vld [vmem:[%s10354_s26 + $0x20] sm:$0xf] }
0x1b92   : > { %v3837_v13 = vmul.f32 %v3836_v28, %v3836_v28 }
0x1b94   : > { %v3838_v57 = vsel %vm611_vm0, %v3837_v13, 0.0  ;;  %v9508_v13 = vld [vmem:[%s10354_s26 + $0x28] sm:$0xf] }
0x1b95   : > { %3839 = vadd.xlane.f32.xlu0 %v3838_v57  ;;  %10360 = vst [vmem:[#allocation27_spill] sm:$0xff] %v9508_v13  ;;  %v9513_v57 = vld [vmem:[%s10354_s26 + $0x2c] sm:$0xf] }
0x1c1e   : > { %v3840_v3 = vpop.xlane.xlu0 %3839 }
0x1c1f   : > { %v3841_v17 = vmul.f32 0.015625, %v3840_v3  ;;  %v9524_v3 = vld [vmem:[%s10354_s26 + $0x34] sm:$0xf] }
0x1c20   : > { %10361 = vst [vmem:[#allocation28_spill] sm:$0xff] %v9524_v3 }
0x1c21   : > { %v3842_v48 = vadd.f32 1e-05, %v3841_v17  ;;  %v9529_v17 = vld [vmem:[%s10354_s26 + $0x38] sm:$0xf] }
0x1c22   : > { %10362 = vst [vmem:[#allocation29_spill] sm:$0xff] %v9529_v17 }
0x1c23   : > { %7998 = vrsqrt.f32 %v3842_v48  ;;  %v9534_v48 = vld [vmem:[%s10354_s26 + $0x3c] sm:$0xf] }
0x1c30   : > { %v7999_v31 = vpop.eup %7998 }
0x1c31   : > { %v3844_v27 = vmul.f32 %v7999_v31, %v3836_v28  ;;  %v9503_v28 = vld [vmem:[%s10354_s26 + $0x24] sm:$0xf]  ;;  %v9539_v31 = vld [vmem:[%s10354_s26 + $0x40] sm:$0xf] }
0x1c33   : > { %v3845_v5 = vmul.f32 %v3844_v27, %v9398_v19  ;;  %v9544_v27 = vld [vmem:[%s10354_s26 + $0x44] sm:$0xf] }
0x1c35   : > { %v3846_v41 = vpack.c.bf16 %v3845_v5, %v3845_v5  ;;  %v9549_v5 = vld [vmem:[%s10354_s26 + $0x48] sm:$0xf] }
0x1c36   : > { %10363 = vst [vmem:[#allocation30_spill] sm:$0xff] %v9549_v5 }
0x1c37   : > { %6647 = vmatmul.mubr.msk.bf16.vlgmr.msra.gmra.mxu0 %vm611_vm0, %v3846_v41  ;;  %v9554_v41 = vld [vmem:[%s10354_s26 + $0x4c] sm:$0xf] }
0x1cf7   : > { %v3924_v52 = vpop.f32.mrf.mxu0 }
0x1cf8   : > { %v3932_v36 = vsel %vm3931_vm3, %v3924_v52, -inf }
0x1cf9   : > { %v3926_v14 = vpop.f32.mrf.mxu0 }
0x1cfa   : > { %v3933_v15 = vsel %vm3931_vm3, %v3926_v14, -inf }
0x1cfb   : > { %v3934_v26 = vmax.f32 %v3932_v36, %v3933_v15  ;;  %v3928_v21 = vpop.f32.mrf.mxu0  ;;  %v9564_v36 = vld [vmem:[%s10354_s26 + $0x54] sm:$0xf]  ;;  %v9569_v15 = vld [vmem:[%s10354_s26 + $0x58] sm:$0xf] }
0x1cfc   : > { %10364 = vst [vmem:[#allocation31_spill] sm:$0xff] %v9569_v15  ;;  %v9580_v21 = vld [vmem:[%s10354_s26 + $0x60] sm:$0xf] }
0x1cfd   : > { %3935 = vmax.xlane.f32.xlu1 %v3934_v26  ;;  %v3929_v4 = vpop.f32.mrf.mxu0  ;;  %v9574_v26 = vld [vmem:[%s10354_s26 + $0x5c] sm:$0xf]  ;;  %10366 = vst [vmem:[#allocation33_spill] sm:$0xff] %v9580_v21 }
0x1cfe   : > { %10365 = vst [vmem:[#allocation32_spill] sm:$0xff] %v9574_v26  ;;  %v9585_v4 = vld [vmem:[%s10354_s26 + $0x64] sm:$0xf] }
0x1cff   : > { %10367 = vst [vmem:[#allocation34_spill] sm:$0xff] %v9585_v4 }
0x1d0e   : > { %949 = vrot.lane.b32.xlu1 %v8586_v63, %s10346_s28 }
0x1d12   : > { %951 = vrot.lane.b32.xlu1 %v8568_v44, %s10346_s28  ;;  %v9421_v44 = vadd.s32 128, %v8622_v8 }
0x1d16   : > { %953 = vrot.lane.b32.xlu1 %v8570_v55, %s10346_s28 }
0x1d1a   : > { %969 = vrot.lane.b32.xlu1 %v8476_v53, %s10347_s20 }
0x1d1e   : > { %973 = vrot.lane.b32.xlu1 %v8470_v51, %s10347_s20 }
0x1d22   : > { %2530 = vrot.lane.b32.xlu1 %v9058_v38, %s10346_s28 }
0x1d26   : > { %2534 = vrot.lane.b32.xlu1 %v9046_v34, %s10346_s28 }
0x1d2a   : > { %2550 = vrot.lane.b32.xlu1 %v8974_v33, %s10347_s20 }
0x1d86   : > { %v3936_v63 = vpop.xlane.xlu1 %3935 }
0x1d87   : > { %vm3938_vm4 = vcmp.ge.f32.partialorder %v3924_v52, %v3936_v63  ;;  %vm3939_vm5 = vcmp.ge.f32.partialorder %v3926_v14, %v3936_v63  ;;  %v9559_v52 = vld [vmem:[%s10354_s26 + $0x50] sm:$0xf]  ;;  %v9590_v63 = vld [vmem:[%s10354_s26 + $0x68] sm:$0xf] }
0x1d88   : > { %v3940_v53 = vsel %vm3938_vm4, %v8622_v8, 256  ;;  %v3941_v55 = vsel %vm3939_vm5, %v9421_v44, 256 }
0x1d89   : > { %v3942_v51 = vsel %vm3931_vm3, %v3940_v53, 2147483647  ;;  %v3943_v38 = vsel %vm3931_vm3, %v3941_v55, 2147483647  ;;  %v9595_v53 = vld [vmem:[%s10354_s26 + $0x6c] sm:$0xf] }
0x1d8a   : > { %vm3944_vm6 = vcmp.lt.s32.totalorder %v3942_v51, %v3943_v38  ;;  %v950_v32 = vpop.permute.xlu1 %949  ;;  %v9600_v55 = vld [vmem:[%s10354_s26 + $0x70] sm:$0xf] }
0x1d8b   : > { %960 = vst.msk [vmem:[#allocation2 + $0x8] sm:$0xff] %vm843_vm1, %v950_v32  ;;  %v3945_v34 = vsel %vm3944_vm6, %v3942_v51, %v3943_v38  ;;  %v9605_v51 = vld [vmem:[%s10354_s26 + $0x74] sm:$0xf]  ;;  %v9610_v38 = vld [vmem:[%s10354_s26 + $0x78] sm:$0xf] }
0x1d8c   : > { %v3947_v33 = vshra.s32 %v3945_v34, 16  ;;  %v9615_v32 = vld [vmem:[%s10354_s26 + $0x7c] sm:$0xf] }
0x1d8e   : > { %v952_v1 = vpop.permute.xlu1 %951  ;;  %v3949_v6 = vcvt.s32.f32 %v3947_v33 }
0x1d8f   : > { %961 = vst.msk [vmem:[#allocation2 + $0x10] sm:$0xff] %vm843_vm1, %v952_v1 }
0x1d90   : > { %3950 = vmin.xlane.f32.xlu0 %v3949_v6 }
0x1d92   : > { %v954_v54 = vpop.permute.xlu1 %953 }
0x1d93   : > { %962 = vst.msk [vmem:[#allocation2 + $0x18] sm:$0xff] %vm843_vm1, %v954_v54 }
0x1d96   : > { %v970_v7 = vpop.permute.xlu1 %969 }
0x1d97   : > { %980 = vst.msk [vmem:[#allocation3 + $0x8] sm:$0xff] %vm843_vm1, %v970_v7 }
0x1d9a   : > { %v974_v58 = vpop.permute.xlu1 %973 }
0x1d9b   : > { %982 = vst.msk [vmem:[#allocation3 + $0x18] sm:$0xff] %vm843_vm1, %v974_v58 }
0x1d9e   : > { %v2531_v9 = vpop.permute.xlu1 %2530 }
0x1d9f   : > { %2541 = vst.msk [vmem:[#allocation4 + $0x8] sm:$0xff] %vm843_vm1, %v2531_v9 }
0x1da2   : > { %v2535_v11 = vpop.permute.xlu1 %2534 }
0x1da3   : > { %2543 = vst.msk [vmem:[#allocation4 + $0x18] sm:$0xff] %vm843_vm1, %v2535_v11 }
0x1da6   : > { %947 = vrot.lane.b32.xlu0 %v8584_v62, %s10346_s28  ;;  %v2551_v16 = vpop.permute.xlu1 %2550  ;;  %v3946_v62 = vand.u32 65535, %v3945_v34 }
0x1da7   : > { %2561 = vst.msk [vmem:[#allocation5 + $0x8] sm:$0xff] %vm843_vm1, %v2551_v16 }
0x1da8   : > { %v3948_v25 = vcvt.s32.f32 %v3946_v62 }
0x1daa   : > { %967 = vrot.lane.b32.xlu0 %v8468_v50, %s10347_s20 }
0x1dae   : > { %971 = vrot.lane.b32.xlu0 %v8466_v49, %s10347_s20 }
0x1db2   : > { %2528 = vrot.lane.b32.xlu0 %v9056_v40, %s10346_s28 }
0x1db6   : > { %2532 = vrot.lane.b32.xlu0 %v9044_v22, %s10346_s28  ;;  %s10368_s28 = sand.u32 1, %s8206_s0  }
0x1db7   : > { %s9622_s1 = scalar_lea.vmem [#allocation8], %s10368_s28 }
0x1dba   : > { %2548 = vrot.lane.b32.xlu0 %v8966_v43, %s10347_s20  ;;  %v9461_v43 = vld [vmem:[%s10354_s26 + $0x4] sm:$0xf] }
0x1dbe   : > { %2552 = vrot.lane.b32.xlu0 %v8964_v0, %s10347_s20  ;;  %v9456_v0 = vld [vmem:[%s10354_s26] sm:$0xf] }
0x1dbf   : > { %10355 = vst [vmem:[#allocation22_spill] sm:$0xff] %v9456_v0 }
0x1e19   : > { %v3951_v24 = vpop.xlane.xlu0 %3950 }
0x1e1a   : > { %vm3952_vm7 = vcmp.eq.f32.partialorder %v3949_v6, %v3951_v24  ;;  %v3957_v33 = vcvt.f32.s32 %v3951_v24 }
0x1e1b   : > { %v3953_v50 = vsel %vm3952_vm7, %v3948_v25, inf }
0x1e1c   : > { %3954 = vmin.xlane.f32.xlu1 %v3953_v50  ;;  %v3958_v6 = vshll.u32 %v3957_v33, 16 }
0x1e1d   : > { %v948_v46 = vpop.permute.xlu0 %947 }
0x1e1e   : > { %959 = vst.msk [vmem:[#allocation2] sm:$0xff] %vm843_vm1, %v948_v46 }
0x1e21   : > { %v968_v49 = vpop.permute.xlu0 %967 }
0x1e22   : > { %979 = vst.msk [vmem:[#allocation3] sm:$0xff] %vm843_vm1, %v968_v49 }
0x1e25   : > { %v972_v40 = vpop.permute.xlu0 %971 }
0x1e26   : > { %981 = vst.msk [vmem:[#allocation3 + $0x10] sm:$0xff] %vm843_vm1, %v972_v40 }
0x1e29   : > { %v2529_v22 = vpop.permute.xlu0 %2528 }
0x1e2a   : > { %2540 = vst.msk [vmem:[#allocation4] sm:$0xff] %vm843_vm1, %v2529_v22 }
0x1e2d   : > { %v2533_v42 = vpop.permute.xlu0 %2532  ;;  %2554 = vrot.lane.b32.xlu1 %v8968_v56, %s10347_s20  ;;  %v9519_v56 = vld [vmem:[%s10354_s26 + $0x30] sm:$0xf] }
0x1e2e   : > { %2542 = vst.msk [vmem:[#allocation4 + $0x10] sm:$0xff] %vm843_vm1, %v2533_v42 }
0x1e31   : > { %v2549_v14 = vpop.permute.xlu0 %2548 }
0x1e32   : > { %2560 = vst.msk [vmem:[#allocation5] sm:$0xff] %vm843_vm1, %v2549_v14 }
0x1e35   : > { %v2553_v34 = vpop.permute.xlu0 %2552 }
0x1e36   : > { %2562 = vst.msk [vmem:[#allocation5 + $0x10] sm:$0xff] %vm843_vm1, %v2553_v34 }
0x1ea5   : > { %v3955_v1 = vpop.xlane.xlu1 %3954 }
0x1ea6   : > { %v3956_v54 = vcvt.f32.s32 %v3955_v1 }
0x1ea8   : > { %v3959_v7 = vadd.s32 %v3958_v6, %v3956_v54  }
0x1ea9   : > { %v2555_v58 = vpop.permute.xlu1 %2554 }
0x1eaa   : > { %v3961_v9 = vsel %vm3960_vm8, %v3959_v7, 0   ;;  %2563 = vst.msk [vmem:[#allocation5 + $0x18] sm:$0xff] %vm843_vm1, %v2555_v58 }
0x1eab LB: >> { %v6666_v11 = vcombine.low %v9610_v38, %v9615_v32  ;;  %v10369_v17 = vld [vmem:[#allocation29_spill] sm:$0xff]  ;;  %v6665_v62 = vcombine.low %v9600_v55, %v9605_v51  ;;  %v10370_v3 = vld [vmem:[#allocation28_spill] sm:$0xff]  ;;  %v6664_v25 = vcombine.low %v9590_v63, %v9595_v53  ;;  %vm4005_vm9 = vcmp.eq.s32.totalorder %v9421_v44, %v8222_v7  ;;  %v10371_v13 = vld [vmem:[#allocation27_spill] sm:$0xff]  ;;  %s9704_s28 = sadd.s32 %s8226_s22, %s8615_s27  ;;  %s10323_s24 = smov 64   ;;  %s8226_s22 = sphi %s9628_s22, %s3999_s22   ;;  %v8222_v7 = vphi %v3959_v7, %v6371_v7   ;;  %v8218_v9 = vphi %v3961_v9, %v10395_v9  }
0x1eac   : >> { %v6658_v16 = vcombine.low %v10369_v17, %v9534_v48  ;;  %v6657_v24 = vcombine.low %v9519_v56, %v10370_v3  ;;  %v6656_v50 = vcombine.low %v10371_v13, %v9513_v57  ;;  %vm6667_vm10 = vmpackc.low %vm4005_vm9, %vm4005_vm9  ;;  %v10372_v4 = vld [vmem:[#allocation34_spill] sm:$0xff]  ;;  %v10373_v21 = vld [vmem:[#allocation33_spill] sm:$0xff]  ;;  %v8239_v49 = vmov 1.0|1.0   ;;  %s9707_s7 = sadd.s32 4294967295, %s9704_s28  ;;  %s10316_s30 = smov 32  }
0x1ead   : >> { %6942 = vmatprep.subr.bf16.mxu0 %v6666_v11  ;;  %v6663_v46 = vcombine.low %v10373_v21, %v10372_v4  ;;  %6668 = vmatprep.mubr.msk.bf16.mxu0 %vm6667_vm10, %v8239_v49  ;;  %v6655_v40 = vcombine.low %v9496_v59, %v9503_v28  ;;  %v10374_v26 = vld [vmem:[#allocation32_spill] sm:$0xff]  ;;  %v10375_v15 = vld [vmem:[#allocation31_spill] sm:$0xff]  ;;  %v6654_v42 = vcombine.low %v9486_v39, %v9491_v45  ;;  %v10376_v20 = vld [vmem:[#allocation26_spill] sm:$0xff]  ;;  %vm4169_vm13 = vcmask 516096   ;;  %s4152_s20 = scalar_lea.vmem %s10271_s5, %s9707_s7  ;;  %s6679_s25 = scalar_lea.vmem [#allocation3 - $0x1], %s9704_s28 }
0x1eae   : >> { %6943 = vmatpush3.bf16.msra.mxu0 %v6658_v16  ;;  %v6662_v22 = vcombine.low %v10375_v15, %v10374_v26  ;;  %v6661_v14 = vcombine.low %v9559_v52, %v9564_v36  ;;  %v10377_v23 = vld [vmem:[#allocation25_spill] sm:$0xff]  ;;  %v10378_v5 = vld [vmem:[#allocation30_spill] sm:$0xff]  ;;  %v10379_v2 = vld [vmem:[#allocation24_spill] sm:$0xff]  ;;  %v6659_v6 = vcombine.low %v9539_v31, %v9544_v27  ;;  %vm4004_vm11 = vcmp.eq.s32.totalorder %v8622_v8, %v8222_v7  ;;  %s10388_s3 = sld [smem:[#allocation38_spill]]  ;;  %s10321_s19 = smov 112  }
0x1eaf   : >> { %6944 = vmatprep.subr.bf16.mxu0 %v6665_v62  ;;  %v6653_v34 = vcombine.low %v10377_v23, %v10376_v20  ;;  %v6660_v33 = vcombine.low %v10378_v5, %v9554_v41  ;;  %v10380_v10 = vld [vmem:[#allocation23_spill] sm:$0xff]  ;;  %v10381_v0 = vld [vmem:[#allocation22_spill] sm:$0xff]  ;;  %vm6669_vm12 = vmpackc.low %vm4004_vm11, %vm4004_vm11  ;;  %vm8241_vm14 = vmmov 0   ;;  %vm4355_vm15 = vcmask 253952   ;;  %s6678_s29 = scalar_lea.vmem [#allocation2 - $0x1], %s9704_s28 }
0x1eb0   : >> { %v6652_v1 = vcombine.low %v10380_v10, %v10379_v2  ;;  %v6651_v54 = vcombine.low %v10381_v0, %v9461_v43  ;;  %v8022_v7 = vld [vmem:[%s10276_s10 + $0x18] sm:$0xff]  }
0x1eb2   : >> { %6945 = vmatpush3.bf16.msra.mxu0 %v6657_v24 }
0x1eb3   : >> { %6946 = vmatprep.subr.bf16.mxu0 %v6664_v25 }
0x1eb4   : >> { %s4148_s21 = scalar_lea.vmem %s10388_s3, %s9707_s7 }
0x1eb6   : >> { %6947 = vmatpush3.bf16.msra.mxu0 %v6656_v50 }
0x1eb7   : >> { %6948 = vmatprep.subr.bf16.mxu0 %v6663_v46  ;;  %v10317_v46 = vmov 0.0  }
0x1eb8   : >> { %7352 = vmatprep.subr.bf16.mxu1 %v10317_v46  ;;  %7360 = vmatprep.mubr.msk.bf16.mxu1 %vm8241_vm14, %v10317_v46 }
0x1eb9   : >> { %7353 = vmatpush3.bf16.msra.mxu1 %v8022_v7  ;;  %v10386_v7 = vld [vmem:[#allocation20_spill] sm:$0xff] }
0x1eba   : >> { %6949 = vmatpush3.bf16.msra.mxu0 %v6655_v40  ;;  %7354 = vmatprep.subr.bf16.mxu1 %v10317_v46  ;;  %v8024_v40 = vld [vmem:[%s10276_s10 + $0x8] sm:$0xff]  }
0x1ebb   : >> { %6950 = vmatprep.subr.bf16.mxu0 %v6662_v22  ;;  %v10382_v22 = vld [vmem:[#allocation21_spill] sm:$0xff] }
0x1ebe   : >> { %6951 = vmatpush3.bf16.msra.mxu0 %v6654_v42  ;;  %v8025_v42 = vld [vmem:[%s10276_s10] sm:$0xff]  }
0x1ebf   : >> { %6952 = vmatprep.subr.bf16.mxu0 %v6661_v14  ;;  %v4153_v14 = vld [vmem:[%s4152_s20] sm:$0x1] }
0x1ec0   : >> { %4340 = vrot.lane.b32.xlu1 %v4153_v14, %s10323_s24 }
0x1ec2   : >> { %6953 = vmatpush3.bf16.msra.mxu0 %v6653_v34 }
0x1ec3   : >> { %6954 = vmatprep.subr.bf16.mxu0 %v6660_v33 }
0x1ec6   : >> { %6955 = vmatpush3.bf16.msra.mxu0 %v6652_v1 }
0x1ec7   : >> { %6956 = vmatprep.subr.bf16.mxu0 %v6659_v6 }
0x1eca   : >> { %6957 = vmatpush3.bf16.msra.mxu0 %v6651_v54  ;;  %v4159_v54 = vld [vmem:[%s10275_s9] sm:$0x1] }
0x1ecb   : >> { %7376 = vmatprep.subr.bf16.mxu0 %v10317_v46 }
0x1ecd   : >> { %6670 = vmatmul.mubr.msk.bf16.vlgmr.msra.gmra.mxu0 %vm6669_vm12, %v8239_v49  ;;  %v8023_v49 = vld [vmem:[%s10276_s10 + $0x10] sm:$0xff]  }
0x1ece   : >> { %7377 = vmatpush3.bf16.msra.mxu0 %v8455_v47  ;;  %7380 = vmatprep.mubr.msk.bf16.mxu0 %vm8241_vm14, %v10317_v46 }
0x1ecf   : >> { %7378 = vmatprep.subr.bf16.mxu0 %v10317_v46  ;;  %7355 = vmatpush3.bf16.msra.mxu1 %v8023_v49  ;;  %v10387_v49 = vmov %v10386_v7 }
0x1ed0   : >> { %7356 = vmatprep.subr.bf16.mxu1 %v10317_v46 }
0x1ed2   : >> { %7379 = vmatpush3.bf16.msra.mxu0 %v10382_v22 }
0x1ed3   : >> { %7392 = vmatprep.subr.bf16.mxu0 %v10317_v46  ;;  %7357 = vmatpush3.bf16.msra.mxu1 %v8024_v40 }
0x1ed4   : >> { %7358 = vmatprep.subr.bf16.mxu1 %v10317_v46 }
0x1ed7   : >> { %7359 = vmatpush3.bf16.msra.mxu1 %v8025_v42 }
0x1ed8   : >> { %7364 = vmatprep.subr.bf16.mxu1 %v10317_v46 }
0x1f8d   : >> { %v6958_v58 = vpop.f32.mrf.mxu0 }
0x1f8f   : >> { %v6959_v11 = vpop.f32.mrf.mxu0 }
0x1f90   : >> { %v9671_v16 = vadd.f32 %v6959_v11, %v6958_v58 }
0x1f91   : >> { %v6961_v62 = vpop.f32.mrf.mxu0 }
0x1f92   : >> { %v4168_v24 = vmul.f32 %v9671_v16, %v9671_v16 }
0x1f93   : >> { %v6962_v25 = vpop.f32.mrf.mxu0 }
0x1f94   : >> { %v4170_v50 = vsel %vm4169_vm13, %v4168_v24, 0.0  ;;  %v10383_v24 = vld [vmem:[#allocation17_spill] sm:$0xff]  ;;  %v10384_v25 = vld [vmem:[#allocation18_spill] sm:$0xff] }
0x1f95   : >> { %4171 = vadd.xlane.f32.xlu0 %v4170_v50  ;;  %v10385_v50 = vld [vmem:[#allocation19_spill] sm:$0xff] }
0x201e   : >> { %v4172_v34 = vpop.xlane.xlu0 %4171 }
0x201f   : >> { %v4173_v33 = vmul.f32 0.015625, %v4172_v34 }
0x2021   : >> { %v4174_v1 = vadd.f32 1e-05, %v4173_v33 }
0x2023   : >> { %8078 = vrsqrt.f32 %v4174_v1 }
0x2030   : >> { %v8079_v6 = vpop.eup %8078 }
0x2031   : >> { %v4176_v58 = vmul.f32 %v8079_v6, %v9671_v16 }
0x2033   : >> { %v4177_v11 = vmul.f32 %v4176_v58, %v4159_v54 }
0x2035   : >> { %v4178_v62 = vpack.c.bf16 %v4177_v11, %v4177_v11 }
0x2037   : >> { %7361 = vmatmul.mubr.msk.bf16.vlgmr.msra.gmra.mxu1 %vm611_vm0, %v4178_v62 }
0x2038   : >> { %7365 = vmatpush3.bf16.msra.mxu1 %v10383_v24  ;;  %7372 = vmatprep.mubr.msk.bf16.mxu1 %vm8241_vm14, %v10317_v46 }
0x2039   : >> { %7366 = vmatprep.subr.bf16.mxu1 %v10317_v46 }
0x203c   : >> { %7367 = vmatpush3.bf16.msra.mxu1 %v10384_v25 }
0x203d   : >> { %7368 = vmatprep.subr.bf16.mxu1 %v10317_v46 }
0x2040   : >> { %7369 = vmatpush3.bf16.msra.mxu1 %v10385_v50 }
0x2041   : >> { %7370 = vmatprep.subr.bf16.mxu1 %v10317_v46 }
0x2044   : >> { %7371 = vmatpush3.bf16.msra.mxu1 %v10386_v7 }
0x2045   : >> { %7384 = vmatprep.subr.bf16.mxu1 %v10317_v46 }
0x20f7   : >> { %v4240_v40 = vpop.f32.mrf.mxu1 }
0x20f8   : >> { %v4246_v42 = vpack.c.bf16 %v4240_v40, %v4240_v40 }
0x20f9   : >> { %v7362_v14 = vpop.f32.mrf.mxu1 }
0x20fa   : >> { %4294 = vrot.lane.b32.xlu0 %v4246_v42, %s10323_s24  ;;  %7373 = vmatmul.mubr.msk.bf16.vlgmr.msra.gmra.mxu1 %vm611_vm0, %v4246_v42  ;;  %v9755_v14 = vld [vmem:[%s4148_s21] sm:$0x1]  ;;  %s10319_s21 = smov 80  }
0x20fb   : >> { %v4243_v34 = vpop.f32.mrf.mxu1  ;;  %7388 = vmatprep.mubr.msk.bf16.mxu1 %vm8241_vm14, %v10317_v46 }
0x20fd   : >> { %v7363_v33 = vpop.f32.mrf.mxu1 }
0x20fe   : >> { %4358 = vrot.lane.b32.xlu0 %v4240_v40, %s10316_s30  ;;  %s4150_s30 = scalar_lea.vmem %s10270_s4, %s9707_s7 }
0x20ff   : >> { %v9757_v34 = vld [vmem:[%s4150_s30] sm:$0x1]  ;;  %s4154_s30 = scalar_lea.vmem %s10272_s6, %s9707_s7 }
0x2100   : >> { %v9769_v0 = vld [vmem:[%s4154_s30] sm:$0x1]  ;;  %s10393_s30 = smov 96  }
0x216c   : >> { %v4295_v1 = vpop.permute.xlu0 %4294 }
0x216d   : >> { %7381 = vmatmul.mubr.msk.bf16.vlgmr.msra.gmra.mxu0 %vm843_vm1, %v4295_v1  ;;  %v4290_v1 = vmul.f32 %v4240_v40, %v9755_v14 }
0x216e   : >> { %7396 = vmatprep.mubr.msk.bf16.mxu0 %vm8241_vm14, %v10317_v46 }
0x2170   : >> { %v4359_v6 = vpop.permute.xlu0 %4358 }
0x2171   : >> { %4362 = vst.msk [vmem:[%s6679_s25] sm:$0x1] %vm4355_vm15, %v4359_v6  ;;  %s6729_s25 = scalar_lea.vmem [#allocation4 - $0x1], %s9704_s28 }
0x2178   : >> { %v4369_v54 = vld [vmem:[#allocation3 + $0x10] sm:$0xff]  ;;  %v4370_v58 = vld [vmem:[#allocation3 + $0x18] sm:$0xff]  ;;  %v4367_v62 = vld [vmem:[#allocation3] sm:$0xff] }
0x2179   : >> { %v9739_v11 = vpack.c.bf16 %v4370_v58, %v4369_v54  ;;  %v4368_v7 = vld [vmem:[#allocation3 + $0x8] sm:$0xff] }
0x217a   : >> { %v9743_v42 = vpack.c.bf16 %v4368_v7, %v4367_v62 }
0x217b   : >> { %7393 = vmatpush3.bf16.msra.mxu0 %v9739_v11 }
0x217c   : >> { %7394 = vmatprep.subr.bf16.mxu0 %v10317_v46 }
0x217f   : >> { %7395 = vmatpush3.bf16.msra.mxu0 %v9743_v42 }
0x2180   : >> { %7400 = vmatprep.subr.bf16.mxu0 %v10317_v46 }
0x21ba   : >> { %v4284_v33 = vpop.f32.mrf.mxu1 }
0x21bb   : >> { %v4291_v6 = vmul.f32 %v4284_v33, %v9757_v34 }
0x21bc   : >> { %v7374_v54 = vpop.f32.mrf.mxu1 }
0x21bd   : >> { %v4292_v58 = vadd.f32 %v4291_v6, %v4290_v1 }
0x21be   : >> { %v4287_v62 = vpop.f32.mrf.mxu1 }
0x21bf   : >> { %v9761_v7 = vpack.c.bf16 %v4292_v58, %v4292_v58 }
0x21c0   : >> { %v7375_v46 = vpop.f32.mrf.mxu1 }
0x21c1   : >> { %4490 = vrot.lane.b32.xlu0 %v9761_v7, %s10321_s19  ;;  %v9773_v46 = vpop.permute.xlu1 %4340 }
0x21c2   : >> { %v4343_v58 = vmul.f32 %v9773_v46, %v4240_v40  ;;  %v10389_v40 = vmov 0.0  }
0x222d   : >> { %v4333_v2 = vpop.f32.mrf.mxu0 }
0x222e   : >> { %v4344_v33 = vmul.f32 %v4333_v2, %v9769_v0 }
0x222f   : >> { %v7382_v54 = vpop.f32.mrf.mxu0 }
0x2230   : >> { %4346 = vrot.lane.b32.xlu1 %v4344_v33, %s10323_s24 }
0x2231   : >> { %v4336_v1 = vpop.f32.mrf.mxu0 }
0x2233   : >> { %v7383_v6 = vpop.f32.mrf.mxu0 }
0x22a2   : >> { %v4347_v62 = vpop.permute.xlu1 %4346 }
0x22a3   : >> { %v4349_v3 = vadd.f32 %v4347_v62, %v4343_v58 }
0x22a5   : >> { %4351 = vrot.lane.b32.xlu1 %v4349_v3, %s10323_s24  ;;  %s10392_s24 = smov 112  }
0x2317   : >> { %v4352_v4 = vpop.permute.xlu1 %4351 }
0x2318   : >> { %4356 = vst.msk [vmem:[%s6678_s29] sm:$0x1] %vm4355_vm15, %v4352_v4 }
0x231f   : >> { %v4365_v5 = vld [vmem:[#allocation2 + $0x10] sm:$0xff]  ;;  %v4366_v10 = vld [vmem:[#allocation2 + $0x18] sm:$0xff]  ;;  %v4363_v54 = vld [vmem:[#allocation2] sm:$0xff] }
0x2320   : >> { %v9779_v2 = vpack.c.bf16 %v4366_v10, %v4365_v5  ;;  %v4364_v1 = vld [vmem:[#allocation2 + $0x8] sm:$0xff]  ;;  %v4156_v10 = vstv %s9707_s7  ;;  %v8245_v5 = vmov -1e+09   ;;  %s10320_s7 = smov 96  }
0x2321   : >> { %v4379_v6 = vpack.c.bf16 %v4364_v1, %v4363_v54  ;;  %vm4157_vm4 = vcmp.le.s32.totalorder %v8622_v8, %v4156_v10  ;;  %v4491_v10 = vpop.permute.xlu0 %4490 }
0x2322   : >> { %v4391_v33 = vsel %vm993_vm2, %v9779_v2, 0  ;;  %v9796_v4 = vsel %vm4157_vm4, 0.0, %v8245_v5 }
0x2323   : >> { %7385 = vmatpush3.bf16.xpose.msra.mxu1 %v4391_v33  ;;  %v4388_v3 = vsel %vm993_vm2, %v4379_v6, 0 }
0x2324   : >> { %7386 = vmatprep.subr.bf16.mxu1 %v10389_v40 }
0x232b   : >> { %7387 = vmatpush3.bf16.xpose.msra.mxu1 %v4388_v3 }
0x232c   : >> { %7408 = vmatprep.subr.bf16.mxu1 %v10389_v40 }
0x2332   : >> { %7389 = vmatmul.mubr.msk.bf16.vlgmr.msra.gmra.mxu1 %vm993_vm2, %v9761_v7 }
0x2333   : >> { %7409 = vmatpush3.bf16.msra.mxu1 %v9739_v11  ;;  %7412 = vmatprep.mubr.msk.bf16.mxu1 %vm8241_vm14, %v10389_v40 }
0x2334   : >> { %7410 = vmatprep.subr.bf16.mxu1 %v10389_v40 }
0x2337   : >> { %7411 = vmatpush3.bf16.msra.mxu1 %v9743_v42 }
0x2338   : >> { %7416 = vmatprep.subr.bf16.mxu1 %v10389_v40 }
0x23f2   : >> { %v4427_v58 = vpop.f32.mrf.mxu1 }
0x23f3   : >> { %v4428_v62 = vadd.f32 %v4427_v58, %v9796_v4 }
0x23f4   : >> { %v7390_v54 = vpop.f32.mrf.mxu1 }
0x23f5   : >> { %v4433_v1 = vsel %vm4355_vm15, %v4428_v62, -inf }
0x23f6   : >> { %4434 = vmax.xlane.f32.xlu1 %v4433_v1  ;;  %v4430_v13 = vpop.f32.mrf.mxu1 }
0x23f8   : >> { %v7391_v15 = vpop.f32.mrf.mxu1 }
0x247f   : >> { %v4435_v17 = vpop.xlane.xlu1 %4434 }
0x2480   : >> { %v4436_v20 = vsub.f32 %v4428_v62, %v4435_v17 }
0x2482   : >> { %v4437_v21 = vmul.f32 1.442695, %v4436_v20 }
0x2484   : >> { %8080 = vpow2.f32 %v4437_v21 }
0x2491   : >> { %v8081_v23 = vpop.eup %8080 }
0x2492   : >> { %v4442_v26 = vpack.c.bf16 %v8081_v23, %v8081_v23 }
0x2494   : >> { %7397 = vmatmul.mubr.msk.bf16.vlgmr.msra.gmra.mxu0 %vm843_vm1, %v4442_v26 }
0x2495   : >> { %7401 = vmatpush3.bf16.xpose.msra.mxu0 %v4391_v33  ;;  %7404 = vmatprep.mubr.msk.bf16.mxu0 %vm8241_vm14, %v10389_v40 }
0x2496   : >> { %7402 = vmatprep.subr.bf16.mxu0 %v10389_v40 }
0x249d   : >> { %7403 = vmatpush3.bf16.xpose.msra.mxu0 %v4388_v3 }
0x249e   : >> { %7422 = vmatprep.subr.bf16.mxu0 %v10389_v40 }
0x24a4   : >> { %7405 = vmatmul.mubr.msk.bf16.vlgmr.msra.gmra.mxu0 %vm993_vm2, %v4491_v10 }
0x24a5   : >> { %7424 = vmatprep.mubr.msk.bf16.mxu0 %vm8241_vm14, %v10389_v40 }
0x2554   : >> { %v4480_v20 = vpop.f32.mrf.mxu0 }
0x2556   : >> { %v7398_v13 = vpop.f32.mrf.mxu0 }
0x2558   : >> { %v4483_v17 = vpop.f32.mrf.mxu0 }
0x255a   : >> { %v7399_v15 = vpop.f32.mrf.mxu0 }
0x255b   : >> { %v4439_v15 = vsel %vm4355_vm15, %v8081_v23, 0.0 }
0x2564   : >> { %v4529_v26 = vpop.f32.mrf.mxu0 }
0x2565   : >> { %v4530_v21 = vadd.f32 %v4529_v26, %v9796_v4 }
0x2566   : >> { %v7406_v33 = vpop.f32.mrf.mxu0 }
0x2567   : >> { %v4535_v5 = vsel %vm4355_vm15, %v4530_v21, -inf }
0x2568   : >> { %4536 = vmax.xlane.f32.xlu0 %v4535_v5  ;;  %v4532_v3 = vpop.f32.mrf.mxu0 }
0x256a   : >> { %v7407_v58 = vpop.f32.mrf.mxu0 }
0x257e   : >> { %4693 = vrot.lane.b32.xlu0 %v4379_v6, %s10321_s19  ;;  %v8026_v6 = vld [vmem:[%s10277_s11 + $0x8] sm:$0xff]  }
0x25f1   : >> { %v4537_v62 = vpop.xlane.xlu0 %4536 }
0x25f2   : >> { %v4538_v54 = vsub.f32 %v4530_v21, %v4537_v62 }
0x25f4   : >> { %v4539_v1 = vmul.f32 1.442695, %v4538_v54 }
0x25f6   : >> { %8082 = vpow2.f32 %v4539_v1 }
0x2603   : >> { %v8083_v10 = vpop.eup %8082 }
0x2604   : >> { %v4541_v13 = vsel %vm4355_vm15, %v8083_v10, 0.0  ;;  %v4544_v17 = vpack.c.bf16 %v8083_v10, %v8083_v10 }
0x2605   : >> { %4542 = vadd.xlane.f32.xlu1 %v4541_v13  ;;  %v4694_v13 = vpop.permute.xlu0 %4693 }
0x2606   : >> { %7413 = vmatmul.mubr.msk.bf16.vlgmr.msra.gmra.mxu1 %vm843_vm1, %v4544_v17  ;;  %v4701_v17 = vsel %vm993_vm2, %v4694_v13, 0 }
0x2607   : >> { %7418 = vmatprep.mubr.msk.bf16.mxu1 %vm8241_vm14, %v10389_v40  ;;  %7417 = vmatpush3.bf16.msra.mxu1 %v8026_v6 }
0x2608   : >> { %7428 = vmatprep.subr.bf16.mxu1 %v10389_v40 }
0x2616   : >> { %4695 = vrot.lane.b32.xlu1 %v9779_v2, %s10321_s19  ;;  %v8027_v2 = vld [vmem:[%s10277_s11] sm:$0xff]  }
0x2617   : >> { %7423 = vmatpush3.bf16.msra.mxu0 %v8027_v2 }
0x2618   : >> { %7436 = vmatprep.subr.bf16.mxu0 %v10389_v40 }
0x261a   : >> { %4689 = vrot.lane.b32.xlu1 %v9761_v7, %s10320_s7  ;;  %s10390_s7 = smov 64  }
0x261e   : >> { %4860 = vrot.lane.b32.xlu1 %v9761_v7, %s10319_s21  ;;  %s10391_s21 = smov 32  }
0x2642   : >> { %4440 = vadd.xlane.f32.xlu1 %v4439_v15 }
0x2653   : >> { %4760 = vrot.lane.b32.xlu1 %v9739_v11, %s10321_s19 }
0x268e   : >> { %v4543_v26 = vpop.xlane.xlu1 %4542 }
0x268f   : >> { %8084 = vrcp.f32 %v4543_v26 }
0x2692   : >> { %v4696_v21 = vpop.permute.xlu1 %4695 }
0x2693   : >> { %v4704_v11 = vsel %vm993_vm2, %v4696_v21, 0 }
0x2696   : >> { %v4690_v33 = vpop.permute.xlu1 %4689 }
0x269a   : >> { %v4861_v7 = vpop.permute.xlu1 %4860 }
0x269c   : >> { %v8085_v5 = vpop.eup %8084 }
0x26c6   : >> { %v4582_v3 = vpop.f32.mrf.mxu1 }
0x26c7   : >> { %v4589_v58 = vmul.f32 %v8085_v5, %v4582_v3 }
0x26c8   : >> { %v7414_v23 = vpop.f32.mrf.mxu1 }
0x26c9   : >> { %v4590_v62 = vpack.c.bf16 %v4589_v58, %v4589_v58 }
0x26ca   : >> { %v4585_v54 = vpop.f32.mrf.mxu1 }
0x26cb   : >> { %v4441_v1 = vpop.xlane.xlu1 %4440  ;;  %7419 = vmatmul.mubr.msk.bf16.vlgmr.msra.gmra.mxu1 %vm993_vm2, %v4590_v62 }
0x26cc   : >> { %8086 = vrcp.f32 %v4441_v1  ;;  %7429 = vmatpush3.bf16.xpose.msra.mxu1 %v4704_v11  ;;  %v7415_v10 = vpop.f32.mrf.mxu1  ;;  %7432 = vmatprep.mubr.msk.bf16.mxu1 %vm8241_vm14, %v10389_v40 }
0x26cd   : >> { %7430 = vmatprep.subr.bf16.mxu1 %v10389_v40 }
0x26cf   : >> { %v9843_v26 = vpop.permute.xlu1 %4760 }
0x26d4   : >> { %7431 = vmatpush3.bf16.xpose.msra.mxu1 %v4701_v17 }
0x26d5   : >> { %7450 = vmatprep.subr.bf16.mxu1 %v10389_v40 }
0x26d9   : >> { %v8087_v6 = vpop.eup %8086 }
0x26da   : >> { %v4487_v15 = vmul.f32 %v8087_v6, %v4480_v20 }
0x26db   : >> { %7433 = vmatmul.mubr.msk.bf16.vlgmr.msra.gmra.mxu1 %vm993_vm2, %v4690_v33 }
0x26dc   : >> { %7451 = vmatpush3.bf16.xpose.msra.mxu1 %v4704_v11  ;;  %v4488_v2 = vpack.c.bf16 %v4487_v15, %v4487_v15  ;;  %7454 = vmatprep.mubr.msk.bf16.mxu1 %vm8241_vm14, %v10389_v40 }
0x26dd   : >> { %7452 = vmatprep.subr.bf16.mxu1 %v10389_v40 }
0x26de   : >> { %7425 = vmatmul.mubr.msk.bf16.vlgmr.msra.gmra.mxu0 %vm993_vm2, %v4488_v2 }
0x26df   : >> { %7437 = vmatpush3.bf16.msra.mxu0 %v9843_v26  ;;  %7440 = vmatprep.mubr.msk.bf16.mxu0 %vm8241_vm14, %v10389_v40 }
0x26e0   : >> { %7438 = vmatprep.subr.bf16.mxu0 %v10389_v40 }
0x26e4   : >> { %7453 = vmatpush3.bf16.xpose.msra.mxu1 %v4701_v17 }
0x26eb   : >> { %7455 = vmatmul.mubr.msk.bf16.vlgmr.msra.gmra.mxu1 %vm993_vm2, %v4861_v7 }
0x278b   : >> { %v4634_v20 = vpop.f32.mrf.mxu1 }
0x278d   : >> { %v7420_v21 = vpop.f32.mrf.mxu1 }
0x278f   : >> { %v4637_v33 = vpop.f32.mrf.mxu1 }
0x2791   : >> { %v7421_v5 = vpop.f32.mrf.mxu1 }
0x279b   : >> { %v4740_v3 = vpop.f32.mrf.mxu1 }
0x279c   : >> { %v4741_v58 = vadd.f32 %v4740_v3, %v9796_v4 }
0x279d   : >> { %v7434_v23 = vpop.f32.mrf.mxu1 }
0x279e   : >> { %v4683_v62 = vpop.f32.mrf.mxu0  ;;  %v4746_v54 = vsel %vm4355_vm15, %v4741_v58, -inf }
0x279f   : >> { %v4684_v11 = vadd.f32 %v4683_v62, %v4634_v20  ;;  %4747 = vmax.xlane.f32.xlu0 %v4746_v54  ;;  %v4743_v1 = vpop.f32.mrf.mxu1 }
0x27a0   : >> { %v7426_v10 = vpop.f32.mrf.mxu0 }
0x27a1   : >> { %v7435_v13 = vpop.f32.mrf.mxu1 }
0x27a2   : >> { %v4686_v6 = vpop.f32.mrf.mxu0 }
0x27a4   : >> { %v7427_v17 = vpop.f32.mrf.mxu0 }
0x27ab   : >> { %v4899_v15 = vpop.f32.mrf.mxu1 }
0x27ac   : >> { %v4900_v33 = vadd.f32 %v4899_v15, %v9796_v4 }
0x27ad   : >> { %v7456_v7 = vpop.f32.mrf.mxu1 }
0x27ae   : >> { %v4905_v5 = vsel %vm4355_vm15, %v4900_v33, -inf }
0x27af   : >> { %v4902_v2 = vpop.f32.mrf.mxu1 }
0x27b1   : >> { %v7457_v21 = vpop.f32.mrf.mxu1 }
0x27b5   : >> { %4758 = vrot.lane.b32.xlu0 %v9743_v42, %s10321_s19  ;;  %v8028_v42 = vld [vmem:[%s10277_s11 + $0x10] sm:$0xff]   ;;  %s6730_s19 = scalar_lea.vmem [#allocation5 - $0x1], %s9704_s28 }
0x27d4   : >> { %4906 = vmax.xlane.f32.xlu0 %v4905_v5 }
0x2828   : >> { %v4748_v3 = vpop.xlane.xlu0 %4747 }
0x2829   : >> { %v4749_v20 = vsub.f32 %v4741_v58, %v4748_v3 }
0x282b   : >> { %v4750_v23 = vmul.f32 1.442695, %v4749_v20 }
0x282c   : >> { %v4759_v62 = vpop.permute.xlu0 %4758 }
0x282d   : >> { %8088 = vpow2.f32 %v4750_v23  ;;  %7439 = vmatpush3.bf16.msra.mxu0 %v4759_v62 }
0x282e   : >> { %7444 = vmatprep.subr.bf16.mxu0 %v10389_v40 }
0x283a   : >> { %v8089_v54 = vpop.eup %8088 }
0x283b   : >> { %v4752_v1 = vsel %vm4355_vm15, %v8089_v54, 0.0  ;;  %v4755_v10 = vpack.c.bf16 %v8089_v54, %v8089_v54 }
0x283c   : >> { %4753 = vadd.xlane.f32.xlu1 %v4752_v1  ;;  %v8029_v1 = vld [vmem:[%s10277_s11 + $0x18] sm:$0xff]  }
0x283d   : >> { %7441 = vmatmul.mubr.msk.bf16.vlgmr.msra.gmra.mxu0 %vm843_vm1, %v4755_v10 }
0x283e   : >> { %7446 = vmatprep.mubr.msk.bf16.mxu0 %vm8241_vm14, %v10389_v40  ;;  %7445 = vmatpush3.bf16.msra.mxu0 %v8028_v42 }
0x283f   : >> { %7458 = vmatprep.subr.bf16.mxu0 %v10389_v40 }
0x285d   : >> { %v4907_v58 = vpop.xlane.xlu0 %4906 }
0x285e   : >> { %v4908_v13 = vsub.f32 %v4900_v33, %v4907_v58 }
0x2860   : >> { %v4909_v6 = vmul.f32 1.442695, %v4908_v13 }
0x2862   : >> { %8090 = vpow2.f32 %v4909_v6 }
0x286f   : >> { %v8091_v17 = vpop.eup %8090 }
0x2870   : >> { %v4911_v15 = vsel %vm4355_vm15, %v8091_v17, 0.0  ;;  %v4914_v33 = vpack.c.bf16 %v8091_v17, %v8091_v17 }
0x2871   : >> { %4912 = vadd.xlane.f32.xlu1 %v4911_v15 }
0x28c5   : >> { %v4754_v7 = vpop.xlane.xlu1 %4753 }
0x28c6   : >> { %8092 = vrcp.f32 %v4754_v7 }
0x28d3   : >> { %v8093_v2 = vpop.eup %8092 }
0x28fd   : >> { %v4801_v21 = vpop.f32.mrf.mxu0 }
0x28fe   : >> { %v4808_v5 = vmul.f32 %v8093_v2, %v4801_v21 }
0x28ff   : >> { %v7442_v3 = vpop.f32.mrf.mxu0 }
0x2900   : >> { %v4809_v20 = vpack.c.bf16 %v4808_v5, %v4808_v5 }
0x2901   : >> { %v4804_v23 = vpop.f32.mrf.mxu0 }
0x2902   : >> { %7447 = vmatmul.mubr.msk.bf16.vlgmr.msra.gmra.mxu0 %vm993_vm2, %v4809_v20 }
0x2903   : >> { %7459 = vmatpush3.bf16.msra.mxu0 %v9843_v26  ;;  %v7443_v54 = vpop.f32.mrf.mxu0  ;;  %7462 = vmatprep.mubr.msk.bf16.mxu0 %vm8241_vm14, %v10389_v40  ;;  %v4913_v26 = vpop.xlane.xlu1 %4912 }
0x2904   : >> { %7460 = vmatprep.subr.bf16.mxu0 %v10389_v40  ;;  %8094 = vrcp.f32 %v4913_v26 }
0x2907   : >> { %7461 = vmatpush3.bf16.msra.mxu0 %v4759_v62 }
0x2908   : >> { %7466 = vmatprep.subr.bf16.mxu0 %v10389_v40 }
0x290a   : >> { %7463 = vmatmul.mubr.msk.bf16.vlgmr.msra.gmra.mxu0 %vm843_vm1, %v4914_v33 }
0x290b   : >> { %7468 = vmatprep.mubr.msk.bf16.mxu0 %vm8241_vm14, %v10389_v40  ;;  %7467 = vmatpush3.bf16.msra.mxu0 %v8029_v1 }
0x290c   : >> { %7472 = vmatprep.subr.bf16.mxu0 %v10389_v40 }
0x2911   : >> { %v8095_v6 = vpop.eup %8094 }
0x29c2   : >> { %v4853_v10 = vpop.f32.mrf.mxu0 }
0x29c3   : >> { %v4859_v42 = vadd.f32 %v4853_v10, %v4684_v11  ;;  %v8030_v10 = vld [vmem:[%s10279_s13 + $0x30] ss:$8 sps:$4 sm:$0xff]  }
0x29c4   : >> { %v7448_v62 = vpop.f32.mrf.mxu0 }
0x29c5   : >> { %v8033_v62 = vld [vmem:[%s10279_s13 + $0x20] ss:$8 sps:$4 sm:$0xff]  }
0x29c6   : >> { %v4856_v58 = vpop.f32.mrf.mxu0 }
0x29c7   : >> { %v8248_v58 = vmov 0  }
0x29c8   : >> { %v7449_v13 = vpop.f32.mrf.mxu0  ;;  %5122 = vmatprep.mubr.bf16.mxu1 %v8248_v58 }
0x29c9   : >> { %v8038_v13 = vld [vmem:[%s10279_s13 + $0x14] ss:$8 sps:$4 sm:$0xff]  }
0x29ca   : >> { %v4952_v17 = vpop.f32.mrf.mxu0 }
0x29cb   : >> { %v4959_v15 = vmul.f32 %v8095_v6, %v4952_v17  ;;  %v8036_v6 = vld [vmem:[%s10279_s13 + $0x10] ss:$8 sps:$4 sm:$0xff]   ;;  %v8041_v17 = vld [vmem:[%s10279_s13 + $0x4] ss:$8 sps:$4 sm:$0xff]  }
0x29cc   : >> { %v7464_v7 = vpop.f32.mrf.mxu0 }
0x29cd   : >> { %v4960_v2 = vpack.c.bf16 %v4959_v15, %v4959_v15  ;;  %v8039_v15 = vld [vmem:[%s10279_s13] ss:$8 sps:$4 sm:$0xff]  }
0x29ce   : >> { %v4955_v21 = vpop.f32.mrf.mxu0 }
0x29cf   : >> { %7469 = vmatmul.mubr.msk.bf16.vlgmr.msra.gmra.mxu0 %vm993_vm2, %v4960_v2 }
0x29d0   : >> { %v7465_v5 = vpop.f32.mrf.mxu0  ;;  %7488 = vmatprep.mubr.msk.bf16.mxu0 %vm8241_vm14, %v10389_v40 }
0x2a8f   : >> { %v5004_v3 = vpop.f32.mrf.mxu0 }
0x2a90   : >> { %v5010_v20 = vadd.f32 %v5004_v3, %v4859_v42  ;;  %v8032_v42 = vld [vmem:[%s10279_s13 + $0x34] ss:$8 sps:$4 sm:$0xff]   ;;  %v5012_v3 = vld [vmem:[%s10278_s12] sm:$0x1] }
0x2a91   : >> { %v7470_v23 = vpop.f32.mrf.mxu0  ;;  %5098 = vmatprep.subr.bf16.mxu1 %v8032_v42  ;;  %v8046_v42 = vld [vmem:[%s10280_s14 + $0x18] sm:$0xff]  }
0x2a92   : >> { %v9884_v11 = vadd.f32 %v9671_v16, %v5010_v20  ;;  %v8035_v16 = vld [vmem:[%s10279_s13 + $0x24] ss:$8 sps:$4 sm:$0xff]   ;;  %5099 = vmatpush1.bf16.msra.mxu1 %v8030_v10 }
0x2a93   : >> { %v5007_v54 = vpop.f32.mrf.mxu0  ;;  %5100 = vmatprep.subr.bf16.mxu1 %v8035_v16  ;;  %v8045_v10 = vld [vmem:[%s10280_s14 + $0x20] sm:$0xff]   ;;  %v8047_v16 = vld [vmem:[%s10280_s14 + $0x10] sm:$0xff]  }
0x2a94   : >> { %v5037_v33 = vmul.f32 %v9884_v11, %v9884_v11 }
0x2a95   : >> { %v7471_v1 = vpop.f32.mrf.mxu0 }
0x2a96   : >> { %v5038_v26 = vsel %vm4169_vm13, %v5037_v33, 0.0  ;;  %5101 = vmatpush1.bf16.msra.mxu1 %v8033_v62  ;;  %v8042_v33 = vld [vmem:[%s10280_s14 + $0x38] sm:$0xff]   ;;  %v8043_v1 = vld [vmem:[%s10280_s14 + $0x30] sm:$0xff]   ;;  %v8048_v62 = vld [vmem:[%s10280_s14 + $0x8] sm:$0xff]  }
0x2a97   : >> { %5039 = vadd.xlane.f32.xlu1 %v5038_v26  ;;  %5102 = vmatprep.subr.bf16.mxu1 %v8038_v13  ;;  %v8044_v26 = vld [vmem:[%s10280_s14 + $0x28] sm:$0xff]   ;;  %v8049_v13 = vld [vmem:[%s10280_s14] sm:$0xff]  }
0x2a98   : >> { %7473 = vmatpush3.bf16.msra.mxu0 %v8042_v33 }
0x2a99   : >> { %7474 = vmatprep.subr.bf16.mxu0 %v10389_v40 }
0x2a9a   : >> { %5103 = vmatpush1.bf16.msra.mxu1 %v8036_v6 }
0x2a9b   : >> { %5104 = vmatprep.subr.bf16.mxu1 %v8041_v17 }
0x2a9c   : >> { %7475 = vmatpush3.bf16.msra.mxu0 %v8043_v1 }
0x2a9d   : >> { %7476 = vmatprep.subr.bf16.mxu0 %v10389_v40 }
0x2a9e   : >> { %5105 = vmatpush1.bf16.msra.mxu1 %v8039_v15 }
0x2a9f   : >> { %7492 = vmatprep.subr.bf16.mxu1 %v10389_v40 }
0x2aa0   : >> { %7477 = vmatpush3.bf16.msra.mxu0 %v8044_v26 }
0x2aa1   : >> { %7478 = vmatprep.subr.bf16.mxu0 %v10389_v40 }
0x2aa4   : >> { %7479 = vmatpush3.bf16.msra.mxu0 %v8045_v10 }
0x2aa5   : >> { %7480 = vmatprep.subr.bf16.mxu0 %v10389_v40 }
0x2aa8   : >> { %7481 = vmatpush3.bf16.msra.mxu0 %v8046_v42 }
0x2aa9   : >> { %7482 = vmatprep.subr.bf16.mxu0 %v10389_v40 }
0x2aac   : >> { %7483 = vmatpush3.bf16.msra.mxu0 %v8047_v16 }
0x2aad   : >> { %7484 = vmatprep.subr.bf16.mxu0 %v10389_v40 }
0x2ab0   : >> { %7485 = vmatpush3.bf16.msra.mxu0 %v8048_v62 }
0x2ab1   : >> { %7486 = vmatprep.subr.bf16.mxu0 %v10389_v40 }
0x2ab4   : >> { %7487 = vmatpush3.bf16.msra.mxu0 %v8049_v13 }
0x2ab5   : >> { %7516 = vmatprep.subr.bf16.mxu0 %v10389_v40 }
0x2b20   : >> { %v5040_v7 = vpop.xlane.xlu1 %5039 }
0x2b21   : >> { %v5041_v2 = vmul.f32 0.015625, %v5040_v7 }
0x2b23   : >> { %v5042_v21 = vadd.f32 1e-05, %v5041_v2 }
0x2b25   : >> { %8096 = vrsqrt.f32 %v5042_v21 }
0x2b32   : >> { %v8097_v5 = vpop.eup %8096 }
0x2b33   : >> { %v5044_v20 = vmul.f32 %v8097_v5, %v9884_v11 }
0x2b35   : >> { %v5045_v23 = vmul.f32 %v5044_v20, %v5012_v3 }
0x2b37   : >> { %v5046_v54 = vpack.c.bf16 %v5045_v23, %v5045_v23 }
0x2b39   : >> { %6704 = vmatmul.mubr.msk.bf16.vlgmr.msra.gmra.mxu1 %vm611_vm0, %v5046_v54 }
0x2b3a   : >> { %7500 = vmatprep.mubr.msk.bf16.mxu1 %vm8241_vm14, %v10389_v40 }
0x2bf9   : >> { %v5124_v6 = vpop.f32.mrf.mxu1 }
0x2bfa   : >> { %v5131_v17 = vsub.f32 0.0, %v5124_v6 }
0x2bfb   : >> { %v5126_v15 = vpop.f32.mrf.mxu1 }
0x2bfc   : >> { %v5132_v7 = vmul.f32 1.442695, %v5131_v17  ;;  %v8051_v17 = vld [vmem:[%s10276_s10 + $0x30] sm:$0xff]  }
0x2bfd   : >> { %v5128_v2 = vpop.f32.mrf.mxu1 }
0x2bfe   : >> { %8098 = vpow2.f32 %v5132_v7 }
0x2bff   : >> { %v5129_v21 = vpop.f32.mrf.mxu1 }
0x2c0b   : >> { %v8099_v5 = vpop.eup %8098 }
0x2c0c   : >> { %v5134_v3 = vadd.f32 1.0, %v8099_v5 }
0x2c0e   : >> { %8100 = vrcp.f32 %v5134_v3  ;;  %v6713_v3 = vld [vmem:[%s10275_s9 + $0x1] sm:$0x1] }
0x2c1b   : >> { %v8101_v20 = vpop.eup %8100 }
0x2c1c   : >> { %v5136_v23 = vmul.f32 %v8101_v20, %v5124_v6  ;;  %v8050_v6 = vld [vmem:[%s10276_s10 + $0x38] sm:$0xff]  }
0x2c1d   : >> { %7493 = vmatpush3.bf16.msra.mxu1 %v8050_v6 }
0x2c1e   : >> { %v5137_v54 = vmul.f32 %v5136_v23, %v5126_v15  ;;  %7494 = vmatprep.subr.bf16.mxu1 %v10389_v40  ;;  %v8053_v15 = vld [vmem:[%s10276_s10 + $0x20] sm:$0xff]  }
0x2c20   : >> { %v5138_v33 = vpack.c.bf16 %v5137_v54, %v5137_v54 }
0x2c21   : >> { %7495 = vmatpush3.bf16.msra.mxu1 %v8051_v17 }
0x2c22   : >> { %7489 = vmatmul.mubr.bf16.vlgmr.msra.gmra.mxu0 %v5138_v33  ;;  %7496 = vmatprep.subr.bf16.mxu1 %v10389_v40 }
0x2c23   : >> { %7517 = vmatpush3.bf16.msra.mxu0 %v8455_v47  ;;  %7520 = vmatprep.mubr.msk.bf16.mxu0 %vm8241_vm14, %v10389_v40 }
0x2c24   : >> { %7518 = vmatprep.subr.bf16.mxu0 %v10389_v40 }
0x2c27   : >> { %7519 = vmatpush3.bf16.msra.mxu0 %v10382_v22 }
0x2c28   : >> { %7524 = vmatprep.subr.bf16.mxu0 %v10389_v40 }
0x2ce2   : >> { %v5221_v1 = vpop.f32.mrf.mxu0 }
0x2ce3   : >> { %v9961_v26 = vadd.f32 %v5221_v1, %v9884_v11  ;;  %v8052_v11 = vld [vmem:[%s10276_s10 + $0x28] sm:$0xff]  }
0x2ce4   : >> { %v7490_v10 = vpop.f32.mrf.mxu0  ;;  %7497 = vmatpush3.bf16.msra.mxu1 %v8052_v11 }
0x2ce5   : >> { %v5237_v42 = vmul.f32 %v9961_v26, %v9961_v26  ;;  %7498 = vmatprep.subr.bf16.mxu1 %v10389_v40 }
0x2ce6   : >> { %v5224_v16 = vpop.f32.mrf.mxu0 }
0x2ce7   : >> { %v5238_v62 = vsel %vm4169_vm13, %v5237_v42, 0.0 }
0x2ce8   : >> { %5239 = vadd.xlane.f32.xlu0 %v5238_v62  ;;  %v7491_v13 = vpop.f32.mrf.mxu0  ;;  %7499 = vmatpush3.bf16.msra.mxu1 %v8053_v15 }
0x2ce9   : >> { %7504 = vmatprep.subr.bf16.mxu1 %v10389_v40 }
0x2d71   : >> { %v5240_v7 = vpop.xlane.xlu0 %5239 }
0x2d72   : >> { %v5241_v2 = vmul.f32 0.015625, %v5240_v7 }
0x2d74   : >> { %v5242_v21 = vadd.f32 1e-05, %v5241_v2 }
0x2d76   : >> { %8102 = vrsqrt.f32 %v5242_v21 }
0x2d83   : >> { %v8103_v5 = vpop.eup %8102 }
0x2d84   : >> { %v5244_v20 = vmul.f32 %v8103_v5, %v9961_v26 }
0x2d86   : >> { %v5245_v23 = vmul.f32 %v6713_v3, %v5244_v20 }
0x2d88   : >> { %v5246_v54 = vpack.c.bf16 %v5245_v23, %v5245_v23 }
0x2d8a   : >> { %7501 = vmatmul.mubr.msk.bf16.vlgmr.msra.gmra.mxu1 %vm611_vm0, %v5246_v54 }
0x2d8b   : >> { %7505 = vmatpush3.bf16.msra.mxu1 %v10383_v24  ;;  %7512 = vmatprep.mubr.msk.bf16.mxu1 %vm8241_vm14, %v10389_v40 }
0x2d8c   : >> { %7506 = vmatprep.subr.bf16.mxu1 %v10389_v40 }
0x2d8f   : >> { %7507 = vmatpush3.bf16.msra.mxu1 %v10384_v25 }
0x2d90   : >> { %7508 = vmatprep.subr.bf16.mxu1 %v10389_v40 }
0x2d93   : >> { %7509 = vmatpush3.bf16.msra.mxu1 %v10385_v50 }
0x2d94   : >> { %7510 = vmatprep.subr.bf16.mxu1 %v10389_v40 }
0x2d97   : >> { %7511 = vmatpush3.bf16.msra.mxu1 %v10387_v49 }
0x2d98   : >> { %7532 = vmatprep.subr.bf16.mxu1 %v10389_v40 }
0x2e4a   : >> { %v5308_v33 = vpop.f32.mrf.mxu1 }
0x2e4b   : >> { %v5314_v1 = vpack.c.bf16 %v5308_v33, %v5308_v33  ;;  %v5358_v5 = vmul.f32 %v5308_v33, %v9755_v14 }
0x2e4c   : >> { %v7502_v10 = vpop.f32.mrf.mxu1 }
0x2e4d   : >> { %5362 = vrot.lane.b32.xlu1 %v5314_v1, %s10390_s7  ;;  %7513 = vmatmul.mubr.msk.bf16.vlgmr.msra.gmra.mxu1 %vm611_vm0, %v5314_v1 }
0x2e4e   : >> { %v5311_v42 = vpop.f32.mrf.mxu1  ;;  %7536 = vmatprep.mubr.msk.bf16.mxu1 %vm8241_vm14, %v10389_v40 }
0x2e50   : >> { %v7503_v16 = vpop.f32.mrf.mxu1 }
0x2ebf   : >> { %v5363_v62 = vpop.permute.xlu1 %5362 }
0x2ec0   : >> { %7521 = vmatmul.mubr.msk.bf16.vlgmr.msra.gmra.mxu0 %vm843_vm1, %v5363_v62 }
0x2ec1   : >> { %7528 = vmatprep.mubr.msk.bf16.mxu0 %vm8241_vm14, %v10389_v40 }
0x2f0d   : >> { %v5352_v13 = vpop.f32.mrf.mxu1 }
0x2f0e   : >> { %v5359_v7 = vmul.f32 %v5352_v13, %v9757_v34  ;;  %v5407_v34 = vmul.f32 %v5308_v33, %v9773_v46 }
0x2f0f   : >> { %v7514_v6 = vpop.f32.mrf.mxu1 }
0x2f10   : >> { %v5360_v20 = vadd.f32 %v5359_v7, %v5358_v5 }
0x2f11   : >> { %v5355_v17 = vpop.f32.mrf.mxu1 }
0x2f12   : >> { %v10009_v54 = vpack.c.bf16 %v5360_v20, %v5360_v20 }
0x2f13   : >> { %v7515_v11 = vpop.f32.mrf.mxu1 }
0x2f80   : >> { %v5401_v15 = vpop.f32.mrf.mxu0 }
0x2f81   : >> { %v5408_v2 = vmul.f32 %v5401_v15, %v9769_v0 }
0x2f82   : >> { %v7522_v21 = vpop.f32.mrf.mxu0 }
0x2f83   : >> { %5410 = vrot.lane.b32.xlu0 %v5408_v2, %s10390_s7 }
0x2f84   : >> { %v5404_v3 = vpop.f32.mrf.mxu0 }
0x2f86   : >> { %v7523_v23 = vpop.f32.mrf.mxu0 }
0x2f87   : >> { %5421 = vrot.lane.b32.xlu0 %v5308_v33, %s10391_s21  ;;  %s10394_s21 = smov 80  }
0x2f8b   : >> { %5553 = vrot.lane.b32.xlu0 %v10009_v54, %s10392_s24 }
0x2ff5   : >> { %v5411_v1 = vpop.permute.xlu0 %5410 }
0x2ff6   : >> { %v5413_v10 = vadd.f32 %v5411_v1, %v5407_v34 }
0x2ff8   : >> { %5415 = vrot.lane.b32.xlu1 %v5413_v10, %s10390_s7 }
0x2ff9   : >> { %v5422_v0 = vpop.permute.xlu0 %5421 }
0x2ffa   : >> { %5425 = vst.msk [vmem:[%s6730_s19] sm:$0x1] %vm4355_vm15, %v5422_v0 }
0x3001   : >> { %v5432_v14 = vld [vmem:[#allocation5 + $0x10] sm:$0xff]  ;;  %v5433_v42 = vld [vmem:[#allocation5 + $0x18] sm:$0xff]  ;;  %v5430_v62 = vld [vmem:[#allocation5] sm:$0xff] }
0x3002   : >> { %v10017_v16 = vpack.c.bf16 %v5433_v42, %v5432_v14  ;;  %v5431_v13 = vld [vmem:[#allocation5 + $0x8] sm:$0xff] }
0x3003   : >> { %v10021_v46 = vpack.c.bf16 %v5431_v13, %v5430_v62 }
0x3004   : >> { %7533 = vmatpush3.bf16.msra.mxu1 %v10017_v16 }
0x3005   : >> { %7534 = vmatprep.subr.bf16.mxu1 %v10389_v40 }
0x3008   : >> { %7535 = vmatpush3.bf16.msra.mxu1 %v10021_v46 }
0x3009   : >> { %7540 = vmatprep.subr.bf16.mxu1 %v10389_v40 }
0x306a   : >> { %v5416_v33 = vpop.permute.xlu1 %5415 }
0x306b   : >> { %5419 = vst.msk [vmem:[%s6729_s25] sm:$0x1] %vm4355_vm15, %v5416_v33  ;;  %v5554_v33 = vpop.permute.xlu0 %5553 }
0x3072   : >> { %v5428_v6 = vld [vmem:[#allocation4 + $0x10] sm:$0xff]  ;;  %v5429_v17 = vld [vmem:[#allocation4 + $0x18] sm:$0xff]  ;;  %v5426_v7 = vld [vmem:[#allocation4] sm:$0xff] }
0x3073   : >> { %v10027_v11 = vpack.c.bf16 %v5429_v17, %v5428_v6  ;;  %v5427_v2 = vld [vmem:[#allocation4 + $0x8] sm:$0xff] }
0x3074   : >> { %v5442_v21 = vpack.c.bf16 %v5427_v2, %v5426_v7 }
0x3075   : >> { %v5454_v15 = vsel %vm993_vm2, %v10027_v11, 0 }
0x3076   : >> { %7525 = vmatpush3.bf16.xpose.msra.mxu0 %v5454_v15  ;;  %v5451_v5 = vsel %vm993_vm2, %v5442_v21, 0 }
0x3077   : >> { %7526 = vmatprep.subr.bf16.mxu0 %v10389_v40 }
0x307e   : >> { %7527 = vmatpush3.bf16.xpose.msra.mxu0 %v5451_v5 }
0x307f   : >> { %7548 = vmatprep.subr.bf16.mxu0 %v10389_v40 }
0x3085   : >> { %7529 = vmatmul.mubr.msk.bf16.vlgmr.msra.gmra.mxu0 %vm993_vm2, %v10009_v54 }
0x3086   : >> { %7549 = vmatpush3.bf16.msra.mxu0 %v10017_v16  ;;  %7552 = vmatprep.mubr.msk.bf16.mxu0 %vm8241_vm14, %v10389_v40 }
0x3087   : >> { %7550 = vmatprep.subr.bf16.mxu0 %v10389_v40 }
0x308a   : >> { %7551 = vmatpush3.bf16.msra.mxu0 %v10021_v46 }
0x308b   : >> { %7556 = vmatprep.subr.bf16.mxu0 %v10389_v40 }
0x3145   : >> { %v5490_v3 = vpop.f32.mrf.mxu0 }
0x3146   : >> { %v5491_v20 = vadd.f32 %v5490_v3, %v9796_v4 }
0x3147   : >> { %v7530_v23 = vpop.f32.mrf.mxu0 }
0x3148   : >> { %v5496_v34 = vsel %vm4355_vm15, %v5491_v20, -inf }
0x3149   : >> { %5497 = vmax.xlane.f32.xlu1 %v5496_v34  ;;  %v5493_v1 = vpop.f32.mrf.mxu0 }
0x314b   : >> { %v7531_v10 = vpop.f32.mrf.mxu0 }
0x314c   : >> { %v8054_v10 = vld [vmem:[%s10277_s11 + $0x20] sm:$0xff]  }
0x31d2   : >> { %v5498_v0 = vpop.xlane.xlu1 %5497 }
0x31d3   : >> { %v5499_v14 = vsub.f32 %v5491_v20, %v5498_v0 }
0x31d5   : >> { %v5500_v42 = vmul.f32 1.442695, %v5499_v14 }
0x31d7   : >> { %8104 = vpow2.f32 %v5500_v42 }
0x31e4   : >> { %v8105_v62 = vpop.eup %8104 }
0x31e5   : >> { %v5505_v13 = vpack.c.bf16 %v8105_v62, %v8105_v62  ;;  %v5502_v1 = vsel %vm4355_vm15, %v8105_v62, 0.0 }
0x31e7   : >> { %7537 = vmatmul.mubr.msk.bf16.vlgmr.msra.gmra.mxu1 %vm843_vm1, %v5505_v13 }
0x31e8   : >> { %7541 = vmatpush3.bf16.xpose.msra.mxu1 %v5454_v15  ;;  %7544 = vmatprep.mubr.msk.bf16.mxu1 %vm8241_vm14, %v10389_v40 }
0x31e9   : >> { %7542 = vmatprep.subr.bf16.mxu1 %v10389_v40 }
0x31f0   : >> { %7543 = vmatpush3.bf16.xpose.msra.mxu1 %v5451_v5 }
0x31f1   : >> { %7562 = vmatprep.subr.bf16.mxu1 %v10389_v40 }
0x31f7   : >> { %7545 = vmatmul.mubr.msk.bf16.vlgmr.msra.gmra.mxu1 %vm993_vm2, %v5554_v33 }
0x31f8   : >> { %7564 = vmatprep.mubr.msk.bf16.mxu1 %vm8241_vm14, %v10389_v40  ;;  %7563 = vmatpush3.bf16.msra.mxu1 %v8054_v10 }
0x31f9   : >> { %7576 = vmatprep.subr.bf16.mxu1 %v10389_v40 }
0x32a7   : >> { %v5543_v6 = vpop.f32.mrf.mxu1 }
0x32a9   : >> { %v7538_v17 = vpop.f32.mrf.mxu1 }
0x32ab   : >> { %v5546_v7 = vpop.f32.mrf.mxu1 }
0x32ad   : >> { %v7539_v2 = vpop.f32.mrf.mxu1 }
0x32b7   : >> { %v5592_v3 = vpop.f32.mrf.mxu1 }
0x32b8   : >> { %v5593_v15 = vadd.f32 %v5592_v3, %v9796_v4 }
0x32b9   : >> { %v7546_v20 = vpop.f32.mrf.mxu1 }
0x32ba   : >> { %v5598_v23 = vsel %vm4355_vm15, %v5593_v15, -inf }
0x32bb   : >> { %5599 = vmax.xlane.f32.xlu0 %v5598_v23  ;;  %v5595_v5 = vpop.f32.mrf.mxu1 }
0x32bd   : >> { %v7547_v34 = vpop.f32.mrf.mxu1 }
0x32d1   : >> { %5756 = vrot.lane.b32.xlu0 %v5442_v21, %s10392_s24 }
0x32f0   : >> { %5503 = vadd.xlane.f32.xlu0 %v5502_v1 }
0x3306   : >> { %5823 = vrot.lane.b32.xlu0 %v10017_v16, %s10392_s24  ;;  %v8055_v16 = vld [vmem:[%s10277_s11 + $0x28] sm:$0xff]  }
0x3344   : >> { %v5600_v0 = vpop.xlane.xlu0 %5599 }
0x3345   : >> { %v5601_v14 = vsub.f32 %v5593_v15, %v5600_v0 }
0x3347   : >> { %v5602_v42 = vmul.f32 1.442695, %v5601_v14 }
0x3348   : >> { %v5757_v62 = vpop.permute.xlu0 %5756 }
0x3349   : >> { %8106 = vpow2.f32 %v5602_v42  ;;  %v5764_v14 = vsel %vm993_vm2, %v5757_v62, 0 }
0x3356   : >> { %v8107_v13 = vpop.eup %8106 }
0x3357   : >> { %v5604_v21 = vsel %vm4355_vm15, %v8107_v13, 0.0  ;;  %v5607_v33 = vpack.c.bf16 %v8107_v13, %v8107_v13 }
0x3358   : >> { %5605 = vadd.xlane.f32.xlu1 %v5604_v21 }
0x3359   : >> { %7553 = vmatmul.mubr.msk.bf16.vlgmr.msra.gmra.mxu0 %vm843_vm1, %v5607_v33 }
0x335a   : >> { %7558 = vmatprep.mubr.msk.bf16.mxu0 %vm8241_vm14, %v10389_v40  ;;  %7557 = vmatpush3.bf16.msra.mxu0 %v8055_v16 }
0x335b   : >> { %7568 = vmatprep.subr.bf16.mxu0 %v10389_v40 }
0x3369   : >> { %5758 = vrot.lane.b32.xlu1 %v10027_v11, %s10392_s24 }
0x336d   : >> { %5752 = vrot.lane.b32.xlu1 %v10009_v54, %s10393_s30 }
0x3371   : >> { %5923 = vrot.lane.b32.xlu1 %v10009_v54, %s10394_s21 }
0x3379   : >> { %v5504_v17 = vpop.xlane.xlu0 %5503 }
0x337a   : >> { %8108 = vrcp.f32 %v5504_v17 }
0x337d   : >> { %v10076_v11 = vpop.permute.xlu0 %5823 }
0x3387   : >> { %v8109_v7 = vpop.eup %8108 }
0x3388   : >> { %v5550_v2 = vmul.f32 %v8109_v7, %v5543_v6 }
0x338a   : >> { %v5551_v3 = vpack.c.bf16 %v5550_v2, %v5550_v2 }
0x338c   : >> { %7565 = vmatmul.mubr.msk.bf16.vlgmr.msra.gmra.mxu1 %vm993_vm2, %v5551_v3 }
0x338d   : >> { %7577 = vmatpush3.bf16.msra.mxu1 %v10076_v11  ;;  %7580 = vmatprep.mubr.msk.bf16.mxu1 %vm8241_vm14, %v10389_v40 }
0x338e   : >> { %7578 = vmatprep.subr.bf16.mxu1 %v10389_v40 }
0x33e1   : >> { %v5606_v15 = vpop.xlane.xlu1 %5605 }
0x33e2   : >> { %8110 = vrcp.f32 %v5606_v15 }
0x33e5   : >> { %v5759_v5 = vpop.permute.xlu1 %5758 }
0x33e6   : >> { %v5767_v10 = vsel %vm993_vm2, %v5759_v5, 0 }
0x33e9   : >> { %v5753_v42 = vpop.permute.xlu1 %5752 }
0x33ed   : >> { %v5924_v13 = vpop.permute.xlu1 %5923 }
0x33ef   : >> { %v8111_v54 = vpop.eup %8110 }
0x3419   : >> { %v5645_v20 = vpop.f32.mrf.mxu0 }
0x341a   : >> { %v5652_v23 = vmul.f32 %v8111_v54, %v5645_v20 }
0x341b   : >> { %v7554_v34 = vpop.f32.mrf.mxu0 }
0x341c   : >> { %v5653_v6 = vpack.c.bf16 %v5652_v23, %v5652_v23 }
0x341d   : >> { %v5648_v1 = vpop.f32.mrf.mxu0 }
0x341e   : >> { %7559 = vmatmul.mubr.msk.bf16.vlgmr.msra.gmra.mxu0 %vm993_vm2, %v5653_v6 }
0x341f   : >> { %7569 = vmatpush3.bf16.xpose.msra.mxu0 %v5767_v10  ;;  %v7555_v0 = vpop.f32.mrf.mxu0  ;;  %7572 = vmatprep.mubr.msk.bf16.mxu0 %vm8241_vm14, %v10389_v40 }
0x3420   : >> { %7570 = vmatprep.subr.bf16.mxu0 %v10389_v40 }
0x3427   : >> { %7571 = vmatpush3.bf16.xpose.msra.mxu0 %v5764_v14 }
0x3428   : >> { %7590 = vmatprep.subr.bf16.mxu0 %v10389_v40 }
0x342e   : >> { %7573 = vmatmul.mubr.msk.bf16.vlgmr.msra.gmra.mxu0 %vm993_vm2, %v5753_v42 }
0x342f   : >> { %7591 = vmatpush3.bf16.xpose.msra.mxu0 %v5767_v10  ;;  %7594 = vmatprep.mubr.msk.bf16.mxu0 %vm8241_vm14, %v10389_v40 }
0x3430   : >> { %7592 = vmatprep.subr.bf16.mxu0 %v10389_v40 }
0x3437   : >> { %7593 = vmatpush3.bf16.xpose.msra.mxu0 %v5764_v14 }
0x343e   : >> { %7595 = vmatmul.mubr.msk.bf16.vlgmr.msra.gmra.mxu0 %vm993_vm2, %v5924_v13 }
0x343f   : >> { %6185 = vmatprep.mubr.bf16.mxu0 %v8248_v58 }
0x344c   : >> { %v10096_v21 = vpop.f32.mrf.mxu1 }
0x344e   : >> { %v7566_v33 = vpop.f32.mrf.mxu1 }
0x3450   : >> { %v5749_v16 = vpop.f32.mrf.mxu1 }
0x3452   : >> { %v7567_v62 = vpop.f32.mrf.mxu1 }
0x34de   : >> { %v10098_v17 = vpop.f32.mrf.mxu0 }
0x34e0   : >> { %v7560_v7 = vpop.f32.mrf.mxu0 }
0x34e2   : >> { %v5700_v2 = vpop.f32.mrf.mxu0 }
0x34e4   : >> { %v7561_v3 = vpop.f32.mrf.mxu0 }
0x34ee   : >> { %v5803_v15 = vpop.f32.mrf.mxu0 }
0x34ef   : >> { %v5804_v54 = vadd.f32 %v5803_v15, %v9796_v4 }
0x34f0   : >> { %v7574_v20 = vpop.f32.mrf.mxu0 }
0x34f1   : >> { %v5809_v23 = vsel %vm4355_vm15, %v5804_v54, -inf }
0x34f2   : >> { %5810 = vmax.xlane.f32.xlu1 %v5809_v23  ;;  %v5806_v5 = vpop.f32.mrf.mxu0 }
0x34f4   : >> { %v7575_v34 = vpop.f32.mrf.mxu0 }
0x34fe   : >> { %v5962_v6 = vpop.f32.mrf.mxu0 }
0x34ff   : >> { %v5963_v14 = vadd.f32 %v5962_v6, %v9796_v4  ;;  %v8056_v4 = vld [vmem:[%s10277_s11 + $0x30] sm:$0xff]  }
0x3500   : >> { %v7596_v1 = vpop.f32.mrf.mxu0 }
0x3501   : >> { %v5968_v42 = vsel %vm4355_vm15, %v5963_v14, -inf }
0x3502   : >> { %v5965_v10 = vpop.f32.mrf.mxu0 }
0x3503   : >> { %5821 = vrot.lane.b32.xlu1 %v10021_v46, %s10392_s24 }
0x3504   : >> { %v7597_v0 = vpop.f32.mrf.mxu0 }
0x3527   : >> { %5969 = vmax.xlane.f32.xlu1 %v5968_v42 }
0x357b   : >> { %v5811_v13 = vpop.xlane.xlu1 %5810 }
0x357c   : >> { %v5812_v33 = vsub.f32 %v5804_v54, %v5811_v13 }
0x357e   : >> { %v5813_v16 = vmul.f32 1.442695, %v5812_v33  ;;  %v8057_v33 = vld [vmem:[%s10277_s11 + $0x38] sm:$0xff]  }
0x357f   : >> { %v5822_v62 = vpop.permute.xlu1 %5821 }
0x3580   : >> { %8112 = vpow2.f32 %v5813_v16  ;;  %7579 = vmatpush3.bf16.msra.mxu1 %v5822_v62  ;;  %v5747_v16 = vadd.f32 %v10096_v21, %v10098_v17 }
0x3581   : >> { %7584 = vmatprep.subr.bf16.mxu1 %v10389_v40 }
0x358d   : >> { %v8113_v7 = vpop.eup %8112 }
0x358e   : >> { %v5815_v2 = vsel %vm4355_vm15, %v8113_v7, 0.0  ;;  %v5818_v3 = vpack.c.bf16 %v8113_v7, %v8113_v7 }
0x358f   : >> { %5816 = vadd.xlane.f32.xlu0 %v5815_v2 }
0x3590   : >> { %7581 = vmatmul.mubr.msk.bf16.vlgmr.msra.gmra.mxu1 %vm843_vm1, %v5818_v3 }
0x3591   : >> { %7586 = vmatprep.mubr.msk.bf16.mxu1 %vm8241_vm14, %v10389_v40  ;;  %7585 = vmatpush3.bf16.msra.mxu1 %v8056_v4 }
0x3592   : >> { %7598 = vmatprep.subr.bf16.mxu1 %v10389_v40 }
0x35b0   : >> { %v5970_v46 = vpop.xlane.xlu1 %5969 }
0x35b1   : >> { %v5971_v15 = vsub.f32 %v5963_v14, %v5970_v46 }
0x35b3   : >> { %v5972_v54 = vmul.f32 1.442695, %v5971_v15 }
0x35b5   : >> { %8114 = vpow2.f32 %v5972_v54 }
0x35c2   : >> { %v8115_v20 = vpop.eup %8114 }
0x35c3   : >> { %v5974_v23 = vsel %vm4355_vm15, %v8115_v20, 0.0  ;;  %v5977_v14 = vpack.c.bf16 %v8115_v20, %v8115_v20 }
0x35c4   : >> { %5975 = vadd.xlane.f32.xlu0 %v5974_v23 }
0x3618   : >> { %v5817_v5 = vpop.xlane.xlu0 %5816 }
0x3619   : >> { %8116 = vrcp.f32 %v5817_v5 }
0x3626   : >> { %v8117_v34 = vpop.eup %8116 }
0x3650   : >> { %v5864_v6 = vpop.f32.mrf.mxu1 }
0x3651   : >> { %v5871_v1 = vmul.f32 %v8117_v34, %v5864_v6 }
0x3652   : >> { %v7582_v10 = vpop.f32.mrf.mxu1 }
0x3653   : >> { %v5872_v0 = vpack.c.bf16 %v5871_v1, %v5871_v1 }
0x3654   : >> { %v5867_v42 = vpop.f32.mrf.mxu1 }
0x3655   : >> { %7587 = vmatmul.mubr.msk.bf16.vlgmr.msra.gmra.mxu1 %vm993_vm2, %v5872_v0 }
0x3656   : >> { %7599 = vmatpush3.bf16.msra.mxu1 %v10076_v11  ;;  %v7583_v13 = vpop.f32.mrf.mxu1  ;;  %7602 = vmatprep.mubr.msk.bf16.mxu1 %vm8241_vm14, %v10389_v40  ;;  %v5976_v11 = vpop.xlane.xlu0 %5975 }
0x3657   : >> { %7600 = vmatprep.subr.bf16.mxu1 %v10389_v40  ;;  %8118 = vrcp.f32 %v5976_v11  ;;  %v8061_v11 = vld [vmem:[%s10279_s13 + $0x60] ss:$8 sps:$4 sm:$0xff]  }
0x365a   : >> { %7601 = vmatpush3.bf16.msra.mxu1 %v5822_v62 }
0x365b   : >> { %7606 = vmatprep.subr.bf16.mxu1 %v10389_v40 }
0x365d   : >> { %7603 = vmatmul.mubr.msk.bf16.vlgmr.msra.gmra.mxu1 %vm843_vm1, %v5977_v14  ;;  %v8058_v14 = vld [vmem:[%s10279_s13 + $0x70] ss:$8 sps:$4 sm:$0xff]  }
0x365e   : >> { %7608 = vmatprep.mubr.msk.bf16.mxu1 %vm8241_vm14, %v10389_v40  ;;  %7607 = vmatpush3.bf16.msra.mxu1 %v8057_v33  ;;  %v8060_v33 = vld [vmem:[%s10279_s13 + $0x74] ss:$8 sps:$4 sm:$0xff]  }
0x365f   : >> { %7612 = vmatprep.subr.bf16.mxu1 %v10389_v40  ;;  %6161 = vmatprep.subr.bf16.mxu0 %v8060_v33 }
0x3660   : >> { %6162 = vmatpush1.bf16.msra.mxu0 %v8058_v14 }
0x3664   : >> { %v8119_v46 = vpop.eup %8118 }
0x3715   : >> { %v5916_v62 = vpop.f32.mrf.mxu1 }
0x3716   : >> { %v5922_v7 = vadd.f32 %v5916_v62, %v5747_v16  ;;  %v8066_v16 = vld [vmem:[%s10279_s13 + $0x54] ss:$8 sps:$4 sm:$0xff]   ;;  %v8064_v62 = vld [vmem:[%s10279_s13 + $0x50] ss:$8 sps:$4 sm:$0xff]  }
0x3717   : >> { %v7588_v2 = vpop.f32.mrf.mxu1 }
0x3718   : >> { %v8067_v2 = vld [vmem:[%s10279_s13 + $0x40] ss:$8 sps:$4 sm:$0xff]  }
0x3719   : >> { %v5919_v3 = vpop.f32.mrf.mxu1 }
0x371b   : >> { %v7589_v4 = vpop.f32.mrf.mxu1 }
0x371d   : >> { %v6015_v15 = vpop.f32.mrf.mxu1 }
0x371e   : >> { %v6022_v54 = vmul.f32 %v8119_v46, %v6015_v15 }
0x371f   : >> { %v7604_v20 = vpop.f32.mrf.mxu1 }
0x3720   : >> { %v6023_v23 = vpack.c.bf16 %v6022_v54, %v6022_v54  ;;  %v6755_v54 = vld [vmem:[%s10278_s12 + $0x1] sm:$0x1] }
0x3721   : >> { %v6018_v5 = vpop.f32.mrf.mxu1 }
0x3722   : >> { %7609 = vmatmul.mubr.msk.bf16.vlgmr.msra.gmra.mxu1 %vm993_vm2, %v6023_v23 }
0x3723   : >> { %v7605_v34 = vpop.f32.mrf.mxu1  ;;  %7628 = vmatprep.mubr.msk.bf16.mxu1 %vm8241_vm14, %v10389_v40 }
0x3724   : >> { %v8070_v34 = vld [vmem:[%s10280_s14 + $0x78] sm:$0xff]  }
0x3725   : >> { %7613 = vmatpush3.bf16.msra.mxu1 %v8070_v34 }
0x3726   : >> { %7614 = vmatprep.subr.bf16.mxu1 %v10389_v40 }
0x37e2   : >> { %v6067_v6 = vpop.f32.mrf.mxu1 }
0x37e3   : >> { %v6073_v1 = vadd.f32 %v6067_v6, %v5922_v7  ;;  %v8069_v7 = vld [vmem:[%s10279_s13 + $0x44] ss:$8 sps:$4 sm:$0xff]  }
0x37e4   : >> { %v7610_v21 = vpop.f32.mrf.mxu1  ;;  %v8072_v6 = vld [vmem:[%s10280_s14 + $0x68] sm:$0xff]  }
0x37e5   : >> { %v10135_v17 = vadd.f32 %v6073_v1, %v9961_v26  ;;  %v8063_v26 = vld [vmem:[%s10279_s13 + $0x64] ss:$8 sps:$4 sm:$0xff]   ;;  %v8074_v21 = vld [vmem:[%s10280_s14 + $0x58] sm:$0xff]  }
0x37e6   : >> { %v6070_v10 = vpop.f32.mrf.mxu1  ;;  %6163 = vmatprep.subr.bf16.mxu0 %v8063_v26  ;;  %v8073_v1 = vld [vmem:[%s10280_s14 + $0x60] sm:$0xff]  }
0x37e7   : >> { %v6100_v0 = vmul.f32 %v10135_v17, %v10135_v17  ;;  %6164 = vmatpush1.bf16.msra.mxu0 %v8061_v11  ;;  %v8075_v10 = vld [vmem:[%s10280_s14 + $0x50] sm:$0xff]  }
0x37e8   : >> { %v7611_v42 = vpop.f32.mrf.mxu1  ;;  %6165 = vmatprep.subr.bf16.mxu0 %v8066_v16 }
0x37e9   : >> { %v6101_v13 = vsel %vm4169_vm13, %v6100_v0, 0.0  ;;  %v8076_v0 = vld [vmem:[%s10280_s14 + $0x48] sm:$0xff]   ;;  %v8077_v42 = vld [vmem:[%s10280_s14 + $0x40] sm:$0xff]  }
0x37ea   : >> { %6102 = vadd.xlane.f32.xlu0 %v6101_v13 }
0x37eb   : >> { %6166 = vmatpush1.bf16.msra.mxu0 %v8064_v62 }
0x37ec   : >> { %6167 = vmatprep.subr.bf16.mxu0 %v8069_v7 }
0x37ef   : >> { %6168 = vmatpush1.bf16.msra.mxu0 %v8067_v2 }
0x37f0   : >> { %6312 = vmatprep.subr.bf16.mxu0 %v9350_v37 }
0x3873   : >> { %v6103_v3 = vpop.xlane.xlu0 %6102 }
0x3874   : >> { %v6104_v4 = vmul.f32 0.015625, %v6103_v3 }
0x3876   : >> { %v6105_v46 = vadd.f32 1e-05, %v6104_v4 }
0x3878   : >> { %8120 = vrsqrt.f32 %v6105_v46 }
0x3885   : >> { %v8121_v15 = vpop.eup %8120 }
0x3886   : >> { %v6107_v20 = vmul.f32 %v8121_v15, %v10135_v17 }
0x3888   : >> { %v6108_v23 = vmul.f32 %v6755_v54, %v6107_v20 }
0x388a   : >> { %v6109_v5 = vpack.c.bf16 %v6108_v23, %v6108_v23 }
0x388c   : >> { %6788 = vmatmul.mubr.msk.bf16.vlgmr.msra.gmra.mxu0 %vm611_vm0, %v6109_v5 }
0x388d   : >> { %6313 = vmatpush1.bf16.msra.mxu0 %v9355_v12  ;;  %6336 = vmatprep.mubr.bf16.mxu0 %v8248_v58  ;;  %v8071_v58 = vld [vmem:[%s10280_s14 + $0x70] sm:$0xff]  }
0x388e   : >> { %6314 = vmatprep.subr.bf16.mxu0 %v9362_v60  ;;  %7615 = vmatpush3.bf16.msra.mxu1 %v8071_v58 }
0x388f   : >> { %7616 = vmatprep.subr.bf16.mxu1 %v10389_v40 }
0x3891   : >> { %6315 = vmatpush1.bf16.msra.mxu0 %v9367_v30 }
0x3892   : >> { %6316 = vmatprep.subr.bf16.mxu0 %v9374_v35  ;;  %7617 = vmatpush3.bf16.msra.mxu1 %v8072_v6 }
0x3893   : >> { %7618 = vmatprep.subr.bf16.mxu1 %v10389_v40 }
0x3895   : >> { %6317 = vmatpush1.bf16.msra.mxu0 %v9379_v29 }
0x3896   : >> { %6318 = vmatprep.subr.bf16.mxu0 %v9386_v61  ;;  %7619 = vmatpush3.bf16.msra.mxu1 %v8073_v1 }
0x3897   : >> { %7620 = vmatprep.subr.bf16.mxu1 %v10389_v40 }
0x3899   : >> { %6319 = vmatpush1.bf16.msra.mxu0 %v9391_v18 }
0x389a   : >> { %7621 = vmatpush3.bf16.msra.mxu1 %v8074_v21 }
0x389b   : >> { %7622 = vmatprep.subr.bf16.mxu1 %v10389_v40 }
0x389e   : >> { %7623 = vmatpush3.bf16.msra.mxu1 %v8075_v10 }
0x389f   : >> { %7624 = vmatprep.subr.bf16.mxu1 %v10389_v40 }
0x38a2   : >> { %7625 = vmatpush3.bf16.msra.mxu1 %v8076_v0 }
0x38a3   : >> { %7626 = vmatprep.subr.bf16.mxu1 %v10389_v40 }
0x38a6   : >> { %7627 = vmatpush3.bf16.msra.mxu1 %v8077_v42 }
0x394c   : >> { %v6187_v13 = vpop.f32.mrf.mxu0 }
0x394d   : >> { %v6194_v14 = vsub.f32 0.0, %v6187_v13 }
0x394e   : >> { %v6189_v33 = vpop.f32.mrf.mxu0 }
0x394f   : >> { %v6195_v26 = vmul.f32 1.442695, %v6194_v14 }
0x3950   : >> { %v6191_v11 = vpop.f32.mrf.mxu0 }
0x3951   : >> { %8122 = vpow2.f32 %v6195_v26 }
0x3952   : >> { %v6192_v16 = vpop.f32.mrf.mxu0 }
0x395e   : >> { %v8123_v62 = vpop.eup %8122 }
0x395f   : >> { %v6197_v7 = vadd.f32 1.0, %v8123_v62 }
0x3961   : >> { %8124 = vrcp.f32 %v6197_v7 }
0x396e   : >> { %v8125_v2 = vpop.eup %8124 }
0x396f   : >> { %v6199_v3 = vmul.f32 %v8125_v2, %v6187_v13 }
0x3971   : >> { %v6200_v4 = vmul.f32 %v6199_v3, %v6189_v33 }
0x3973   : >> { %v6201_v46 = vpack.c.bf16 %v6200_v4, %v6200_v4 }
0x3975   : >> { %7629 = vmatmul.mubr.bf16.vlgmr.msra.gmra.mxu1 %v6201_v46 }
0x3a35   : >> { %v6284_v40 = vpop.f32.mrf.mxu1 }
0x3a36   : >> { %v6290_v15 = vadd.f32 %v6284_v40, %v10135_v17 }
0x3a37   : >> { %v7630_v54 = vpop.f32.mrf.mxu1 }
0x3a38   : >> { %v6291_v20 = vmul.f32 %v6290_v15, %v6290_v15 }
0x3a39   : >> { %v6287_v23 = vpop.f32.mrf.mxu1 }
0x3a3a   : >> { %v6292_v5 = vsel %vm4169_vm13, %v6291_v20, 0.0 }
0x3a3b   : >> { %6293 = vadd.xlane.f32.xlu1 %v6292_v5  ;;  %v7631_v34 = vpop.f32.mrf.mxu1 }
0x3ac4   : >> { %v6294_v58 = vpop.xlane.xlu1 %6293 }
0x3ac5   : >> { %v6295_v6 = vmul.f32 0.015625, %v6294_v58  ;;  %v6372_v58 = vstv %s8226_s22  ;;  %s3999_s22 = sadd.s32 1, %s8226_s22  }
0x3ac6   : >> { %vm6373_vm9 = vcmp.eq.s32.totalorder %v8622_v8, %v6372_v58  ;;  %p3996_p2 = scmp.ge.s32.totalorder %s3999_s22, 4  }
0x3ac7   : >> { %v6296_v1 = vadd.f32 1e-05, %v6295_v6  ;;  %vm6375_vm10 = vcmask (%p3996_p2), 24576   ;;  %s6798_s21 = sshll.u32 (%p3996_p2), %s8364_s2, 4  ;;  %s6390_s25 = sshll.u32 (%p3996_p2), %s9622_s1, 4  ;;  %s6391_s25 = int_to_ptr.vmem [resolvable:$true] %s6390_s25 }
0x3ac8   : > { %s6388_s19 = scalar_lea.hbm (%p3996_p2), %s10283_s17, %s6798_s21  ;;  %s10396_s28 = sand.u32 (%p3996_p2), 1, %s8206_s0  }
0x3ac9   : >> { %8126 = vrsqrt.f32 %v6296_v1  ;;  %s6378_s20 = scalar_lea.sflag (%p3996_p2), [#allocation9], %s10396_s28  ;;  %s8140_s30 = scalar_lea.vmem (%p3996_p2), %s6391_s25, 16 }
0x3aca   : > { %p8141_p3 = scmp.ne.s32.totalorder (%p3996_p2), %s6391_s25, %s8140_s30  ;;  %s8249_s27 = smov (%p3996_p2), [#allocation8]  }
0x3acb   : > { %s8144_s22 = sshll.u32 (%p3996_p2), %s8249_s27, 4  ;;  %s8145_s22 = int_to_ptr.vmem [resolvable:$false] %s8144_s22 }
0x3acc   : > { %p8142_p4 = pnand (%p3996_p2), %p8141_p3, %p8381_p10  ;;  %s8146_s29 = scalar_lea.vmem (%p3996_p2), %s8145_s22, 32 }
0x3acd   : > { %p8147_p6 = scmp.lt.s32.totalorder (%p3996_p2), %s6391_s25, %s8145_s22  ;;  %p8148_p7 = scmp.lt.s32.totalorder (%p3996_p2), %s8146_s29, %s8140_s30 }
0x3ace   : > { %p8143_p5 = pneg (%p3996_p2), %p8142_p4 }
0x3acf   : > { %p8149_p8 = por (%p3996_p2), %p8148_p7, %p8147_p6 }
0x3ad1   : > { %p8150_p9 = pnand (%p3996_p2), %p8149_p8, %p8143_p5 }
0x3ad6   : >> { %v8127_v21 = vpop.eup %8126 }
0x3ad7   : >> { %v6298_v10 = vmul.f32 %v8127_v21, %v6290_v15 }
0x3ad9   : >> { %v6299_v0 = vmul.f32 %v6298_v10, %v9398_v19 }
0x3adb   : >> { %v6300_v42 = vpack.c.bf16 %v6299_v0, %v6299_v0 }
0x3add   : >> { %6797 = vmatmul.mubr.msk.bf16.vlgmr.msra.gmra.mxu0 %vm611_vm0, %v6300_v42 }
0x3b9d   : >> { %v6338_v13 = vpop.f32.mrf.mxu0 }
0x3b9e   : >> { %v6345_v14 = vsel %vm3931_vm3, %v6338_v13, -inf }
0x3b9f   : >> { %v6340_v17 = vpop.f32.mrf.mxu0 }
0x3ba0   : >> { %v6346_v33 = vsel %vm3931_vm3, %v6340_v17, -inf }
0x3ba1   : >> { %v6342_v26 = vpop.f32.mrf.mxu0  ;;  %v6347_v11 = vmax.f32 %v6345_v14, %v6346_v33 }
0x3ba3   : >> { %6348 = vmax.xlane.f32.xlu0 %v6347_v11  ;;  %v6343_v16 = vpop.f32.mrf.mxu0 }
0x3c2c   : >> { %v6349_v62 = vpop.xlane.xlu0 %6348 }
0x3c2d   : >> { %vm6350_vm5 = vcmp.ge.f32.partialorder %v6338_v13, %v6349_v62  ;;  %vm6351_vm6 = vcmp.ge.f32.partialorder %v6340_v17, %v6349_v62 }
0x3c2e   : >> { %v6352_v7 = vsel %vm6350_vm5, %v8622_v8, 256  ;;  %v6353_v2 = vsel %vm6351_vm6, %v9421_v44, 256 }
0x3c2f   : >> { %v6354_v3 = vsel %vm3931_vm3, %v6352_v7, 2147483647  ;;  %v6355_v4 = vsel %vm3931_vm3, %v6353_v2, 2147483647 }
0x3c30   : >> { %vm6356_vm7 = vcmp.lt.s32.totalorder %v6354_v3, %v6355_v4 }
0x3c31   : >> { %v6357_v46 = vsel %vm6356_vm7, %v6354_v3, %v6355_v4 }
0x3c32   : >> { %v6359_v40 = vshra.s32 %v6357_v46, 16  ;;  %v6358_v54 = vand.u32 65535, %v6357_v46 }
0x3c34   : >> { %v6361_v15 = vcvt.s32.f32 %v6359_v40  ;;  %v6360_v23 = vcvt.s32.f32 %v6358_v54 }
0x3c36   : >> { %6362 = vmin.xlane.f32.xlu1 %v6361_v15 }
0x3cbf   : >> { %v6363_v20 = vpop.xlane.xlu1 %6362 }
0x3cc0   : >> { %vm6364_vm8 = vcmp.eq.f32.partialorder %v6361_v15, %v6363_v20  ;;  %v6369_v34 = vcvt.f32.s32 %v6363_v20 }
0x3cc1   : >> { %v6365_v5 = vsel %vm6364_vm8, %v6360_v23, inf }
0x3cc2   : >> { %6366 = vmin.xlane.f32.xlu0 %v6365_v5  ;;  %v6370_v1 = vshll.u32 %v6369_v34, 16 }
0x3d4b   : >> { %v6367_v6 = vpop.xlane.xlu0 %6366 }
0x3d4c   : >> { %v6368_v21 = vcvt.f32.s32 %v6367_v6 }
0x3d4d   : > { %3998 = sbr.rel (!%p3996_p2) target bundleno = 7851 (0x1eab), region = 140 }
0x3d4e   : >> { %v6371_v7 = vadd.s32 %v6370_v1, %v6368_v21  }
0x3d50   : >> { %v6374_v10 = vsel %vm6373_vm9, %v6371_v7, %v8218_v9  }
0x3d51   : >> { %v10395_v9 = vmov %v6374_v10  ;;  %6376 = vst.msk [vmem:[%s9622_s1] sm:$0x1] (%p3996_p2), %vm6375_vm10, %v6374_v10 }
0x3d52   : > { %8153 = shalt.err (!%p8150_p9)
}
0x3d53   : > { %s8154_s2 = scalar_lea.hbm %s6388_s19, 16  ;;  %s8158_s21 = scalar_lea.hbm %s10283_s17, 32 }
0x3d54   : > { %p8155_p12 = scmp.ne.s32.totalorder %s6388_s19, %s8154_s2  ;;  %p8159_p1 = scmp.lt.s32.totalorder %s6388_s19, %s10283_s17 }
0x3d55   : > { %p8160_p2 = scmp.lt.s32.totalorder %s8158_s21, %s8154_s2 }
0x3d56   : > { %p8156_p13 = pnand %p8155_p12, %p8381_p10 }
0x3d57   : > { %p8161_p3 = por %p8160_p2, %p8159_p1 }
0x3d58   : > { %p8157_p0 = pneg %p8156_p13 }
0x3d5a   : > { %p8162_p4 = pnand %p8161_p3, %p8157_p0 }
0x3d5c   : > { %8165 = shalt.err (!%p8162_p4)
}
0x3d5d   : > { %7648 = dma.vmem_to_hbm [thread:$0]  (%p8381_p10), %s6391_s25, 16, %s6388_s19, %s6378_s20  }
0x3d5e PF: > { %s10397_s28 = sld [smem:[#allocation12_spill]]  ;;  %p7654_p5 = scmp.ge.s32.totalorder %s8214_s18, 2 }
0x3d60   : > { %p7651_p6 = pnand %p7654_p5, %p8385_p11 }
0x3d62   : > { %p7652_p7 = pneg %p7651_p6 }
0x3d64   : > { %s6402_s27 = sand.u32 1, %s10397_s28  }
0x3d65   : > { %s6403_s22 = scalar_lea.sflag [#allocation9], %s6402_s27 }
0x3d66   : > { %8197 = dma.done.wait (%p7652_p7), %s6403_s22, 16  }
0x3d67   : > { %8199 = vsyncadd (%p7652_p7), %s6403_s22, 4294967280  ;;  %s10399_s18 = sld [smem:[#allocation14_spill]]  ;;  %s10402_s29 = smov %s8206_s0 }
0x3d68   : > { %s10400_s2 = sld [smem:[#allocation13_spill]] }
0x3d69   : > { %s10401_s30 = sld [smem:[#allocation15_spill]] }
0x3d6d   : > { %p33_p8 = scmp.ge.s32.totalorder %s10399_s18, 4  }
0x3d6e   : > { %s10403_s0 = smov %s10400_s2 }
0x3d6f   :  { %35 = sbr.rel (!%p33_p8) target bundleno = 29 (0x1d), region = 151 }
0x3d74   :  { %6407 = vsyncpa [#allocation9], 1 }
0x3d75   :  { %6409 = vsyncpa [#allocation9 + $0x1], 1 }

</bundles_post_ra>
